<compile_context>
chip_gen: v5e
topology: v5e:2x2
jax: 0.10.0
libtpu: 0.0.40
codegen_flags: <defaults>
</compile_context>

<pallas_src>
import functools

import jax
import jax.numpy as jnp
from jax.experimental import pallas as pl
from jax.experimental.pallas import tpu as pltpu

OUT_PAD = 128  # pad the final Linear(C, 4) to 128 lanes; sliced back to 4 outside


# ----------------------------- in-kernel helpers -----------------------------

def _layer_norm(x, g, b):
    """LayerNorm over the last axis, eps = 1e-5 (PyTorch default). g, b: (1, C)."""
    mu = jnp.mean(x, axis=-1, keepdims=True)
    xc = x - mu
    var = jnp.mean(xc * xc, axis=-1, keepdims=True)
    return xc * jax.lax.rsqrt(var + 1e-5) * g + b


def _mha_core(q, k, v, wo, bo, n_head, neg_mask):
    """Multi-head attention + output projection, all in VMEM/vregs.

    q: (Tq, C), k/v: (Tk, C), wo: (C, C), bo: (1, C).
    Heads are statically unrolled (head_dim = C // n_head is tiny); the output
    projection is folded into the per-head loop (concat(o_h) @ Wo ==
    sum_h o_h @ Wo[h*Dh:(h+1)*Dh]), avoiding any lane concat / 3-D reshape.
    """
    tq, c = q.shape
    dh = c // n_head
    scale = 1.0 / float(dh) ** 0.5
    out = jnp.zeros((tq, wo.shape[1]), jnp.float32) + bo
    for h in range(n_head):
        lo = h * dh
        qh = q[:, lo:lo + dh] * scale
        kh = k[:, lo:lo + dh]
        vh = v[:, lo:lo + dh]
        s = jnp.dot(qh, kh.T, preferred_element_type=jnp.float32)
        if neg_mask is not None:
            s = s + neg_mask
        s = s - jnp.max(s, axis=-1, keepdims=True)
        p = jnp.exp(s)
        p = p * pl.reciprocal(jnp.sum(p, axis=-1, keepdims=True), approx=True)
        oh = jnp.dot(p, vh, preferred_element_type=jnp.float32)          # (Tq, Dh)
        out = out + jnp.dot(oh, wo[lo:lo + dh, :],
                            preferred_element_type=jnp.float32)
    return out


# ------------------------------ fused kernels --------------------------------

def _encoder_stack_kernel(src_ref, pos_ref, conv_w_ref, conv_b_ref,
                          wqkv_ref, bqkv_ref, wo_ref, bo_ref,
                          ln1g_ref, ln1b_ref,
                          f1w_ref, f1b_ref, f2w_ref, f2b_ref,
                          ln2g_ref, ln2b_ref,
                          mem_ref, *, n_layers, n_head):
    """One batch element: Conv1d(im2col) + 9 TransformerEncoderLayers + residual."""
    src = src_ref[0]                                   # (S, V)
    sm, c = pos_ref.shape

    # Conv1d(V -> C, kernel_size=3, no padding) as a sum of 3 shifted matmuls.
    acc = jnp.zeros((sm, c), jnp.float32)
    for i in range(3):
        acc = acc + jnp.dot(src[i:i + sm, :], conv_w_ref[i],
                            preferred_element_type=jnp.float32)
    src_start = acc + conv_b_ref[...]                  # (Sm, C)

    # Reference quirk: the encoder input is the positional embedding only.
    x0 = pos_ref[...]

    def layer(l, x):
        qkv = (jnp.dot(x, wqkv_ref[l], preferred_element_type=jnp.float32)
               + bqkv_ref[l])                          # (Sm, 3C)
        a = _mha_core(qkv[:, :c], qkv[:, c:2 * c], qkv[:, 2 * c:],
                      wo_ref[l], bo_ref[l], n_head, None)
        x = _layer_norm(x + a, ln1g_ref[l], ln1b_ref[l])
        h = jnp.maximum(jnp.dot(x, f1w_ref[l],
                                preferred_element_type=jnp.float32) + f1b_ref[l],
                        0.0)
        h = jnp.dot(h, f2w_ref[l], preferred_element_type=jnp.float32) + f2b_ref[l]
        return _layer_norm(x + h, ln2g_ref[l], ln2b_ref[l])

    x = jax.lax.fori_loop(0, n_layers, layer, x0)
    mem_ref[0] = x + src_start                         # memory (Sm, C)


def _decoder_stack_kernel(trg_ref, mem_ref, pos_ref, opw_ref, opb_ref,
                          swqkv_ref, sbqkv_ref, swo_ref, sbo_ref,
                          ln1g_ref, ln1b_ref,
                          cwq_ref, cbq_ref, cwkv_ref, cbkv_ref, cwo_ref, cbo_ref,
                          ln2g_ref, ln2b_ref,
                          f1w_ref, f1b_ref, f2w_ref, f2b_ref,
                          ln3g_ref, ln3b_ref,
                          linw_ref, linb_ref,
                          out_ref, *, n_layers, n_head):
    """One batch element: output_projection + 8 TransformerDecoderLayers
    + residual + final Linear (padded to 128 lanes)."""
    trg = trg_ref[0]                                   # (T, V)
    mem = mem_ref[0]                                   # (Sm, C)
    t = trg.shape[0]
    c = mem.shape[1]

    trg_start = (jnp.dot(trg, opw_ref[...], preferred_element_type=jnp.float32)
                 + opb_ref[...])                       # (T, C)
    x0 = trg_start + pos_ref[...]

    # gen_trg_mask: additive causal mask generated in-kernel (finite negative
    # instead of -inf to keep the softmax NaN-safe).
    row = jax.lax.broadcasted_iota(jnp.int32, (t, t), 0)
    col = jax.lax.broadcasted_iota(jnp.int32, (t, t), 1)
    causal = jnp.where(col <= row, 0.0, -1e30).astype(jnp.float32)

    def layer(l, x):
        # self-attention (causal)
        qkv = (jnp.dot(x, swqkv_ref[l], preferred_element_type=jnp.float32)
               + sbqkv_ref[l])
        a = _mha_core(qkv[:, :c], qkv[:, c:2 * c], qkv[:, 2 * c:],
                      swo_ref[l], sbo_ref[l], n_head, causal)
        x = _layer_norm(x + a, ln1g_ref[l], ln1b_ref[l])
        # cross-attention (no mask)
        q2 = jnp.dot(x, cwq_ref[l], preferred_element_type=jnp.float32) + cbq_ref[l]
        kv = jnp.dot(mem, cwkv_ref[l], preferred_element_type=jnp.float32) + cbkv_ref[l]
        cattn = _mha_core(q2, kv[:, :c], kv[:, c:],
                          cwo_ref[l], cbo_ref[l], n_head, None)
        x = _layer_norm(x + cattn, ln2g_ref[l], ln2b_ref[l])
        # feed-forward
        h = jnp.maximum(jnp.dot(x, f1w_ref[l],
                                preferred_element_type=jnp.float32) + f1b_ref[l],
                        0.0)
        h = jnp.dot(h, f2w_ref[l], preferred_element_type=jnp.float32) + f2b_ref[l]
        return _layer_norm(x + h, ln3g_ref[l], ln3b_ref[l])

    x = jax.lax.fori_loop(0, n_layers, layer, x0)
    y = x + trg_start
    out_ref[0] = (jnp.dot(y, linw_ref[...], preferred_element_type=jnp.float32)
                  + linb_ref[...])                     # (T, OUT_PAD), lane-dense


# ------------------------------ BlockSpec helpers -----------------------------

def _full_spec(shape):
    zeros = (0,) * len(shape)
    return pl.BlockSpec(tuple(shape), lambda b, z=zeros: z)


def _batch_spec(shape):
    rest = tuple(shape[1:])
    nz = len(rest)
    return pl.BlockSpec((1,) + rest, lambda b, n=nz: (b,) + (0,) * n)


# --------------------------------- wrappers -----------------------------------

def encode_src(params, src, n_head):
    B, S, V = src.shape
    C = params["input_pos_emb"].shape[1]
    Sm = S - 2                                         # Conv1d k=3, no padding
    assert C % n_head == 0
    enc = params["enc"]
    pos = params["input_pos_emb"][:Sm]
    rest = (pos, params["conv_w"], params["conv_b"],
            enc["wqkv"], enc["bqkv"], enc["wo"], enc["bo"],
            enc["ln1_g"], enc["ln1_b"],
            enc["f1w"], enc["f1b"], enc["f2w"], enc["f2b"],
            enc["ln2_g"], enc["ln2_b"])
    n_layers = int(enc["wqkv"].shape[0])
    return pl.pallas_call(
        functools.partial(_encoder_stack_kernel, n_layers=n_layers, n_head=n_head),
        out_shape=jax.ShapeDtypeStruct((B, Sm, C), jnp.float32),
        grid=(B,),
        in_specs=[_batch_spec(src.shape)] + [_full_spec(a.shape) for a in rest],
        out_specs=_batch_spec((B, Sm, C)),
        compiler_params=pltpu.CompilerParams(dimension_semantics=("parallel",)),
    )(src, *rest)


def decode_trg(params, trg, memory):
    B, T, V = trg.shape
    C = memory.shape[2]
    dec = params["dec"]
    pos = params["target_pos_emb"][:T]
    rest = (pos, params["out_proj_w"], params["out_proj_b"],
            dec["s_wqkv"], dec["s_bqkv"], dec["s_wo"], dec["s_bo"],
            dec["ln1_g"], dec["ln1_b"],
            dec["c_wq"], dec["c_bq"], dec["c_wkv"], dec["c_bkv"],
            dec["c_wo"], dec["c_bo"],
            dec["ln2_g"], dec["ln2_b"],
            dec["f1w"], dec["f1b"], dec["f2w"], dec["f2b"],
            dec["ln3_g"], dec["ln3_b"],
            params["lin_w"], params["lin_b"])
    n_layers = int(dec["s_wqkv"].shape[0])
    out = pl.pallas_call(
        # reference hard-codes nhead=8 for the decoder layer
        functools.partial(_decoder_stack_kernel, n_layers=n_layers, n_head=8),
        out_shape=jax.ShapeDtypeStruct((B, T, OUT_PAD), jnp.float32),
        grid=(B,),
        in_specs=[_batch_spec(trg.shape), _batch_spec(memory.shape)]
                 + [_full_spec(a.shape) for a in rest],
        out_specs=_batch_spec((B, T, OUT_PAD)),
        compiler_params=pltpu.CompilerParams(dimension_semantics=("parallel",)),
    )(trg, memory, *rest)
    return out[:, :, :4]                               # un-pad Linear(C, 4)


def forward(params, src, trg, n_head):
    memory = encode_src(params, src, n_head)
    return decode_trg(params, trg, memory)


# ----------------------------- parameter init ---------------------------------

def init_params(key, V, C, n_enc=9, n_dec=8):
    keys = iter(jax.random.split(key, 40))

    def rnd(shape, scale=0.05):
        return jax.random.normal(next(keys), shape, jnp.float32) * scale

    enc = dict(
        wqkv=rnd((n_enc, C, 3 * C)), bqkv=rnd((n_enc, 1, 3 * C)),
        wo=rnd((n_enc, C, C)), bo=rnd((n_enc, 1, C)),
        ln1_g=jnp.ones((n_enc, 1, C), jnp.float32),
        ln1_b=jnp.zeros((n_enc, 1, C), jnp.float32),
        f1w=rnd((n_enc, C, 4 * C)), f1b=rnd((n_enc, 1, 4 * C)),
        f2w=rnd((n_enc, 4 * C, C)), f2b=rnd((n_enc, 1, C)),
        ln2_g=jnp.ones((n_enc, 1, C), jnp.float32),
        ln2_b=jnp.zeros((n_enc, 1, C), jnp.float32),
    )
    dec = dict(
        s_wqkv=rnd((n_dec, C, 3 * C)), s_bqkv=rnd((n_dec, 1, 3 * C)),
        s_wo=rnd((n_dec, C, C)), s_bo=rnd((n_dec, 1, C)),
        ln1_g=jnp.ones((n_dec, 1, C), jnp.float32),
        ln1_b=jnp.zeros((n_dec, 1, C), jnp.float32),
        c_wq=rnd((n_dec, C, C)), c_bq=rnd((n_dec, 1, C)),
        c_wkv=rnd((n_dec, C, 2 * C)), c_bkv=rnd((n_dec, 1, 2 * C)),
        c_wo=rnd((n_dec, C, C)), c_bo=rnd((n_dec, 1, C)),
        ln2_g=jnp.ones((n_dec, 1, C), jnp.float32),
        ln2_b=jnp.zeros((n_dec, 1, C), jnp.float32),
        f1w=rnd((n_dec, C, 4 * C)), f1b=rnd((n_dec, 1, 4 * C)),
        f2w=rnd((n_dec, 4 * C, C)), f2b=rnd((n_dec, 1, C)),
        ln3_g=jnp.ones((n_dec, 1, C), jnp.float32),
        ln3_b=jnp.zeros((n_dec, 1, C), jnp.float32),
    )
    # linear: Linear(C, 4), padded to OUT_PAD lanes (only first 4 cols non-zero).
    lin_w = jnp.zeros((C, OUT_PAD), jnp.float32).at[:, :4].set(rnd((C, 4)))
    lin_b = jnp.zeros((1, OUT_PAD), jnp.float32).at[:, :4].set(rnd((1, 4)))
    return dict(
        input_pos_emb=rnd((256, C)), target_pos_emb=rnd((256, C)),
        conv_w=rnd((3, V, C)),                 # Conv1d(V->C, k=3), tap-major
        conv_b=rnd((1, C)),
        out_proj_w=rnd((V, C)), out_proj_b=rnd((1, C)),
        lin_w=lin_w, lin_b=lin_b,
        enc=enc, dec=dec)


# ----------------------------------- main --------------------------------------

if __name__ == "__main__":
    config = dict(num_head=8, conv_channels=32, out_dim=4, dropout=0.1,
                  var_len=4, output_len=8)
    B, S, T = 2, 16, 8
    V = config["var_len"]
    C = config["conv_channels"]

    key = jax.random.PRNGKey(0)
    kp, ksrc, ktrg = jax.random.split(key, 3)
    params = init_params(kp, V, C, n_enc=9, n_dec=8)
    src = jax.random.normal(ksrc, (B, S, V), jnp.float32)
    trg = jax.random.normal(ktrg, (B, T, V), jnp.float32)

    fwd = jax.jit(forward, static_argnums=(3,))
    out = jax.block_until_ready(fwd(params, src, trg, config["num_head"]))
    assert out.shape == (B, T, 4) and out.dtype == jnp.float32
    assert bool(jnp.all(jnp.isfinite(out)))
    print("KERNEL_OK")
</pallas_src>

<mosaic_0001>
module attributes {stable_mosaic.version = 11 : i64} {
  func.func @_encoder_stack_kernel(%arg0: i32, %arg1: memref<1x16x4xf32, #tpu.memory_space<vmem>>, %arg2: memref<14x32xf32, #tpu.memory_space<vmem>>, %arg3: memref<3x4x32xf32, #tpu.memory_space<vmem>>, %arg4: memref<1x32xf32, #tpu.memory_space<vmem>>, %arg5: memref<9x32x96xf32, #tpu.memory_space<vmem>>, %arg6: memref<9x1x96xf32, #tpu.memory_space<vmem>>, %arg7: memref<9x32x32xf32, #tpu.memory_space<vmem>>, %arg8: memref<9x1x32xf32, #tpu.memory_space<vmem>>, %arg9: memref<9x1x32xf32, #tpu.memory_space<vmem>>, %arg10: memref<9x1x32xf32, #tpu.memory_space<vmem>>, %arg11: memref<9x32x128xf32, #tpu.memory_space<vmem>>, %arg12: memref<9x1x128xf32, #tpu.memory_space<vmem>>, %arg13: memref<9x128x32xf32, #tpu.memory_space<vmem>>, %arg14: memref<9x1x32xf32, #tpu.memory_space<vmem>>, %arg15: memref<9x1x32xf32, #tpu.memory_space<vmem>>, %arg16: memref<9x1x32xf32, #tpu.memory_space<vmem>>, %arg17: memref<1x14x32xf32, #tpu.memory_space<vmem>>) attributes {dimension_semantics = [#tpu.dimension_semantics<parallel>], iteration_bounds = array<i64: 2>, scalar_prefetch = 0 : i64, scratch_operands = 0 : i64, tpu.core_type = #tpu.core_type<tc>, window_params = [{transform_indices = @transform_0, window_bounds = array<i64: 1, 16, 4>}, {pipeline_mode = #tpu.pipeline_mode<synchronous>, transform_indices = @transform_1, window_bounds = array<i64: 14, 32>}, {pipeline_mode = #tpu.pipeline_mode<synchronous>, transform_indices = @transform_2, window_bounds = array<i64: 3, 4, 32>}, {pipeline_mode = #tpu.pipeline_mode<synchronous>, transform_indices = @transform_3, window_bounds = array<i64: 1, 32>}, {pipeline_mode = #tpu.pipeline_mode<synchronous>, transform_indices = @transform_4, window_bounds = array<i64: 9, 32, 96>}, {pipeline_mode = #tpu.pipeline_mode<synchronous>, transform_indices = @transform_5, window_bounds = array<i64: 9, 1, 96>}, {pipeline_mode = #tpu.pipeline_mode<synchronous>, transform_indices = @transform_6, window_bounds = array<i64: 9, 32, 32>}, {pipeline_mode = #tpu.pipeline_mode<synchronous>, transform_indices = @transform_7, window_bounds = array<i64: 9, 1, 32>}, {pipeline_mode = #tpu.pipeline_mode<synchronous>, transform_indices = @transform_8, window_bounds = array<i64: 9, 1, 32>}, {pipeline_mode = #tpu.pipeline_mode<synchronous>, transform_indices = @transform_9, window_bounds = array<i64: 9, 1, 32>}, {pipeline_mode = #tpu.pipeline_mode<synchronous>, transform_indices = @transform_10, window_bounds = array<i64: 9, 32, 128>}, {pipeline_mode = #tpu.pipeline_mode<synchronous>, transform_indices = @transform_11, window_bounds = array<i64: 9, 1, 128>}, {pipeline_mode = #tpu.pipeline_mode<synchronous>, transform_indices = @transform_12, window_bounds = array<i64: 9, 128, 32>}, {pipeline_mode = #tpu.pipeline_mode<synchronous>, transform_indices = @transform_13, window_bounds = array<i64: 9, 1, 32>}, {pipeline_mode = #tpu.pipeline_mode<synchronous>, transform_indices = @transform_14, window_bounds = array<i64: 9, 1, 32>}, {pipeline_mode = #tpu.pipeline_mode<synchronous>, transform_indices = @transform_15, window_bounds = array<i64: 9, 1, 32>}, {transform_indices = @transform_16, window_bounds = array<i64: 1, 14, 32>}]} {
    %c0 = arith.constant 0 : index
    %c0_0 = arith.constant 0 : index
    %c0_1 = arith.constant 0 : index
    %0 = vector.load %arg1[%c0, %c0_0, %c0_1] : memref<1x16x4xf32, #tpu.memory_space<vmem>>, vector<1x16x4xf32>
    %1 = vector.shape_cast %0 : vector<1x16x4xf32> to vector<16x4xf32>
    %cst = arith.constant 0.000000e+00 : f32
    %2 = vector.broadcast %cst : f32 to vector<14x32xf32>
    %3 = vector.extract_strided_slice %1 {offsets = [0, 0], sizes = [14, 4], strides = [1, 1]} : vector<16x4xf32> to vector<14x4xf32>
    %c0_2 = arith.constant 0 : index
    %c0_3 = arith.constant 0 : index
    %c0_4 = arith.constant 0 : index
    %4 = vector.load %arg3[%c0_2, %c0_3, %c0_4] : memref<3x4x32xf32, #tpu.memory_space<vmem>>, vector<1x4x32xf32>
    %5 = vector.shape_cast %4 : vector<1x4x32xf32> to vector<4x32xf32>
    %cst_5 = arith.constant dense<0.000000e+00> : vector<14x32xf32>
    %6 = tpu.matmul %3, %5, %cst_5 {dimension_numbers = #tpu.dot_dimension_numbers<[1], [0], [0], [1], [0, 0, 1, 1], [], []>} : vector<14x4xf32>, vector<4x32xf32>, vector<14x32xf32> -> vector<14x32xf32>
    %7 = arith.addf %2, %6 : vector<14x32xf32>
    %8 = vector.extract_strided_slice %1 {offsets = [1, 0], sizes = [14, 4], strides = [1, 1]} : vector<16x4xf32> to vector<14x4xf32>
    %c1 = arith.constant 1 : index
    %c0_6 = arith.constant 0 : index
    %c0_7 = arith.constant 0 : index
    %9 = vector.load %arg3[%c1, %c0_6, %c0_7] : memref<3x4x32xf32, #tpu.memory_space<vmem>>, vector<1x4x32xf32>
    %10 = vector.shape_cast %9 : vector<1x4x32xf32> to vector<4x32xf32>
    %cst_8 = arith.constant dense<0.000000e+00> : vector<14x32xf32>
    %11 = tpu.matmul %8, %10, %cst_8 {dimension_numbers = #tpu.dot_dimension_numbers<[1], [0], [0], [1], [0, 0, 1, 1], [], []>} : vector<14x4xf32>, vector<4x32xf32>, vector<14x32xf32> -> vector<14x32xf32>
    %12 = arith.addf %7, %11 : vector<14x32xf32>
    %13 = vector.extract_strided_slice %1 {offsets = [2, 0], sizes = [14, 4], strides = [1, 1]} : vector<16x4xf32> to vector<14x4xf32>
    %c2 = arith.constant 2 : index
    %c0_9 = arith.constant 0 : index
    %c0_10 = arith.constant 0 : index
    %14 = vector.load %arg3[%c2, %c0_9, %c0_10] : memref<3x4x32xf32, #tpu.memory_space<vmem>>, vector<1x4x32xf32>
    %15 = vector.shape_cast %14 : vector<1x4x32xf32> to vector<4x32xf32>
    %cst_11 = arith.constant dense<0.000000e+00> : vector<14x32xf32>
    %16 = tpu.matmul %13, %15, %cst_11 {dimension_numbers = #tpu.dot_dimension_numbers<[1], [0], [0], [1], [0, 0, 1, 1], [], []>} : vector<14x4xf32>, vector<4x32xf32>, vector<14x32xf32> -> vector<14x32xf32>
    %17 = arith.addf %12, %16 : vector<14x32xf32>
    %c0_12 = arith.constant 0 : index
    %c0_13 = arith.constant 0 : index
    %18 = vector.load %arg4[%c0_12, %c0_13] : memref<1x32xf32, #tpu.memory_space<vmem>>, vector<1x32xf32>
    %19 = vector.broadcast %18 : vector<1x32xf32> to vector<14x32xf32>
    %20 = arith.addf %17, %19 : vector<14x32xf32>
    %c0_14 = arith.constant 0 : index
    %c0_15 = arith.constant 0 : index
    %21 = vector.load %arg2[%c0_14, %c0_15] : memref<14x32xf32, #tpu.memory_space<vmem>>, vector<14x32xf32>
    %c0_i32 = arith.constant 0 : i32
    %c9_i32 = arith.constant 9 : i32
    %22 = arith.addi %c0_i32, %c9_i32 : i32
    %c1_i32 = arith.constant 1 : i32
    %23 = scf.for %arg18 = %c0_i32 to %22 step %c1_i32 iter_args(%arg19 = %21) -> (vector<14x32xf32>)  : i32 {
      %28 = arith.index_cast %arg18 : i32 to index
      %c0_20 = arith.constant 0 : index
      %c0_21 = arith.constant 0 : index
      %29 = vector.load %arg5[%28, %c0_20, %c0_21] : memref<9x32x96xf32, #tpu.memory_space<vmem>>, vector<1x32x96xf32>
      %30 = vector.shape_cast %29 : vector<1x32x96xf32> to vector<32x96xf32>
      %cst_22 = arith.constant dense<0.000000e+00> : vector<14x96xf32>
      %31 = tpu.matmul %arg19, %30, %cst_22 {dimension_numbers = #tpu.dot_dimension_numbers<[1], [0], [0], [1], [0, 0, 1, 1], [], []>} : vector<14x32xf32>, vector<32x96xf32>, vector<14x96xf32> -> vector<14x96xf32>
      %32 = arith.index_cast %arg18 : i32 to index
      %c0_23 = arith.constant 0 : index
      %c0_24 = arith.constant 0 : index
      %33 = vector.load %arg6[%32, %c0_23, %c0_24] : memref<9x1x96xf32, #tpu.memory_space<vmem>>, vector<1x1x96xf32>
      %34 = vector.shape_cast %33 : vector<1x1x96xf32> to vector<1x96xf32>
      %35 = vector.broadcast %34 : vector<1x96xf32> to vector<14x96xf32>
      %36 = arith.addf %31, %35 : vector<14x96xf32>
      %37 = vector.extract_strided_slice %36 {offsets = [0, 0], sizes = [14, 32], strides = [1, 1]} : vector<14x96xf32> to vector<14x32xf32>
      %38 = vector.extract_strided_slice %36 {offsets = [0, 32], sizes = [14, 32], strides = [1, 1]} : vector<14x96xf32> to vector<14x32xf32>
      %39 = vector.extract_strided_slice %36 {offsets = [0, 64], sizes = [14, 32], strides = [1, 1]} : vector<14x96xf32> to vector<14x32xf32>
      %40 = arith.index_cast %arg18 : i32 to index
      %c0_25 = arith.constant 0 : index
      %c0_26 = arith.constant 0 : index
      %41 = vector.load %arg7[%40, %c0_25, %c0_26] : memref<9x32x32xf32, #tpu.memory_space<vmem>>, vector<1x32x32xf32>
      %42 = vector.shape_cast %41 : vector<1x32x32xf32> to vector<32x32xf32>
      %43 = arith.index_cast %arg18 : i32 to index
      %c0_27 = arith.constant 0 : index
      %c0_28 = arith.constant 0 : index
      %44 = vector.load %arg8[%43, %c0_27, %c0_28] : memref<9x1x32xf32, #tpu.memory_space<vmem>>, vector<1x1x32xf32>
      %45 = vector.shape_cast %44 : vector<1x1x32xf32> to vector<1x32xf32>
      %cst_29 = arith.constant 0.000000e+00 : f32
      %46 = vector.broadcast %cst_29 : f32 to vector<14x32xf32>
      %47 = vector.broadcast %45 : vector<1x32xf32> to vector<14x32xf32>
      %48 = arith.addf %46, %47 : vector<14x32xf32>
      %49 = vector.extract_strided_slice %37 {offsets = [0, 0], sizes = [14, 4], strides = [1, 1]} : vector<14x32xf32> to vector<14x4xf32>
      %cst_30 = arith.constant 5.000000e-01 : f32
      %50 = vector.broadcast %cst_30 : f32 to vector<14x4xf32>
      %51 = arith.mulf %49, %50 : vector<14x4xf32>
      %52 = vector.extract_strided_slice %38 {offsets = [0, 0], sizes = [14, 4], strides = [1, 1]} : vector<14x32xf32> to vector<14x4xf32>
      %53 = vector.extract_strided_slice %39 {offsets = [0, 0], sizes = [14, 4], strides = [1, 1]} : vector<14x32xf32> to vector<14x4xf32>
      %54 = tpu.transpose %52, [1, 0] : vector<14x4xf32> -> vector<4x14xf32>
      %cst_31 = arith.constant dense<0.000000e+00> : vector<14x14xf32>
      %55 = tpu.matmul %51, %54, %cst_31 {dimension_numbers = #tpu.dot_dimension_numbers<[1], [0], [0], [1], [0, 0, 1, 1], [], []>} : vector<14x4xf32>, vector<4x14xf32>, vector<14x14xf32> -> vector<14x14xf32>
      %cst_32 = arith.constant dense<0xFF800000> : vector<14xf32>
      %56 = vector.multi_reduction <maximumf>, %55, %cst_32 [1] : vector<14x14xf32> to vector<14xf32>
      %57 = vector.shape_cast %56 : vector<14xf32> to vector<14x1xf32>
      %58 = vector.broadcast %57 : vector<14x1xf32> to vector<14x14xf32>
      %59 = arith.subf %55, %58 : vector<14x14xf32>
      %60 = math.exp %59 : vector<14x14xf32>
      %cst_33 = arith.constant dense<0.000000e+00> : vector<14xf32>
      %61 = vector.multi_reduction <add>, %60, %cst_33 [1] : vector<14x14xf32> to vector<14xf32>
      %62 = vector.shape_cast %61 : vector<14xf32> to vector<14x1xf32>
      %63 = tpu.reciprocal %62 {approx = true} : vector<14x1xf32> -> vector<14x1xf32>
      %64 = vector.broadcast %63 : vector<14x1xf32> to vector<14x14xf32>
      %65 = arith.mulf %60, %64 : vector<14x14xf32>
      %cst_34 = arith.constant dense<0.000000e+00> : vector<14x4xf32>
      %66 = tpu.matmul %65, %53, %cst_34 {dimension_numbers = #tpu.dot_dimension_numbers<[1], [0], [0], [1], [0, 0, 1, 1], [], []>} : vector<14x14xf32>, vector<14x4xf32>, vector<14x4xf32> -> vector<14x4xf32>
      %67 = vector.extract_strided_slice %42 {offsets = [0, 0], sizes = [4, 32], strides = [1, 1]} : vector<32x32xf32> to vector<4x32xf32>
      %cst_35 = arith.constant dense<0.000000e+00> : vector<14x32xf32>
      %68 = tpu.matmul %66, %67, %cst_35 {dimension_numbers = #tpu.dot_dimension_numbers<[1], [0], [0], [1], [0, 0, 1, 1], [], []>} : vector<14x4xf32>, vector<4x32xf32>, vector<14x32xf32> -> vector<14x32xf32>
      %69 = arith.addf %48, %68 : vector<14x32xf32>
      %70 = vector.extract_strided_slice %37 {offsets = [0, 4], sizes = [14, 4], strides = [1, 1]} : vector<14x32xf32> to vector<14x4xf32>
      %cst_36 = arith.constant 5.000000e-01 : f32
      %71 = vector.broadcast %cst_36 : f32 to vector<14x4xf32>
      %72 = arith.mulf %70, %71 : vector<14x4xf32>
      %73 = vector.extract_strided_slice %38 {offsets = [0, 4], sizes = [14, 4], strides = [1, 1]} : vector<14x32xf32> to vector<14x4xf32>
      %74 = vector.extract_strided_slice %39 {offsets = [0, 4], sizes = [14, 4], strides = [1, 1]} : vector<14x32xf32> to vector<14x4xf32>
      %75 = tpu.transpose %73, [1, 0] : vector<14x4xf32> -> vector<4x14xf32>
      %cst_37 = arith.constant dense<0.000000e+00> : vector<14x14xf32>
      %76 = tpu.matmul %72, %75, %cst_37 {dimension_numbers = #tpu.dot_dimension_numbers<[1], [0], [0], [1], [0, 0, 1, 1], [], []>} : vector<14x4xf32>, vector<4x14xf32>, vector<14x14xf32> -> vector<14x14xf32>
      %cst_38 = arith.constant dense<0xFF800000> : vector<14xf32>
      %77 = vector.multi_reduction <maximumf>, %76, %cst_38 [1] : vector<14x14xf32> to vector<14xf32>
      %78 = vector.shape_cast %77 : vector<14xf32> to vector<14x1xf32>
      %79 = vector.broadcast %78 : vector<14x1xf32> to vector<14x14xf32>
      %80 = arith.subf %76, %79 : vector<14x14xf32>
      %81 = math.exp %80 : vector<14x14xf32>
      %cst_39 = arith.constant dense<0.000000e+00> : vector<14xf32>
      %82 = vector.multi_reduction <add>, %81, %cst_39 [1] : vector<14x14xf32> to vector<14xf32>
      %83 = vector.shape_cast %82 : vector<14xf32> to vector<14x1xf32>
      %84 = tpu.reciprocal %83 {approx = true} : vector<14x1xf32> -> vector<14x1xf32>
      %85 = vector.broadcast %84 : vector<14x1xf32> to vector<14x14xf32>
      %86 = arith.mulf %81, %85 : vector<14x14xf32>
      %cst_40 = arith.constant dense<0.000000e+00> : vector<14x4xf32>
      %87 = tpu.matmul %86, %74, %cst_40 {dimension_numbers = #tpu.dot_dimension_numbers<[1], [0], [0], [1], [0, 0, 1, 1], [], []>} : vector<14x14xf32>, vector<14x4xf32>, vector<14x4xf32> -> vector<14x4xf32>
      %88 = vector.extract_strided_slice %42 {offsets = [4, 0], sizes = [4, 32], strides = [1, 1]} : vector<32x32xf32> to vector<4x32xf32>
      %cst_41 = arith.constant dense<0.000000e+00> : vector<14x32xf32>
      %89 = tpu.matmul %87, %88, %cst_41 {dimension_numbers = #tpu.dot_dimension_numbers<[1], [0], [0], [1], [0, 0, 1, 1], [], []>} : vector<14x4xf32>, vector<4x32xf32>, vector<14x32xf32> -> vector<14x32xf32>
      %90 = arith.addf %69, %89 : vector<14x32xf32>
      %91 = vector.extract_strided_slice %37 {offsets = [0, 8], sizes = [14, 4], strides = [1, 1]} : vector<14x32xf32> to vector<14x4xf32>
      %cst_42 = arith.constant 5.000000e-01 : f32
      %92 = vector.broadcast %cst_42 : f32 to vector<14x4xf32>
      %93 = arith.mulf %91, %92 : vector<14x4xf32>
      %94 = vector.extract_strided_slice %38 {offsets = [0, 8], sizes = [14, 4], strides = [1, 1]} : vector<14x32xf32> to vector<14x4xf32>
      %95 = vector.extract_strided_slice %39 {offsets = [0, 8], sizes = [14, 4], strides = [1, 1]} : vector<14x32xf32> to vector<14x4xf32>
      %96 = tpu.transpose %94, [1, 0] : vector<14x4xf32> -> vector<4x14xf32>
      %cst_43 = arith.constant dense<0.000000e+00> : vector<14x14xf32>
      %97 = tpu.matmul %93, %96, %cst_43 {dimension_numbers = #tpu.dot_dimension_numbers<[1], [0], [0], [1], [0, 0, 1, 1], [], []>} : vector<14x4xf32>, vector<4x14xf32>, vector<14x14xf32> -> vector<14x14xf32>
      %cst_44 = arith.constant dense<0xFF800000> : vector<14xf32>
      %98 = vector.multi_reduction <maximumf>, %97, %cst_44 [1] : vector<14x14xf32> to vector<14xf32>
      %99 = vector.shape_cast %98 : vector<14xf32> to vector<14x1xf32>
      %100 = vector.broadcast %99 : vector<14x1xf32> to vector<14x14xf32>
      %101 = arith.subf %97, %100 : vector<14x14xf32>
      %102 = math.exp %101 : vector<14x14xf32>
      %cst_45 = arith.constant dense<0.000000e+00> : vector<14xf32>
      %103 = vector.multi_reduction <add>, %102, %cst_45 [1] : vector<14x14xf32> to vector<14xf32>
      %104 = vector.shape_cast %103 : vector<14xf32> to vector<14x1xf32>
      %105 = tpu.reciprocal %104 {approx = true} : vector<14x1xf32> -> vector<14x1xf32>
      %106 = vector.broadcast %105 : vector<14x1xf32> to vector<14x14xf32>
      %107 = arith.mulf %102, %106 : vector<14x14xf32>
      %cst_46 = arith.constant dense<0.000000e+00> : vector<14x4xf32>
      %108 = tpu.matmul %107, %95, %cst_46 {dimension_numbers = #tpu.dot_dimension_numbers<[1], [0], [0], [1], [0, 0, 1, 1], [], []>} : vector<14x14xf32>, vector<14x4xf32>, vector<14x4xf32> -> vector<14x4xf32>
      %109 = vector.extract_strided_slice %42 {offsets = [8, 0], sizes = [4, 32], strides = [1, 1]} : vector<32x32xf32> to vector<4x32xf32>
      %cst_47 = arith.constant dense<0.000000e+00> : vector<14x32xf32>
      %110 = tpu.matmul %108, %109, %cst_47 {dimension_numbers = #tpu.dot_dimension_numbers<[1], [0], [0], [1], [0, 0, 1, 1], [], []>} : vector<14x4xf32>, vector<4x32xf32>, vector<14x32xf32> -> vector<14x32xf32>
      %111 = arith.addf %90, %110 : vector<14x32xf32>
      %112 = vector.extract_strided_slice %37 {offsets = [0, 12], sizes = [14, 4], strides = [1, 1]} : vector<14x32xf32> to vector<14x4xf32>
      %cst_48 = arith.constant 5.000000e-01 : f32
      %113 = vector.broadcast %cst_48 : f32 to vector<14x4xf32>
      %114 = arith.mulf %112, %113 : vector<14x4xf32>
      %115 = vector.extract_strided_slice %38 {offsets = [0, 12], sizes = [14, 4], strides = [1, 1]} : vector<14x32xf32> to vector<14x4xf32>
      %116 = vector.extract_strided_slice %39 {offsets = [0, 12], sizes = [14, 4], strides = [1, 1]} : vector<14x32xf32> to vector<14x4xf32>
      %117 = tpu.transpose %115, [1, 0] : vector<14x4xf32> -> vector<4x14xf32>
      %cst_49 = arith.constant dense<0.000000e+00> : vector<14x14xf32>
      %118 = tpu.matmul %114, %117, %cst_49 {dimension_numbers = #tpu.dot_dimension_numbers<[1], [0], [0], [1], [0, 0, 1, 1], [], []>} : vector<14x4xf32>, vector<4x14xf32>, vector<14x14xf32> -> vector<14x14xf32>
      %cst_50 = arith.constant dense<0xFF800000> : vector<14xf32>
      %119 = vector.multi_reduction <maximumf>, %118, %cst_50 [1] : vector<14x14xf32> to vector<14xf32>
      %120 = vector.shape_cast %119 : vector<14xf32> to vector<14x1xf32>
      %121 = vector.broadcast %120 : vector<14x1xf32> to vector<14x14xf32>
      %122 = arith.subf %118, %121 : vector<14x14xf32>
      %123 = math.exp %122 : vector<14x14xf32>
      %cst_51 = arith.constant dense<0.000000e+00> : vector<14xf32>
      %124 = vector.multi_reduction <add>, %123, %cst_51 [1] : vector<14x14xf32> to vector<14xf32>
      %125 = vector.shape_cast %124 : vector<14xf32> to vector<14x1xf32>
      %126 = tpu.reciprocal %125 {approx = true} : vector<14x1xf32> -> vector<14x1xf32>
      %127 = vector.broadcast %126 : vector<14x1xf32> to vector<14x14xf32>
      %128 = arith.mulf %123, %127 : vector<14x14xf32>
      %cst_52 = arith.constant dense<0.000000e+00> : vector<14x4xf32>
      %129 = tpu.matmul %128, %116, %cst_52 {dimension_numbers = #tpu.dot_dimension_numbers<[1], [0], [0], [1], [0, 0, 1, 1], [], []>} : vector<14x14xf32>, vector<14x4xf32>, vector<14x4xf32> -> vector<14x4xf32>
      %130 = vector.extract_strided_slice %42 {offsets = [12, 0], sizes = [4, 32], strides = [1, 1]} : vector<32x32xf32> to vector<4x32xf32>
      %cst_53 = arith.constant dense<0.000000e+00> : vector<14x32xf32>
      %131 = tpu.matmul %129, %130, %cst_53 {dimension_numbers = #tpu.dot_dimension_numbers<[1], [0], [0], [1], [0, 0, 1, 1], [], []>} : vector<14x4xf32>, vector<4x32xf32>, vector<14x32xf32> -> vector<14x32xf32>
      %132 = arith.addf %111, %131 : vector<14x32xf32>
      %133 = vector.extract_strided_slice %37 {offsets = [0, 16], sizes = [14, 4], strides = [1, 1]} : vector<14x32xf32> to vector<14x4xf32>
      %cst_54 = arith.constant 5.000000e-01 : f32
      %134 = vector.broadcast %cst_54 : f32 to vector<14x4xf32>
      %135 = arith.mulf %133, %134 : vector<14x4xf32>
      %136 = vector.extract_strided_slice %38 {offsets = [0, 16], sizes = [14, 4], strides = [1, 1]} : vector<14x32xf32> to vector<14x4xf32>
      %137 = vector.extract_strided_slice %39 {offsets = [0, 16], sizes = [14, 4], strides = [1, 1]} : vector<14x32xf32> to vector<14x4xf32>
      %138 = tpu.transpose %136, [1, 0] : vector<14x4xf32> -> vector<4x14xf32>
      %cst_55 = arith.constant dense<0.000000e+00> : vector<14x14xf32>
      %139 = tpu.matmul %135, %138, %cst_55 {dimension_numbers = #tpu.dot_dimension_numbers<[1], [0], [0], [1], [0, 0, 1, 1], [], []>} : vector<14x4xf32>, vector<4x14xf32>, vector<14x14xf32> -> vector<14x14xf32>
      %cst_56 = arith.constant dense<0xFF800000> : vector<14xf32>
      %140 = vector.multi_reduction <maximumf>, %139, %cst_56 [1] : vector<14x14xf32> to vector<14xf32>
      %141 = vector.shape_cast %140 : vector<14xf32> to vector<14x1xf32>
      %142 = vector.broadcast %141 : vector<14x1xf32> to vector<14x14xf32>
      %143 = arith.subf %139, %142 : vector<14x14xf32>
      %144 = math.exp %143 : vector<14x14xf32>
      %cst_57 = arith.constant dense<0.000000e+00> : vector<14xf32>
      %145 = vector.multi_reduction <add>, %144, %cst_57 [1] : vector<14x14xf32> to vector<14xf32>
      %146 = vector.shape_cast %145 : vector<14xf32> to vector<14x1xf32>
      %147 = tpu.reciprocal %146 {approx = true} : vector<14x1xf32> -> vector<14x1xf32>
      %148 = vector.broadcast %147 : vector<14x1xf32> to vector<14x14xf32>
      %149 = arith.mulf %144, %148 : vector<14x14xf32>
      %cst_58 = arith.constant dense<0.000000e+00> : vector<14x4xf32>
      %150 = tpu.matmul %149, %137, %cst_58 {dimension_numbers = #tpu.dot_dimension_numbers<[1], [0], [0], [1], [0, 0, 1, 1], [], []>} : vector<14x14xf32>, vector<14x4xf32>, vector<14x4xf32> -> vector<14x4xf32>
      %151 = vector.extract_strided_slice %42 {offsets = [16, 0], sizes = [4, 32], strides = [1, 1]} : vector<32x32xf32> to vector<4x32xf32>
      %cst_59 = arith.constant dense<0.000000e+00> : vector<14x32xf32>
      %152 = tpu.matmul %150, %151, %cst_59 {dimension_numbers = #tpu.dot_dimension_numbers<[1], [0], [0], [1], [0, 0, 1, 1], [], []>} : vector<14x4xf32>, vector<4x32xf32>, vector<14x32xf32> -> vector<14x32xf32>
      %153 = arith.addf %132, %152 : vector<14x32xf32>
      %154 = vector.extract_strided_slice %37 {offsets = [0, 20], sizes = [14, 4], strides = [1, 1]} : vector<14x32xf32> to vector<14x4xf32>
      %cst_60 = arith.constant 5.000000e-01 : f32
      %155 = vector.broadcast %cst_60 : f32 to vector<14x4xf32>
      %156 = arith.mulf %154, %155 : vector<14x4xf32>
      %157 = vector.extract_strided_slice %38 {offsets = [0, 20], sizes = [14, 4], strides = [1, 1]} : vector<14x32xf32> to vector<14x4xf32>
      %158 = vector.extract_strided_slice %39 {offsets = [0, 20], sizes = [14, 4], strides = [1, 1]} : vector<14x32xf32> to vector<14x4xf32>
      %159 = tpu.transpose %157, [1, 0] : vector<14x4xf32> -> vector<4x14xf32>
      %cst_61 = arith.constant dense<0.000000e+00> : vector<14x14xf32>
      %160 = tpu.matmul %156, %159, %cst_61 {dimension_numbers = #tpu.dot_dimension_numbers<[1], [0], [0], [1], [0, 0, 1, 1], [], []>} : vector<14x4xf32>, vector<4x14xf32>, vector<14x14xf32> -> vector<14x14xf32>
      %cst_62 = arith.constant dense<0xFF800000> : vector<14xf32>
      %161 = vector.multi_reduction <maximumf>, %160, %cst_62 [1] : vector<14x14xf32> to vector<14xf32>
      %162 = vector.shape_cast %161 : vector<14xf32> to vector<14x1xf32>
      %163 = vector.broadcast %162 : vector<14x1xf32> to vector<14x14xf32>
      %164 = arith.subf %160, %163 : vector<14x14xf32>
      %165 = math.exp %164 : vector<14x14xf32>
      %cst_63 = arith.constant dense<0.000000e+00> : vector<14xf32>
      %166 = vector.multi_reduction <add>, %165, %cst_63 [1] : vector<14x14xf32> to vector<14xf32>
      %167 = vector.shape_cast %166 : vector<14xf32> to vector<14x1xf32>
      %168 = tpu.reciprocal %167 {approx = true} : vector<14x1xf32> -> vector<14x1xf32>
      %169 = vector.broadcast %168 : vector<14x1xf32> to vector<14x14xf32>
      %170 = arith.mulf %165, %169 : vector<14x14xf32>
      %cst_64 = arith.constant dense<0.000000e+00> : vector<14x4xf32>
      %171 = tpu.matmul %170, %158, %cst_64 {dimension_numbers = #tpu.dot_dimension_numbers<[1], [0], [0], [1], [0, 0, 1, 1], [], []>} : vector<14x14xf32>, vector<14x4xf32>, vector<14x4xf32> -> vector<14x4xf32>
      %172 = vector.extract_strided_slice %42 {offsets = [20, 0], sizes = [4, 32], strides = [1, 1]} : vector<32x32xf32> to vector<4x32xf32>
      %cst_65 = arith.constant dense<0.000000e+00> : vector<14x32xf32>
      %173 = tpu.matmul %171, %172, %cst_65 {dimension_numbers = #tpu.dot_dimension_numbers<[1], [0], [0], [1], [0, 0, 1, 1], [], []>} : vector<14x4xf32>, vector<4x32xf32>, vector<14x32xf32> -> vector<14x32xf32>
      %174 = arith.addf %153, %173 : vector<14x32xf32>
      %175 = vector.extract_strided_slice %37 {offsets = [0, 24], sizes = [14, 4], strides = [1, 1]} : vector<14x32xf32> to vector<14x4xf32>
      %cst_66 = arith.constant 5.000000e-01 : f32
      %176 = vector.broadcast %cst_66 : f32 to vector<14x4xf32>
      %177 = arith.mulf %175, %176 : vector<14x4xf32>
      %178 = vector.extract_strided_slice %38 {offsets = [0, 24], sizes = [14, 4], strides = [1, 1]} : vector<14x32xf32> to vector<14x4xf32>
      %179 = vector.extract_strided_slice %39 {offsets = [0, 24], sizes = [14, 4], strides = [1, 1]} : vector<14x32xf32> to vector<14x4xf32>
      %180 = tpu.transpose %178, [1, 0] : vector<14x4xf32> -> vector<4x14xf32>
      %cst_67 = arith.constant dense<0.000000e+00> : vector<14x14xf32>
      %181 = tpu.matmul %177, %180, %cst_67 {dimension_numbers = #tpu.dot_dimension_numbers<[1], [0], [0], [1], [0, 0, 1, 1], [], []>} : vector<14x4xf32>, vector<4x14xf32>, vector<14x14xf32> -> vector<14x14xf32>
      %cst_68 = arith.constant dense<0xFF800000> : vector<14xf32>
      %182 = vector.multi_reduction <maximumf>, %181, %cst_68 [1] : vector<14x14xf32> to vector<14xf32>
      %183 = vector.shape_cast %182 : vector<14xf32> to vector<14x1xf32>
      %184 = vector.broadcast %183 : vector<14x1xf32> to vector<14x14xf32>
      %185 = arith.subf %181, %184 : vector<14x14xf32>
      %186 = math.exp %185 : vector<14x14xf32>
      %cst_69 = arith.constant dense<0.000000e+00> : vector<14xf32>
      %187 = vector.multi_reduction <add>, %186, %cst_69 [1] : vector<14x14xf32> to vector<14xf32>
      %188 = vector.shape_cast %187 : vector<14xf32> to vector<14x1xf32>
      %189 = tpu.reciprocal %188 {approx = true} : vector<14x1xf32> -> vector<14x1xf32>
      %190 = vector.broadcast %189 : vector<14x1xf32> to vector<14x14xf32>
      %191 = arith.mulf %186, %190 : vector<14x14xf32>
      %cst_70 = arith.constant dense<0.000000e+00> : vector<14x4xf32>
      %192 = tpu.matmul %191, %179, %cst_70 {dimension_numbers = #tpu.dot_dimension_numbers<[1], [0], [0], [1], [0, 0, 1, 1], [], []>} : vector<14x14xf32>, vector<14x4xf32>, vector<14x4xf32> -> vector<14x4xf32>
      %193 = vector.extract_strided_slice %42 {offsets = [24, 0], sizes = [4, 32], strides = [1, 1]} : vector<32x32xf32> to vector<4x32xf32>
      %cst_71 = arith.constant dense<0.000000e+00> : vector<14x32xf32>
      %194 = tpu.matmul %192, %193, %cst_71 {dimension_numbers = #tpu.dot_dimension_numbers<[1], [0], [0], [1], [0, 0, 1, 1], [], []>} : vector<14x4xf32>, vector<4x32xf32>, vector<14x32xf32> -> vector<14x32xf32>
      %195 = arith.addf %174, %194 : vector<14x32xf32>
      %196 = vector.extract_strided_slice %37 {offsets = [0, 28], sizes = [14, 4], strides = [1, 1]} : vector<14x32xf32> to vector<14x4xf32>
      %cst_72 = arith.constant 5.000000e-01 : f32
      %197 = vector.broadcast %cst_72 : f32 to vector<14x4xf32>
      %198 = arith.mulf %196, %197 : vector<14x4xf32>
      %199 = vector.extract_strided_slice %38 {offsets = [0, 28], sizes = [14, 4], strides = [1, 1]} : vector<14x32xf32> to vector<14x4xf32>
      %200 = vector.extract_strided_slice %39 {offsets = [0, 28], sizes = [14, 4], strides = [1, 1]} : vector<14x32xf32> to vector<14x4xf32>
      %201 = tpu.transpose %199, [1, 0] : vector<14x4xf32> -> vector<4x14xf32>
      %cst_73 = arith.constant dense<0.000000e+00> : vector<14x14xf32>
      %202 = tpu.matmul %198, %201, %cst_73 {dimension_numbers = #tpu.dot_dimension_numbers<[1], [0], [0], [1], [0, 0, 1, 1], [], []>} : vector<14x4xf32>, vector<4x14xf32>, vector<14x14xf32> -> vector<14x14xf32>
      %cst_74 = arith.constant dense<0xFF800000> : vector<14xf32>
      %203 = vector.multi_reduction <maximumf>, %202, %cst_74 [1] : vector<14x14xf32> to vector<14xf32>
      %204 = vector.shape_cast %203 : vector<14xf32> to vector<14x1xf32>
      %205 = vector.broadcast %204 : vector<14x1xf32> to vector<14x14xf32>
      %206 = arith.subf %202, %205 : vector<14x14xf32>
      %207 = math.exp %206 : vector<14x14xf32>
      %cst_75 = arith.constant dense<0.000000e+00> : vector<14xf32>
      %208 = vector.multi_reduction <add>, %207, %cst_75 [1] : vector<14x14xf32> to vector<14xf32>
      %209 = vector.shape_cast %208 : vector<14xf32> to vector<14x1xf32>
      %210 = tpu.reciprocal %209 {approx = true} : vector<14x1xf32> -> vector<14x1xf32>
      %211 = vector.broadcast %210 : vector<14x1xf32> to vector<14x14xf32>
      %212 = arith.mulf %207, %211 : vector<14x14xf32>
      %cst_76 = arith.constant dense<0.000000e+00> : vector<14x4xf32>
      %213 = tpu.matmul %212, %200, %cst_76 {dimension_numbers = #tpu.dot_dimension_numbers<[1], [0], [0], [1], [0, 0, 1, 1], [], []>} : vector<14x14xf32>, vector<14x4xf32>, vector<14x4xf32> -> vector<14x4xf32>
      %214 = vector.extract_strided_slice %42 {offsets = [28, 0], sizes = [4, 32], strides = [1, 1]} : vector<32x32xf32> to vector<4x32xf32>
      %cst_77 = arith.constant dense<0.000000e+00> : vector<14x32xf32>
      %215 = tpu.matmul %213, %214, %cst_77 {dimension_numbers = #tpu.dot_dimension_numbers<[1], [0], [0], [1], [0, 0, 1, 1], [], []>} : vector<14x4xf32>, vector<4x32xf32>, vector<14x32xf32> -> vector<14x32xf32>
      %216 = arith.addf %195, %215 : vector<14x32xf32>
      %217 = arith.addf %arg19, %216 : vector<14x32xf32>
      %218 = arith.index_cast %arg18 : i32 to index
      %c0_78 = arith.constant 0 : index
      %c0_79 = arith.constant 0 : index
      %219 = vector.load %arg9[%218, %c0_78, %c0_79] : memref<9x1x32xf32, #tpu.memory_space<vmem>>, vector<1x1x32xf32>
      %220 = vector.shape_cast %219 : vector<1x1x32xf32> to vector<1x32xf32>
      %221 = arith.index_cast %arg18 : i32 to index
      %c0_80 = arith.constant 0 : index
      %c0_81 = arith.constant 0 : index
      %222 = vector.load %arg10[%221, %c0_80, %c0_81] : memref<9x1x32xf32, #tpu.memory_space<vmem>>, vector<1x1x32xf32>
      %223 = vector.shape_cast %222 : vector<1x1x32xf32> to vector<1x32xf32>
      %cst_82 = arith.constant dense<0.000000e+00> : vector<14xf32>
      %224 = vector.multi_reduction <add>, %217, %cst_82 [1] : vector<14x32xf32> to vector<14xf32>
      %225 = vector.shape_cast %224 : vector<14xf32> to vector<14x1xf32>
      %cst_83 = arith.constant 3.200000e+01 : f32
      %226 = vector.broadcast %cst_83 : f32 to vector<14x1xf32>
      %227 = arith.divf %225, %226 : vector<14x1xf32>
      %228 = vector.broadcast %227 : vector<14x1xf32> to vector<14x32xf32>
      %229 = arith.subf %217, %228 : vector<14x32xf32>
      %230 = arith.mulf %229, %229 : vector<14x32xf32>
      %cst_84 = arith.constant dense<0.000000e+00> : vector<14xf32>
      %231 = vector.multi_reduction <add>, %230, %cst_84 [1] : vector<14x32xf32> to vector<14xf32>
      %232 = vector.shape_cast %231 : vector<14xf32> to vector<14x1xf32>
      %cst_85 = arith.constant 3.200000e+01 : f32
      %233 = vector.broadcast %cst_85 : f32 to vector<14x1xf32>
      %234 = arith.divf %232, %233 : vector<14x1xf32>
      %cst_86 = arith.constant 9.99999974E-6 : f32
      %235 = vector.broadcast %cst_86 : f32 to vector<14x1xf32>
      %236 = arith.addf %234, %235 : vector<14x1xf32>
      %237 = math.rsqrt %236 : vector<14x1xf32>
      %238 = vector.broadcast %237 : vector<14x1xf32> to vector<14x32xf32>
      %239 = arith.mulf %229, %238 : vector<14x32xf32>
      %240 = vector.broadcast %220 : vector<1x32xf32> to vector<14x32xf32>
      %241 = arith.mulf %239, %240 : vector<14x32xf32>
      %242 = vector.broadcast %223 : vector<1x32xf32> to vector<14x32xf32>
      %243 = arith.addf %241, %242 : vector<14x32xf32>
      %244 = arith.index_cast %arg18 : i32 to index
      %c0_87 = arith.constant 0 : index
      %c0_88 = arith.constant 0 : index
      %245 = vector.load %arg11[%244, %c0_87, %c0_88] : memref<9x32x128xf32, #tpu.memory_space<vmem>>, vector<1x32x128xf32>
      %246 = vector.shape_cast %245 : vector<1x32x128xf32> to vector<32x128xf32>
      %cst_89 = arith.constant dense<0.000000e+00> : vector<14x128xf32>
      %247 = tpu.matmul %243, %246, %cst_89 {dimension_numbers = #tpu.dot_dimension_numbers<[1], [0], [0], [1], [0, 0, 1, 1], [], []>} : vector<14x32xf32>, vector<32x128xf32>, vector<14x128xf32> -> vector<14x128xf32>
      %248 = arith.index_cast %arg18 : i32 to index
      %c0_90 = arith.constant 0 : index
      %c0_91 = arith.constant 0 : index
      %249 = vector.load %arg12[%248, %c0_90, %c0_91] : memref<9x1x128xf32, #tpu.memory_space<vmem>>, vector<1x1x128xf32>
      %250 = vector.shape_cast %249 : vector<1x1x128xf32> to vector<1x128xf32>
      %251 = vector.broadcast %250 : vector<1x128xf32> to vector<14x128xf32>
      %252 = arith.addf %247, %251 : vector<14x128xf32>
      %cst_92 = arith.constant 0.000000e+00 : f32
      %253 = vector.broadcast %cst_92 : f32 to vector<14x128xf32>
      %254 = arith.maximumf %252, %253 : vector<14x128xf32>
      %255 = arith.index_cast %arg18 : i32 to index
      %c0_93 = arith.constant 0 : index
      %c0_94 = arith.constant 0 : index
      %256 = vector.load %arg13[%255, %c0_93, %c0_94] : memref<9x128x32xf32, #tpu.memory_space<vmem>>, vector<1x128x32xf32>
      %257 = vector.shape_cast %256 : vector<1x128x32xf32> to vector<128x32xf32>
      %cst_95 = arith.constant dense<0.000000e+00> : vector<14x32xf32>
      %258 = tpu.matmul %254, %257, %cst_95 {dimension_numbers = #tpu.dot_dimension_numbers<[1], [0], [0], [1], [0, 0, 1, 1], [], []>} : vector<14x128xf32>, vector<128x32xf32>, vector<14x32xf32> -> vector<14x32xf32>
      %259 = arith.index_cast %arg18 : i32 to index
      %c0_96 = arith.constant 0 : index
      %c0_97 = arith.constant 0 : index
      %260 = vector.load %arg14[%259, %c0_96, %c0_97] : memref<9x1x32xf32, #tpu.memory_space<vmem>>, vector<1x1x32xf32>
      %261 = vector.shape_cast %260 : vector<1x1x32xf32> to vector<1x32xf32>
      %262 = vector.broadcast %261 : vector<1x32xf32> to vector<14x32xf32>
      %263 = arith.addf %258, %262 : vector<14x32xf32>
      %264 = arith.addf %243, %263 : vector<14x32xf32>
      %265 = arith.index_cast %arg18 : i32 to index
      %c0_98 = arith.constant 0 : index
      %c0_99 = arith.constant 0 : index
      %266 = vector.load %arg15[%265, %c0_98, %c0_99] : memref<9x1x32xf32, #tpu.memory_space<vmem>>, vector<1x1x32xf32>
      %267 = vector.shape_cast %266 : vector<1x1x32xf32> to vector<1x32xf32>
      %268 = arith.index_cast %arg18 : i32 to index
      %c0_100 = arith.constant 0 : index
      %c0_101 = arith.constant 0 : index
      %269 = vector.load %arg16[%268, %c0_100, %c0_101] : memref<9x1x32xf32, #tpu.memory_space<vmem>>, vector<1x1x32xf32>
      %270 = vector.shape_cast %269 : vector<1x1x32xf32> to vector<1x32xf32>
      %cst_102 = arith.constant dense<0.000000e+00> : vector<14xf32>
      %271 = vector.multi_reduction <add>, %264, %cst_102 [1] : vector<14x32xf32> to vector<14xf32>
      %272 = vector.shape_cast %271 : vector<14xf32> to vector<14x1xf32>
      %cst_103 = arith.constant 3.200000e+01 : f32
      %273 = vector.broadcast %cst_103 : f32 to vector<14x1xf32>
      %274 = arith.divf %272, %273 : vector<14x1xf32>
      %275 = vector.broadcast %274 : vector<14x1xf32> to vector<14x32xf32>
      %276 = arith.subf %264, %275 : vector<14x32xf32>
      %277 = arith.mulf %276, %276 : vector<14x32xf32>
      %cst_104 = arith.constant dense<0.000000e+00> : vector<14xf32>
      %278 = vector.multi_reduction <add>, %277, %cst_104 [1] : vector<14x32xf32> to vector<14xf32>
      %279 = vector.shape_cast %278 : vector<14xf32> to vector<14x1xf32>
      %cst_105 = arith.constant 3.200000e+01 : f32
      %280 = vector.broadcast %cst_105 : f32 to vector<14x1xf32>
      %281 = arith.divf %279, %280 : vector<14x1xf32>
      %cst_106 = arith.constant 9.99999974E-6 : f32
      %282 = vector.broadcast %cst_106 : f32 to vector<14x1xf32>
      %283 = arith.addf %281, %282 : vector<14x1xf32>
      %284 = math.rsqrt %283 : vector<14x1xf32>
      %285 = vector.broadcast %284 : vector<14x1xf32> to vector<14x32xf32>
      %286 = arith.mulf %276, %285 : vector<14x32xf32>
      %287 = vector.broadcast %267 : vector<1x32xf32> to vector<14x32xf32>
      %288 = arith.mulf %286, %287 : vector<14x32xf32>
      %289 = vector.broadcast %270 : vector<1x32xf32> to vector<14x32xf32>
      %290 = arith.addf %288, %289 : vector<14x32xf32>
      scf.yield %290 : vector<14x32xf32>
    }
    %c9_i32_16 = arith.constant 9 : i32
    %24 = arith.addf %23, %20 : vector<14x32xf32>
    %c0_17 = arith.constant 0 : index
    %c0_18 = arith.constant 0 : index
    %c0_19 = arith.constant 0 : index
    %25 = vector.load %arg17[%c0_17, %c0_18, %c0_19] : memref<1x14x32xf32, #tpu.memory_space<vmem>>, vector<1x14x32xf32>
    %26 = vector.shape_cast %25 : vector<1x14x32xf32> to vector<14x32xf32>
    %27 = vector.shape_cast %24 : vector<14x32xf32> to vector<1x14x32xf32>
    tpu.vector_store %arg17[%c0_17, %c0_18, %c0_19], %27 {strides = array<i32>} : memref<1x14x32xf32, #tpu.memory_space<vmem>>, vector<1x14x32xf32>,
    return
  }
  func.func @transform_0(%arg0: i32) -> (i32, i32, i32) {
    %c0_i32 = arith.constant 0 : i32
    %c0_i32_0 = arith.constant 0 : i32
    %c0_i32_1 = arith.constant 0 : i32
    return %arg0, %c0_i32, %c0_i32_0 : i32, i32, i32
  }
  func.func @transform_1(%arg0: i32) -> (i32, i32) {
    %c0_i32 = arith.constant 0 : i32
    %c0_i32_0 = arith.constant 0 : i32
    %c0_i32_1 = arith.constant 0 : i32
    return %c0_i32, %c0_i32_0 : i32, i32
  }
  func.func @transform_2(%arg0: i32) -> (i32, i32, i32) {
    %c0_i32 = arith.constant 0 : i32
    %c0_i32_0 = arith.constant 0 : i32
    %c0_i32_1 = arith.constant 0 : i32
    %c0_i32_2 = arith.constant 0 : i32
    return %c0_i32, %c0_i32_0, %c0_i32_1 : i32, i32, i32
  }
  func.func @transform_3(%arg0: i32) -> (i32, i32) {
    %c0_i32 = arith.constant 0 : i32
    %c0_i32_0 = arith.constant 0 : i32
    %c0_i32_1 = arith.constant 0 : i32
    return %c0_i32, %c0_i32_0 : i32, i32
  }
  func.func @transform_4(%arg0: i32) -> (i32, i32, i32) {
    %c0_i32 = arith.constant 0 : i32
    %c0_i32_0 = arith.constant 0 : i32
    %c0_i32_1 = arith.constant 0 : i32
    %c0_i32_2 = arith.constant 0 : i32
    return %c0_i32, %c0_i32_0, %c0_i32_1 : i32, i32, i32
  }
  func.func @transform_5(%arg0: i32) -> (i32, i32, i32) {
    %c0_i32 = arith.constant 0 : i32
    %c0_i32_0 = arith.constant 0 : i32
    %c0_i32_1 = arith.constant 0 : i32
    %c0_i32_2 = arith.constant 0 : i32
    return %c0_i32, %c0_i32_0, %c0_i32_1 : i32, i32, i32
  }
  func.func @transform_6(%arg0: i32) -> (i32, i32, i32) {
    %c0_i32 = arith.constant 0 : i32
    %c0_i32_0 = arith.constant 0 : i32
    %c0_i32_1 = arith.constant 0 : i32
    %c0_i32_2 = arith.constant 0 : i32
    return %c0_i32, %c0_i32_0, %c0_i32_1 : i32, i32, i32
  }
  func.func @transform_7(%arg0: i32) -> (i32, i32, i32) {
    %c0_i32 = arith.constant 0 : i32
    %c0_i32_0 = arith.constant 0 : i32
    %c0_i32_1 = arith.constant 0 : i32
    %c0_i32_2 = arith.constant 0 : i32
    return %c0_i32, %c0_i32_0, %c0_i32_1 : i32, i32, i32
  }
  func.func @transform_8(%arg0: i32) -> (i32, i32, i32) {
    %c0_i32 = arith.constant 0 : i32
    %c0_i32_0 = arith.constant 0 : i32
    %c0_i32_1 = arith.constant 0 : i32
    %c0_i32_2 = arith.constant 0 : i32
    return %c0_i32, %c0_i32_0, %c0_i32_1 : i32, i32, i32
  }
  func.func @transform_9(%arg0: i32) -> (i32, i32, i32) {
    %c0_i32 = arith.constant 0 : i32
    %c0_i32_0 = arith.constant 0 : i32
    %c0_i32_1 = arith.constant 0 : i32
    %c0_i32_2 = arith.constant 0 : i32
    return %c0_i32, %c0_i32_0, %c0_i32_1 : i32, i32, i32
  }
  func.func @transform_10(%arg0: i32) -> (i32, i32, i32) {
    %c0_i32 = arith.constant 0 : i32
    %c0_i32_0 = arith.constant 0 : i32
    %c0_i32_1 = arith.constant 0 : i32
    %c0_i32_2 = arith.constant 0 : i32
    return %c0_i32, %c0_i32_0, %c0_i32_1 : i32, i32, i32
  }
  func.func @transform_11(%arg0: i32) -> (i32, i32, i32) {
    %c0_i32 = arith.constant 0 : i32
    %c0_i32_0 = arith.constant 0 : i32
    %c0_i32_1 = arith.constant 0 : i32
    %c0_i32_2 = arith.constant 0 : i32
    return %c0_i32, %c0_i32_0, %c0_i32_1 : i32, i32, i32
  }
  func.func @transform_12(%arg0: i32) -> (i32, i32, i32) {
    %c0_i32 = arith.constant 0 : i32
    %c0_i32_0 = arith.constant 0 : i32
    %c0_i32_1 = arith.constant 0 : i32
    %c0_i32_2 = arith.constant 0 : i32
    return %c0_i32, %c0_i32_0, %c0_i32_1 : i32, i32, i32
  }
  func.func @transform_13(%arg0: i32) -> (i32, i32, i32) {
    %c0_i32 = arith.constant 0 : i32
    %c0_i32_0 = arith.constant 0 : i32
    %c0_i32_1 = arith.constant 0 : i32
    %c0_i32_2 = arith.constant 0 : i32
    return %c0_i32, %c0_i32_0, %c0_i32_1 : i32, i32, i32
  }
  func.func @transform_14(%arg0: i32) -> (i32, i32, i32) {
    %c0_i32 = arith.constant 0 : i32
    %c0_i32_0 = arith.constant 0 : i32
    %c0_i32_1 = arith.constant 0 : i32
    %c0_i32_2 = arith.constant 0 : i32
    return %c0_i32, %c0_i32_0, %c0_i32_1 : i32, i32, i32
  }
  func.func @transform_15(%arg0: i32) -> (i32, i32, i32) {
    %c0_i32 = arith.constant 0 : i32
    %c0_i32_0 = arith.constant 0 : i32
    %c0_i32_1 = arith.constant 0 : i32
    %c0_i32_2 = arith.constant 0 : i32
    return %c0_i32, %c0_i32_0, %c0_i32_1 : i32, i32, i32
  }
  func.func @transform_16(%arg0: i32) -> (i32, i32, i32) {
    %c0_i32 = arith.constant 0 : i32
    %c0_i32_0 = arith.constant 0 : i32
    %c0_i32_1 = arith.constant 0 : i32
    return %arg0, %c0_i32, %c0_i32_0 : i32, i32, i32
  }
}

module attributes {stable_mosaic.version = 11 : i64} {
  func.func @_decoder_stack_kernel(%arg0: i32, %arg1: memref<1x8x4xf32, #tpu.memory_space<vmem>>, %arg2: memref<1x14x32xf32, #tpu.memory_space<vmem>>, %arg3: memref<8x32xf32, #tpu.memory_space<vmem>>, %arg4: memref<4x32xf32, #tpu.memory_space<vmem>>, %arg5: memref<1x32xf32, #tpu.memory_space<vmem>>, %arg6: memref<8x32x96xf32, #tpu.memory_space<vmem>>, %arg7: memref<8x1x96xf32, #tpu.memory_space<vmem>>, %arg8: memref<8x32x32xf32, #tpu.memory_space<vmem>>, %arg9: memref<8x1x32xf32, #tpu.memory_space<vmem>>, %arg10: memref<8x1x32xf32, #tpu.memory_space<vmem>>, %arg11: memref<8x1x32xf32, #tpu.memory_space<vmem>>, %arg12: memref<8x32x32xf32, #tpu.memory_space<vmem>>, %arg13: memref<8x1x32xf32, #tpu.memory_space<vmem>>, %arg14: memref<8x32x64xf32, #tpu.memory_space<vmem>>, %arg15: memref<8x1x64xf32, #tpu.memory_space<vmem>>, %arg16: memref<8x32x32xf32, #tpu.memory_space<vmem>>, %arg17: memref<8x1x32xf32, #tpu.memory_space<vmem>>, %arg18: memref<8x1x32xf32, #tpu.memory_space<vmem>>, %arg19: memref<8x1x32xf32, #tpu.memory_space<vmem>>, %arg20: memref<8x32x128xf32, #tpu.memory_space<vmem>>, %arg21: memref<8x1x128xf32, #tpu.memory_space<vmem>>, %arg22: memref<8x128x32xf32, #tpu.memory_space<vmem>>, %arg23: memref<8x1x32xf32, #tpu.memory_space<vmem>>, %arg24: memref<8x1x32xf32, #tpu.memory_space<vmem>>, %arg25: memref<8x1x32xf32, #tpu.memory_space<vmem>>, %arg26: memref<32x128xf32, #tpu.memory_space<vmem>>, %arg27: memref<1x128xf32, #tpu.memory_space<vmem>>, %arg28: memref<1x8x128xf32, #tpu.memory_space<vmem>>) attributes {dimension_semantics = [#tpu.dimension_semantics<parallel>], iteration_bounds = array<i64: 2>, scalar_prefetch = 0 : i64, scratch_operands = 0 : i64, tpu.core_type = #tpu.core_type<tc>, window_params = [{transform_indices = @transform_0, window_bounds = array<i64: 1, 8, 4>}, {transform_indices = @transform_1, window_bounds = array<i64: 1, 14, 32>}, {pipeline_mode = #tpu.pipeline_mode<synchronous>, transform_indices = @transform_2, window_bounds = array<i64: 8, 32>}, {pipeline_mode = #tpu.pipeline_mode<synchronous>, transform_indices = @transform_3, window_bounds = array<i64: 4, 32>}, {pipeline_mode = #tpu.pipeline_mode<synchronous>, transform_indices = @transform_4, window_bounds = array<i64: 1, 32>}, {pipeline_mode = #tpu.pipeline_mode<synchronous>, transform_indices = @transform_5, window_bounds = array<i64: 8, 32, 96>}, {pipeline_mode = #tpu.pipeline_mode<synchronous>, transform_indices = @transform_6, window_bounds = array<i64: 8, 1, 96>}, {pipeline_mode = #tpu.pipeline_mode<synchronous>, transform_indices = @transform_7, window_bounds = array<i64: 8, 32, 32>}, {pipeline_mode = #tpu.pipeline_mode<synchronous>, transform_indices = @transform_8, window_bounds = array<i64: 8, 1, 32>}, {pipeline_mode = #tpu.pipeline_mode<synchronous>, transform_indices = @transform_9, window_bounds = array<i64: 8, 1, 32>}, {pipeline_mode = #tpu.pipeline_mode<synchronous>, transform_indices = @transform_10, window_bounds = array<i64: 8, 1, 32>}, {pipeline_mode = #tpu.pipeline_mode<synchronous>, transform_indices = @transform_11, window_bounds = array<i64: 8, 32, 32>}, {pipeline_mode = #tpu.pipeline_mode<synchronous>, transform_indices = @transform_12, window_bounds = array<i64: 8, 1, 32>}, {pipeline_mode = #tpu.pipeline_mode<synchronous>, transform_indices = @transform_13, window_bounds = array<i64: 8, 32, 64>}, {pipeline_mode = #tpu.pipeline_mode<synchronous>, transform_indices = @transform_14, window_bounds = array<i64: 8, 1, 64>}, {pipeline_mode = #tpu.pipeline_mode<synchronous>, transform_indices = @transform_15, window_bounds = array<i64: 8, 32, 32>}, {pipeline_mode = #tpu.pipeline_mode<synchronous>, transform_indices = @transform_16, window_bounds = array<i64: 8, 1, 32>}, {pipeline_mode = #tpu.pipeline_mode<synchronous>, transform_indices = @transform_17, window_bounds = array<i64: 8, 1, 32>}, {pipeline_mode = #tpu.pipeline_mode<synchronous>, transform_indices = @transform_18, window_bounds = array<i64: 8, 1, 32>}, {pipeline_mode = #tpu.pipeline_mode<synchronous>, transform_indices = @transform_19, window_bounds = array<i64: 8, 32, 128>}, {pipeline_mode = #tpu.pipeline_mode<synchronous>, transform_indices = @transform_20, window_bounds = array<i64: 8, 1, 128>}, {pipeline_mode = #tpu.pipeline_mode<synchronous>, transform_indices = @transform_21, window_bounds = array<i64: 8, 128, 32>}, {pipeline_mode = #tpu.pipeline_mode<synchronous>, transform_indices = @transform_22, window_bounds = array<i64: 8, 1, 32>}, {pipeline_mode = #tpu.pipeline_mode<synchronous>, transform_indices = @transform_23, window_bounds = array<i64: 8, 1, 32>}, {pipeline_mode = #tpu.pipeline_mode<synchronous>, transform_indices = @transform_24, window_bounds = array<i64: 8, 1, 32>}, {pipeline_mode = #tpu.pipeline_mode<synchronous>, transform_indices = @transform_25, window_bounds = array<i64: 32, 128>}, {pipeline_mode = #tpu.pipeline_mode<synchronous>, transform_indices = @transform_26, window_bounds = array<i64: 1, 128>}, {transform_indices = @transform_27, window_bounds = array<i64: 1, 8, 128>}]} {
    %c0 = arith.constant 0 : index
    %c0_0 = arith.constant 0 : index
    %c0_1 = arith.constant 0 : index
    %0 = vector.load %arg1[%c0, %c0_0, %c0_1] : memref<1x8x4xf32, #tpu.memory_space<vmem>>, vector<1x8x4xf32>
    %1 = vector.shape_cast %0 : vector<1x8x4xf32> to vector<8x4xf32>
    %c0_2 = arith.constant 0 : index
    %c0_3 = arith.constant 0 : index
    %c0_4 = arith.constant 0 : index
    %2 = vector.load %arg2[%c0_2, %c0_3, %c0_4] : memref<1x14x32xf32, #tpu.memory_space<vmem>>, vector<1x14x32xf32>
    %3 = vector.shape_cast %2 : vector<1x14x32xf32> to vector<14x32xf32>
    %c0_5 = arith.constant 0 : index
    %c0_6 = arith.constant 0 : index
    %4 = vector.load %arg4[%c0_5, %c0_6] : memref<4x32xf32, #tpu.memory_space<vmem>>, vector<4x32xf32>
    %cst = arith.constant dense<0.000000e+00> : vector<8x32xf32>
    %5 = tpu.matmul %1, %4, %cst {dimension_numbers = #tpu.dot_dimension_numbers<[1], [0], [0], [1], [0, 0, 1, 1], [], []>} : vector<8x4xf32>, vector<4x32xf32>, vector<8x32xf32> -> vector<8x32xf32>
    %c0_7 = arith.constant 0 : index
    %c0_8 = arith.constant 0 : index
    %6 = vector.load %arg5[%c0_7, %c0_8] : memref<1x32xf32, #tpu.memory_space<vmem>>, vector<1x32xf32>
    %7 = vector.broadcast %6 : vector<1x32xf32> to vector<8x32xf32>
    %8 = arith.addf %5, %7 : vector<8x32xf32>
    %c0_9 = arith.constant 0 : index
    %c0_10 = arith.constant 0 : index
    %9 = vector.load %arg3[%c0_9, %c0_10] : memref<8x32xf32, #tpu.memory_space<vmem>>, vector<8x32xf32>
    %10 = arith.addf %8, %9 : vector<8x32xf32>
    %11 = tpu.iota {dimensions = array<i32: 0>} : vector<8x8xi32>
    %12 = tpu.iota {dimensions = array<i32: 1>} : vector<8x8xi32>
    %13 = arith.cmpi sle, %12, %11 : vector<8x8xi32>
    %cst_11 = arith.constant 0.000000e+00 : f32
    %cst_12 = arith.constant -1.000000e+30 : f32
    %14 = vector.broadcast %cst_11 : f32 to vector<8x8xf32>
    %15 = vector.broadcast %cst_12 : f32 to vector<8x8xf32>
    %16 = arith.select %13, %14, %15 : vector<8x8xi1>, vector<8x8xf32>
    %c0_i32 = arith.constant 0 : i32
    %c8_i32 = arith.constant 8 : i32
    %17 = arith.addi %c0_i32, %c8_i32 : i32
    %c1_i32 = arith.constant 1 : i32
    %18 = scf.for %arg29 = %c0_i32 to %17 step %c1_i32 iter_args(%arg30 = %10) -> (vector<8x32xf32>)  : i32 {
      %28 = arith.index_cast %arg29 : i32 to index
      %c0_22 = arith.constant 0 : index
      %c0_23 = arith.constant 0 : index
      %29 = vector.load %arg6[%28, %c0_22, %c0_23] : memref<8x32x96xf32, #tpu.memory_space<vmem>>, vector<1x32x96xf32>
      %30 = vector.shape_cast %29 : vector<1x32x96xf32> to vector<32x96xf32>
      %cst_24 = arith.constant dense<0.000000e+00> : vector<8x96xf32>
      %31 = tpu.matmul %arg30, %30, %cst_24 {dimension_numbers = #tpu.dot_dimension_numbers<[1], [0], [0], [1], [0, 0, 1, 1], [], []>} : vector<8x32xf32>, vector<32x96xf32>, vector<8x96xf32> -> vector<8x96xf32>
      %32 = arith.index_cast %arg29 : i32 to index
      %c0_25 = arith.constant 0 : index
      %c0_26 = arith.constant 0 : index
      %33 = vector.load %arg7[%32, %c0_25, %c0_26] : memref<8x1x96xf32, #tpu.memory_space<vmem>>, vector<1x1x96xf32>
      %34 = vector.shape_cast %33 : vector<1x1x96xf32> to vector<1x96xf32>
      %35 = vector.broadcast %34 : vector<1x96xf32> to vector<8x96xf32>
      %36 = arith.addf %31, %35 : vector<8x96xf32>
      %37 = vector.extract_strided_slice %36 {offsets = [0, 0], sizes = [8, 32], strides = [1, 1]} : vector<8x96xf32> to vector<8x32xf32>
      %38 = vector.extract_strided_slice %36 {offsets = [0, 32], sizes = [8, 32], strides = [1, 1]} : vector<8x96xf32> to vector<8x32xf32>
      %39 = vector.extract_strided_slice %36 {offsets = [0, 64], sizes = [8, 32], strides = [1, 1]} : vector<8x96xf32> to vector<8x32xf32>
      %40 = arith.index_cast %arg29 : i32 to index
      %c0_27 = arith.constant 0 : index
      %c0_28 = arith.constant 0 : index
      %41 = vector.load %arg8[%40, %c0_27, %c0_28] : memref<8x32x32xf32, #tpu.memory_space<vmem>>, vector<1x32x32xf32>
      %42 = vector.shape_cast %41 : vector<1x32x32xf32> to vector<32x32xf32>
      %43 = arith.index_cast %arg29 : i32 to index
      %c0_29 = arith.constant 0 : index
      %c0_30 = arith.constant 0 : index
      %44 = vector.load %arg9[%43, %c0_29, %c0_30] : memref<8x1x32xf32, #tpu.memory_space<vmem>>, vector<1x1x32xf32>
      %45 = vector.shape_cast %44 : vector<1x1x32xf32> to vector<1x32xf32>
      %cst_31 = arith.constant 0.000000e+00 : f32
      %46 = vector.broadcast %cst_31 : f32 to vector<8x32xf32>
      %47 = vector.broadcast %45 : vector<1x32xf32> to vector<8x32xf32>
      %48 = arith.addf %46, %47 : vector<8x32xf32>
      %49 = vector.extract_strided_slice %37 {offsets = [0, 0], sizes = [8, 4], strides = [1, 1]} : vector<8x32xf32> to vector<8x4xf32>
      %cst_32 = arith.constant 5.000000e-01 : f32
      %50 = vector.broadcast %cst_32 : f32 to vector<8x4xf32>
      %51 = arith.mulf %49, %50 : vector<8x4xf32>
      %52 = vector.extract_strided_slice %38 {offsets = [0, 0], sizes = [8, 4], strides = [1, 1]} : vector<8x32xf32> to vector<8x4xf32>
      %53 = vector.extract_strided_slice %39 {offsets = [0, 0], sizes = [8, 4], strides = [1, 1]} : vector<8x32xf32> to vector<8x4xf32>
      %54 = tpu.transpose %52, [1, 0] : vector<8x4xf32> -> vector<4x8xf32>
      %cst_33 = arith.constant dense<0.000000e+00> : vector<8x8xf32>
      %55 = tpu.matmul %51, %54, %cst_33 {dimension_numbers = #tpu.dot_dimension_numbers<[1], [0], [0], [1], [0, 0, 1, 1], [], []>} : vector<8x4xf32>, vector<4x8xf32>, vector<8x8xf32> -> vector<8x8xf32>
      %56 = arith.addf %55, %16 : vector<8x8xf32>
      %cst_34 = arith.constant dense<0xFF800000> : vector<8xf32>
      %57 = vector.multi_reduction <maximumf>, %56, %cst_34 [1] : vector<8x8xf32> to vector<8xf32>
      %58 = vector.shape_cast %57 : vector<8xf32> to vector<8x1xf32>
      %59 = vector.broadcast %58 : vector<8x1xf32> to vector<8x8xf32>
      %60 = arith.subf %56, %59 : vector<8x8xf32>
      %61 = math.exp %60 : vector<8x8xf32>
      %cst_35 = arith.constant dense<0.000000e+00> : vector<8xf32>
      %62 = vector.multi_reduction <add>, %61, %cst_35 [1] : vector<8x8xf32> to vector<8xf32>
      %63 = vector.shape_cast %62 : vector<8xf32> to vector<8x1xf32>
      %64 = tpu.reciprocal %63 {approx = true} : vector<8x1xf32> -> vector<8x1xf32>
      %65 = vector.broadcast %64 : vector<8x1xf32> to vector<8x8xf32>
      %66 = arith.mulf %61, %65 : vector<8x8xf32>
      %cst_36 = arith.constant dense<0.000000e+00> : vector<8x4xf32>
      %67 = tpu.matmul %66, %53, %cst_36 {dimension_numbers = #tpu.dot_dimension_numbers<[1], [0], [0], [1], [0, 0, 1, 1], [], []>} : vector<8x8xf32>, vector<8x4xf32>, vector<8x4xf32> -> vector<8x4xf32>
      %68 = vector.extract_strided_slice %42 {offsets = [0, 0], sizes = [4, 32], strides = [1, 1]} : vector<32x32xf32> to vector<4x32xf32>
      %cst_37 = arith.constant dense<0.000000e+00> : vector<8x32xf32>
      %69 = tpu.matmul %67, %68, %cst_37 {dimension_numbers = #tpu.dot_dimension_numbers<[1], [0], [0], [1], [0, 0, 1, 1], [], []>} : vector<8x4xf32>, vector<4x32xf32>, vector<8x32xf32> -> vector<8x32xf32>
      %70 = arith.addf %48, %69 : vector<8x32xf32>
      %71 = vector.extract_strided_slice %37 {offsets = [0, 4], sizes = [8, 4], strides = [1, 1]} : vector<8x32xf32> to vector<8x4xf32>
      %cst_38 = arith.constant 5.000000e-01 : f32
      %72 = vector.broadcast %cst_38 : f32 to vector<8x4xf32>
      %73 = arith.mulf %71, %72 : vector<8x4xf32>
      %74 = vector.extract_strided_slice %38 {offsets = [0, 4], sizes = [8, 4], strides = [1, 1]} : vector<8x32xf32> to vector<8x4xf32>
      %75 = vector.extract_strided_slice %39 {offsets = [0, 4], sizes = [8, 4], strides = [1, 1]} : vector<8x32xf32> to vector<8x4xf32>
      %76 = tpu.transpose %74, [1, 0] : vector<8x4xf32> -> vector<4x8xf32>
      %cst_39 = arith.constant dense<0.000000e+00> : vector<8x8xf32>
      %77 = tpu.matmul %73, %76, %cst_39 {dimension_numbers = #tpu.dot_dimension_numbers<[1], [0], [0], [1], [0, 0, 1, 1], [], []>} : vector<8x4xf32>, vector<4x8xf32>, vector<8x8xf32> -> vector<8x8xf32>
      %78 = arith.addf %77, %16 : vector<8x8xf32>
      %cst_40 = arith.constant dense<0xFF800000> : vector<8xf32>
      %79 = vector.multi_reduction <maximumf>, %78, %cst_40 [1] : vector<8x8xf32> to vector<8xf32>
      %80 = vector.shape_cast %79 : vector<8xf32> to vector<8x1xf32>
      %81 = vector.broadcast %80 : vector<8x1xf32> to vector<8x8xf32>
      %82 = arith.subf %78, %81 : vector<8x8xf32>
      %83 = math.exp %82 : vector<8x8xf32>
      %cst_41 = arith.constant dense<0.000000e+00> : vector<8xf32>
      %84 = vector.multi_reduction <add>, %83, %cst_41 [1] : vector<8x8xf32> to vector<8xf32>
      %85 = vector.shape_cast %84 : vector<8xf32> to vector<8x1xf32>
      %86 = tpu.reciprocal %85 {approx = true} : vector<8x1xf32> -> vector<8x1xf32>
      %87 = vector.broadcast %86 : vector<8x1xf32> to vector<8x8xf32>
      %88 = arith.mulf %83, %87 : vector<8x8xf32>
      %cst_42 = arith.constant dense<0.000000e+00> : vector<8x4xf32>
      %89 = tpu.matmul %88, %75, %cst_42 {dimension_numbers = #tpu.dot_dimension_numbers<[1], [0], [0], [1], [0, 0, 1, 1], [], []>} : vector<8x8xf32>, vector<8x4xf32>, vector<8x4xf32> -> vector<8x4xf32>
      %90 = vector.extract_strided_slice %42 {offsets = [4, 0], sizes = [4, 32], strides = [1, 1]} : vector<32x32xf32> to vector<4x32xf32>
      %cst_43 = arith.constant dense<0.000000e+00> : vector<8x32xf32>
      %91 = tpu.matmul %89, %90, %cst_43 {dimension_numbers = #tpu.dot_dimension_numbers<[1], [0], [0], [1], [0, 0, 1, 1], [], []>} : vector<8x4xf32>, vector<4x32xf32>, vector<8x32xf32> -> vector<8x32xf32>
      %92 = arith.addf %70, %91 : vector<8x32xf32>
      %93 = vector.extract_strided_slice %37 {offsets = [0, 8], sizes = [8, 4], strides = [1, 1]} : vector<8x32xf32> to vector<8x4xf32>
      %cst_44 = arith.constant 5.000000e-01 : f32
      %94 = vector.broadcast %cst_44 : f32 to vector<8x4xf32>
      %95 = arith.mulf %93, %94 : vector<8x4xf32>
      %96 = vector.extract_strided_slice %38 {offsets = [0, 8], sizes = [8, 4], strides = [1, 1]} : vector<8x32xf32> to vector<8x4xf32>
      %97 = vector.extract_strided_slice %39 {offsets = [0, 8], sizes = [8, 4], strides = [1, 1]} : vector<8x32xf32> to vector<8x4xf32>
      %98 = tpu.transpose %96, [1, 0] : vector<8x4xf32> -> vector<4x8xf32>
      %cst_45 = arith.constant dense<0.000000e+00> : vector<8x8xf32>
      %99 = tpu.matmul %95, %98, %cst_45 {dimension_numbers = #tpu.dot_dimension_numbers<[1], [0], [0], [1], [0, 0, 1, 1], [], []>} : vector<8x4xf32>, vector<4x8xf32>, vector<8x8xf32> -> vector<8x8xf32>
      %100 = arith.addf %99, %16 : vector<8x8xf32>
      %cst_46 = arith.constant dense<0xFF800000> : vector<8xf32>
      %101 = vector.multi_reduction <maximumf>, %100, %cst_46 [1] : vector<8x8xf32> to vector<8xf32>
      %102 = vector.shape_cast %101 : vector<8xf32> to vector<8x1xf32>
      %103 = vector.broadcast %102 : vector<8x1xf32> to vector<8x8xf32>
      %104 = arith.subf %100, %103 : vector<8x8xf32>
      %105 = math.exp %104 : vector<8x8xf32>
      %cst_47 = arith.constant dense<0.000000e+00> : vector<8xf32>
      %106 = vector.multi_reduction <add>, %105, %cst_47 [1] : vector<8x8xf32> to vector<8xf32>
      %107 = vector.shape_cast %106 : vector<8xf32> to vector<8x1xf32>
      %108 = tpu.reciprocal %107 {approx = true} : vector<8x1xf32> -> vector<8x1xf32>
      %109 = vector.broadcast %108 : vector<8x1xf32> to vector<8x8xf32>
      %110 = arith.mulf %105, %109 : vector<8x8xf32>
      %cst_48 = arith.constant dense<0.000000e+00> : vector<8x4xf32>
      %111 = tpu.matmul %110, %97, %cst_48 {dimension_numbers = #tpu.dot_dimension_numbers<[1], [0], [0], [1], [0, 0, 1, 1], [], []>} : vector<8x8xf32>, vector<8x4xf32>, vector<8x4xf32> -> vector<8x4xf32>
      %112 = vector.extract_strided_slice %42 {offsets = [8, 0], sizes = [4, 32], strides = [1, 1]} : vector<32x32xf32> to vector<4x32xf32>
      %cst_49 = arith.constant dense<0.000000e+00> : vector<8x32xf32>
      %113 = tpu.matmul %111, %112, %cst_49 {dimension_numbers = #tpu.dot_dimension_numbers<[1], [0], [0], [1], [0, 0, 1, 1], [], []>} : vector<8x4xf32>, vector<4x32xf32>, vector<8x32xf32> -> vector<8x32xf32>
      %114 = arith.addf %92, %113 : vector<8x32xf32>
      %115 = vector.extract_strided_slice %37 {offsets = [0, 12], sizes = [8, 4], strides = [1, 1]} : vector<8x32xf32> to vector<8x4xf32>
      %cst_50 = arith.constant 5.000000e-01 : f32
      %116 = vector.broadcast %cst_50 : f32 to vector<8x4xf32>
      %117 = arith.mulf %115, %116 : vector<8x4xf32>
      %118 = vector.extract_strided_slice %38 {offsets = [0, 12], sizes = [8, 4], strides = [1, 1]} : vector<8x32xf32> to vector<8x4xf32>
      %119 = vector.extract_strided_slice %39 {offsets = [0, 12], sizes = [8, 4], strides = [1, 1]} : vector<8x32xf32> to vector<8x4xf32>
      %120 = tpu.transpose %118, [1, 0] : vector<8x4xf32> -> vector<4x8xf32>
      %cst_51 = arith.constant dense<0.000000e+00> : vector<8x8xf32>
      %121 = tpu.matmul %117, %120, %cst_51 {dimension_numbers = #tpu.dot_dimension_numbers<[1], [0], [0], [1], [0, 0, 1, 1], [], []>} : vector<8x4xf32>, vector<4x8xf32>, vector<8x8xf32> -> vector<8x8xf32>
      %122 = arith.addf %121, %16 : vector<8x8xf32>
      %cst_52 = arith.constant dense<0xFF800000> : vector<8xf32>
      %123 = vector.multi_reduction <maximumf>, %122, %cst_52 [1] : vector<8x8xf32> to vector<8xf32>
      %124 = vector.shape_cast %123 : vector<8xf32> to vector<8x1xf32>
      %125 = vector.broadcast %124 : vector<8x1xf32> to vector<8x8xf32>
      %126 = arith.subf %122, %125 : vector<8x8xf32>
      %127 = math.exp %126 : vector<8x8xf32>
      %cst_53 = arith.constant dense<0.000000e+00> : vector<8xf32>
      %128 = vector.multi_reduction <add>, %127, %cst_53 [1] : vector<8x8xf32> to vector<8xf32>
      %129 = vector.shape_cast %128 : vector<8xf32> to vector<8x1xf32>
      %130 = tpu.reciprocal %129 {approx = true} : vector<8x1xf32> -> vector<8x1xf32>
      %131 = vector.broadcast %130 : vector<8x1xf32> to vector<8x8xf32>
      %132 = arith.mulf %127, %131 : vector<8x8xf32>
      %cst_54 = arith.constant dense<0.000000e+00> : vector<8x4xf32>
      %133 = tpu.matmul %132, %119, %cst_54 {dimension_numbers = #tpu.dot_dimension_numbers<[1], [0], [0], [1], [0, 0, 1, 1], [], []>} : vector<8x8xf32>, vector<8x4xf32>, vector<8x4xf32> -> vector<8x4xf32>
      %134 = vector.extract_strided_slice %42 {offsets = [12, 0], sizes = [4, 32], strides = [1, 1]} : vector<32x32xf32> to vector<4x32xf32>
      %cst_55 = arith.constant dense<0.000000e+00> : vector<8x32xf32>
      %135 = tpu.matmul %133, %134, %cst_55 {dimension_numbers = #tpu.dot_dimension_numbers<[1], [0], [0], [1], [0, 0, 1, 1], [], []>} : vector<8x4xf32>, vector<4x32xf32>, vector<8x32xf32> -> vector<8x32xf32>
      %136 = arith.addf %114, %135 : vector<8x32xf32>
      %137 = vector.extract_strided_slice %37 {offsets = [0, 16], sizes = [8, 4], strides = [1, 1]} : vector<8x32xf32> to vector<8x4xf32>
      %cst_56 = arith.constant 5.000000e-01 : f32
      %138 = vector.broadcast %cst_56 : f32 to vector<8x4xf32>
      %139 = arith.mulf %137, %138 : vector<8x4xf32>
      %140 = vector.extract_strided_slice %38 {offsets = [0, 16], sizes = [8, 4], strides = [1, 1]} : vector<8x32xf32> to vector<8x4xf32>
      %141 = vector.extract_strided_slice %39 {offsets = [0, 16], sizes = [8, 4], strides = [1, 1]} : vector<8x32xf32> to vector<8x4xf32>
      %142 = tpu.transpose %140, [1, 0] : vector<8x4xf32> -> vector<4x8xf32>
      %cst_57 = arith.constant dense<0.000000e+00> : vector<8x8xf32>
      %143 = tpu.matmul %139, %142, %cst_57 {dimension_numbers = #tpu.dot_dimension_numbers<[1], [0], [0], [1], [0, 0, 1, 1], [], []>} : vector<8x4xf32>, vector<4x8xf32>, vector<8x8xf32> -> vector<8x8xf32>
      %144 = arith.addf %143, %16 : vector<8x8xf32>
      %cst_58 = arith.constant dense<0xFF800000> : vector<8xf32>
      %145 = vector.multi_reduction <maximumf>, %144, %cst_58 [1] : vector<8x8xf32> to vector<8xf32>
      %146 = vector.shape_cast %145 : vector<8xf32> to vector<8x1xf32>
      %147 = vector.broadcast %146 : vector<8x1xf32> to vector<8x8xf32>
      %148 = arith.subf %144, %147 : vector<8x8xf32>
      %149 = math.exp %148 : vector<8x8xf32>
      %cst_59 = arith.constant dense<0.000000e+00> : vector<8xf32>
      %150 = vector.multi_reduction <add>, %149, %cst_59 [1] : vector<8x8xf32> to vector<8xf32>
      %151 = vector.shape_cast %150 : vector<8xf32> to vector<8x1xf32>
      %152 = tpu.reciprocal %151 {approx = true} : vector<8x1xf32> -> vector<8x1xf32>
      %153 = vector.broadcast %152 : vector<8x1xf32> to vector<8x8xf32>
      %154 = arith.mulf %149, %153 : vector<8x8xf32>
      %cst_60 = arith.constant dense<0.000000e+00> : vector<8x4xf32>
      %155 = tpu.matmul %154, %141, %cst_60 {dimension_numbers = #tpu.dot_dimension_numbers<[1], [0], [0], [1], [0, 0, 1, 1], [], []>} : vector<8x8xf32>, vector<8x4xf32>, vector<8x4xf32> -> vector<8x4xf32>
      %156 = vector.extract_strided_slice %42 {offsets = [16, 0], sizes = [4, 32], strides = [1, 1]} : vector<32x32xf32> to vector<4x32xf32>
      %cst_61 = arith.constant dense<0.000000e+00> : vector<8x32xf32>
      %157 = tpu.matmul %155, %156, %cst_61 {dimension_numbers = #tpu.dot_dimension_numbers<[1], [0], [0], [1], [0, 0, 1, 1], [], []>} : vector<8x4xf32>, vector<4x32xf32>, vector<8x32xf32> -> vector<8x32xf32>
      %158 = arith.addf %136, %157 : vector<8x32xf32>
      %159 = vector.extract_strided_slice %37 {offsets = [0, 20], sizes = [8, 4], strides = [1, 1]} : vector<8x32xf32> to vector<8x4xf32>
      %cst_62 = arith.constant 5.000000e-01 : f32
      %160 = vector.broadcast %cst_62 : f32 to vector<8x4xf32>
      %161 = arith.mulf %159, %160 : vector<8x4xf32>
      %162 = vector.extract_strided_slice %38 {offsets = [0, 20], sizes = [8, 4], strides = [1, 1]} : vector<8x32xf32> to vector<8x4xf32>
      %163 = vector.extract_strided_slice %39 {offsets = [0, 20], sizes = [8, 4], strides = [1, 1]} : vector<8x32xf32> to vector<8x4xf32>
      %164 = tpu.transpose %162, [1, 0] : vector<8x4xf32> -> vector<4x8xf32>
      %cst_63 = arith.constant dense<0.000000e+00> : vector<8x8xf32>
      %165 = tpu.matmul %161, %164, %cst_63 {dimension_numbers = #tpu.dot_dimension_numbers<[1], [0], [0], [1], [0, 0, 1, 1], [], []>} : vector<8x4xf32>, vector<4x8xf32>, vector<8x8xf32> -> vector<8x8xf32>
      %166 = arith.addf %165, %16 : vector<8x8xf32>
      %cst_64 = arith.constant dense<0xFF800000> : vector<8xf32>
      %167 = vector.multi_reduction <maximumf>, %166, %cst_64 [1] : vector<8x8xf32> to vector<8xf32>
      %168 = vector.shape_cast %167 : vector<8xf32> to vector<8x1xf32>
      %169 = vector.broadcast %168 : vector<8x1xf32> to vector<8x8xf32>
      %170 = arith.subf %166, %169 : vector<8x8xf32>
      %171 = math.exp %170 : vector<8x8xf32>
      %cst_65 = arith.constant dense<0.000000e+00> : vector<8xf32>
      %172 = vector.multi_reduction <add>, %171, %cst_65 [1] : vector<8x8xf32> to vector<8xf32>
      %173 = vector.shape_cast %172 : vector<8xf32> to vector<8x1xf32>
      %174 = tpu.reciprocal %173 {approx = true} : vector<8x1xf32> -> vector<8x1xf32>
      %175 = vector.broadcast %174 : vector<8x1xf32> to vector<8x8xf32>
      %176 = arith.mulf %171, %175 : vector<8x8xf32>
      %cst_66 = arith.constant dense<0.000000e+00> : vector<8x4xf32>
      %177 = tpu.matmul %176, %163, %cst_66 {dimension_numbers = #tpu.dot_dimension_numbers<[1], [0], [0], [1], [0, 0, 1, 1], [], []>} : vector<8x8xf32>, vector<8x4xf32>, vector<8x4xf32> -> vector<8x4xf32>
      %178 = vector.extract_strided_slice %42 {offsets = [20, 0], sizes = [4, 32], strides = [1, 1]} : vector<32x32xf32> to vector<4x32xf32>
      %cst_67 = arith.constant dense<0.000000e+00> : vector<8x32xf32>
      %179 = tpu.matmul %177, %178, %cst_67 {dimension_numbers = #tpu.dot_dimension_numbers<[1], [0], [0], [1], [0, 0, 1, 1], [], []>} : vector<8x4xf32>, vector<4x32xf32>, vector<8x32xf32> -> vector<8x32xf32>
      %180 = arith.addf %158, %179 : vector<8x32xf32>
      %181 = vector.extract_strided_slice %37 {offsets = [0, 24], sizes = [8, 4], strides = [1, 1]} : vector<8x32xf32> to vector<8x4xf32>
      %cst_68 = arith.constant 5.000000e-01 : f32
      %182 = vector.broadcast %cst_68 : f32 to vector<8x4xf32>
      %183 = arith.mulf %181, %182 : vector<8x4xf32>
      %184 = vector.extract_strided_slice %38 {offsets = [0, 24], sizes = [8, 4], strides = [1, 1]} : vector<8x32xf32> to vector<8x4xf32>
      %185 = vector.extract_strided_slice %39 {offsets = [0, 24], sizes = [8, 4], strides = [1, 1]} : vector<8x32xf32> to vector<8x4xf32>
      %186 = tpu.transpose %184, [1, 0] : vector<8x4xf32> -> vector<4x8xf32>
      %cst_69 = arith.constant dense<0.000000e+00> : vector<8x8xf32>
      %187 = tpu.matmul %183, %186, %cst_69 {dimension_numbers = #tpu.dot_dimension_numbers<[1], [0], [0], [1], [0, 0, 1, 1], [], []>} : vector<8x4xf32>, vector<4x8xf32>, vector<8x8xf32> -> vector<8x8xf32>
      %188 = arith.addf %187, %16 : vector<8x8xf32>
      %cst_70 = arith.constant dense<0xFF800000> : vector<8xf32>
      %189 = vector.multi_reduction <maximumf>, %188, %cst_70 [1] : vector<8x8xf32> to vector<8xf32>
      %190 = vector.shape_cast %189 : vector<8xf32> to vector<8x1xf32>
      %191 = vector.broadcast %190 : vector<8x1xf32> to vector<8x8xf32>
      %192 = arith.subf %188, %191 : vector<8x8xf32>
      %193 = math.exp %192 : vector<8x8xf32>
      %cst_71 = arith.constant dense<0.000000e+00> : vector<8xf32>
      %194 = vector.multi_reduction <add>, %193, %cst_71 [1] : vector<8x8xf32> to vector<8xf32>
      %195 = vector.shape_cast %194 : vector<8xf32> to vector<8x1xf32>
      %196 = tpu.reciprocal %195 {approx = true} : vector<8x1xf32> -> vector<8x1xf32>
      %197 = vector.broadcast %196 : vector<8x1xf32> to vector<8x8xf32>
      %198 = arith.mulf %193, %197 : vector<8x8xf32>
      %cst_72 = arith.constant dense<0.000000e+00> : vector<8x4xf32>
      %199 = tpu.matmul %198, %185, %cst_72 {dimension_numbers = #tpu.dot_dimension_numbers<[1], [0], [0], [1], [0, 0, 1, 1], [], []>} : vector<8x8xf32>, vector<8x4xf32>, vector<8x4xf32> -> vector<8x4xf32>
      %200 = vector.extract_strided_slice %42 {offsets = [24, 0], sizes = [4, 32], strides = [1, 1]} : vector<32x32xf32> to vector<4x32xf32>
      %cst_73 = arith.constant dense<0.000000e+00> : vector<8x32xf32>
      %201 = tpu.matmul %199, %200, %cst_73 {dimension_numbers = #tpu.dot_dimension_numbers<[1], [0], [0], [1], [0, 0, 1, 1], [], []>} : vector<8x4xf32>, vector<4x32xf32>, vector<8x32xf32> -> vector<8x32xf32>
      %202 = arith.addf %180, %201 : vector<8x32xf32>
      %203 = vector.extract_strided_slice %37 {offsets = [0, 28], sizes = [8, 4], strides = [1, 1]} : vector<8x32xf32> to vector<8x4xf32>
      %cst_74 = arith.constant 5.000000e-01 : f32
      %204 = vector.broadcast %cst_74 : f32 to vector<8x4xf32>
      %205 = arith.mulf %203, %204 : vector<8x4xf32>
      %206 = vector.extract_strided_slice %38 {offsets = [0, 28], sizes = [8, 4], strides = [1, 1]} : vector<8x32xf32> to vector<8x4xf32>
      %207 = vector.extract_strided_slice %39 {offsets = [0, 28], sizes = [8, 4], strides = [1, 1]} : vector<8x32xf32> to vector<8x4xf32>
      %208 = tpu.transpose %206, [1, 0] : vector<8x4xf32> -> vector<4x8xf32>
      %cst_75 = arith.constant dense<0.000000e+00> : vector<8x8xf32>
      %209 = tpu.matmul %205, %208, %cst_75 {dimension_numbers = #tpu.dot_dimension_numbers<[1], [0], [0], [1], [0, 0, 1, 1], [], []>} : vector<8x4xf32>, vector<4x8xf32>, vector<8x8xf32> -> vector<8x8xf32>
      %210 = arith.addf %209, %16 : vector<8x8xf32>
      %cst_76 = arith.constant dense<0xFF800000> : vector<8xf32>
      %211 = vector.multi_reduction <maximumf>, %210, %cst_76 [1] : vector<8x8xf32> to vector<8xf32>
      %212 = vector.shape_cast %211 : vector<8xf32> to vector<8x1xf32>
      %213 = vector.broadcast %212 : vector<8x1xf32> to vector<8x8xf32>
      %214 = arith.subf %210, %213 : vector<8x8xf32>
      %215 = math.exp %214 : vector<8x8xf32>
      %cst_77 = arith.constant dense<0.000000e+00> : vector<8xf32>
      %216 = vector.multi_reduction <add>, %215, %cst_77 [1] : vector<8x8xf32> to vector<8xf32>
      %217 = vector.shape_cast %216 : vector<8xf32> to vector<8x1xf32>
      %218 = tpu.reciprocal %217 {approx = true} : vector<8x1xf32> -> vector<8x1xf32>
      %219 = vector.broadcast %218 : vector<8x1xf32> to vector<8x8xf32>
      %220 = arith.mulf %215, %219 : vector<8x8xf32>
      %cst_78 = arith.constant dense<0.000000e+00> : vector<8x4xf32>
      %221 = tpu.matmul %220, %207, %cst_78 {dimension_numbers = #tpu.dot_dimension_numbers<[1], [0], [0], [1], [0, 0, 1, 1], [], []>} : vector<8x8xf32>, vector<8x4xf32>, vector<8x4xf32> -> vector<8x4xf32>
      %222 = vector.extract_strided_slice %42 {offsets = [28, 0], sizes = [4, 32], strides = [1, 1]} : vector<32x32xf32> to vector<4x32xf32>
      %cst_79 = arith.constant dense<0.000000e+00> : vector<8x32xf32>
      %223 = tpu.matmul %221, %222, %cst_79 {dimension_numbers = #tpu.dot_dimension_numbers<[1], [0], [0], [1], [0, 0, 1, 1], [], []>} : vector<8x4xf32>, vector<4x32xf32>, vector<8x32xf32> -> vector<8x32xf32>
      %224 = arith.addf %202, %223 : vector<8x32xf32>
      %225 = arith.addf %arg30, %224 : vector<8x32xf32>
      %226 = arith.index_cast %arg29 : i32 to index
      %c0_80 = arith.constant 0 : index
      %c0_81 = arith.constant 0 : index
      %227 = vector.load %arg10[%226, %c0_80, %c0_81] : memref<8x1x32xf32, #tpu.memory_space<vmem>>, vector<1x1x32xf32>
      %228 = vector.shape_cast %227 : vector<1x1x32xf32> to vector<1x32xf32>
      %229 = arith.index_cast %arg29 : i32 to index
      %c0_82 = arith.constant 0 : index
      %c0_83 = arith.constant 0 : index
      %230 = vector.load %arg11[%229, %c0_82, %c0_83] : memref<8x1x32xf32, #tpu.memory_space<vmem>>, vector<1x1x32xf32>
      %231 = vector.shape_cast %230 : vector<1x1x32xf32> to vector<1x32xf32>
      %cst_84 = arith.constant dense<0.000000e+00> : vector<8xf32>
      %232 = vector.multi_reduction <add>, %225, %cst_84 [1] : vector<8x32xf32> to vector<8xf32>
      %233 = vector.shape_cast %232 : vector<8xf32> to vector<8x1xf32>
      %cst_85 = arith.constant 3.200000e+01 : f32
      %234 = vector.broadcast %cst_85 : f32 to vector<8x1xf32>
      %235 = arith.divf %233, %234 : vector<8x1xf32>
      %236 = vector.broadcast %235 : vector<8x1xf32> to vector<8x32xf32>
      %237 = arith.subf %225, %236 : vector<8x32xf32>
      %238 = arith.mulf %237, %237 : vector<8x32xf32>
      %cst_86 = arith.constant dense<0.000000e+00> : vector<8xf32>
      %239 = vector.multi_reduction <add>, %238, %cst_86 [1] : vector<8x32xf32> to vector<8xf32>
      %240 = vector.shape_cast %239 : vector<8xf32> to vector<8x1xf32>
      %cst_87 = arith.constant 3.200000e+01 : f32
      %241 = vector.broadcast %cst_87 : f32 to vector<8x1xf32>
      %242 = arith.divf %240, %241 : vector<8x1xf32>
      %cst_88 = arith.constant 9.99999974E-6 : f32
      %243 = vector.broadcast %cst_88 : f32 to vector<8x1xf32>
      %244 = arith.addf %242, %243 : vector<8x1xf32>
      %245 = math.rsqrt %244 : vector<8x1xf32>
      %246 = vector.broadcast %245 : vector<8x1xf32> to vector<8x32xf32>
      %247 = arith.mulf %237, %246 : vector<8x32xf32>
      %248 = vector.broadcast %228 : vector<1x32xf32> to vector<8x32xf32>
      %249 = arith.mulf %247, %248 : vector<8x32xf32>
      %250 = vector.broadcast %231 : vector<1x32xf32> to vector<8x32xf32>
      %251 = arith.addf %249, %250 : vector<8x32xf32>
      %252 = arith.index_cast %arg29 : i32 to index
      %c0_89 = arith.constant 0 : index
      %c0_90 = arith.constant 0 : index
      %253 = vector.load %arg12[%252, %c0_89, %c0_90] : memref<8x32x32xf32, #tpu.memory_space<vmem>>, vector<1x32x32xf32>
      %254 = vector.shape_cast %253 : vector<1x32x32xf32> to vector<32x32xf32>
      %cst_91 = arith.constant dense<0.000000e+00> : vector<8x32xf32>
      %255 = tpu.matmul %251, %254, %cst_91 {dimension_numbers = #tpu.dot_dimension_numbers<[1], [0], [0], [1], [0, 0, 1, 1], [], []>} : vector<8x32xf32>, vector<32x32xf32>, vector<8x32xf32> -> vector<8x32xf32>
      %256 = arith.index_cast %arg29 : i32 to index
      %c0_92 = arith.constant 0 : index
      %c0_93 = arith.constant 0 : index
      %257 = vector.load %arg13[%256, %c0_92, %c0_93] : memref<8x1x32xf32, #tpu.memory_space<vmem>>, vector<1x1x32xf32>
      %258 = vector.shape_cast %257 : vector<1x1x32xf32> to vector<1x32xf32>
      %259 = vector.broadcast %258 : vector<1x32xf32> to vector<8x32xf32>
      %260 = arith.addf %255, %259 : vector<8x32xf32>
      %261 = arith.index_cast %arg29 : i32 to index
      %c0_94 = arith.constant 0 : index
      %c0_95 = arith.constant 0 : index
      %262 = vector.load %arg14[%261, %c0_94, %c0_95] : memref<8x32x64xf32, #tpu.memory_space<vmem>>, vector<1x32x64xf32>
      %263 = vector.shape_cast %262 : vector<1x32x64xf32> to vector<32x64xf32>
      %cst_96 = arith.constant dense<0.000000e+00> : vector<14x64xf32>
      %264 = tpu.matmul %3, %263, %cst_96 {dimension_numbers = #tpu.dot_dimension_numbers<[1], [0], [0], [1], [0, 0, 1, 1], [], []>} : vector<14x32xf32>, vector<32x64xf32>, vector<14x64xf32> -> vector<14x64xf32>
      %265 = arith.index_cast %arg29 : i32 to index
      %c0_97 = arith.constant 0 : index
      %c0_98 = arith.constant 0 : index
      %266 = vector.load %arg15[%265, %c0_97, %c0_98] : memref<8x1x64xf32, #tpu.memory_space<vmem>>, vector<1x1x64xf32>
      %267 = vector.shape_cast %266 : vector<1x1x64xf32> to vector<1x64xf32>
      %268 = vector.broadcast %267 : vector<1x64xf32> to vector<14x64xf32>
      %269 = arith.addf %264, %268 : vector<14x64xf32>
      %270 = vector.extract_strided_slice %269 {offsets = [0, 0], sizes = [14, 32], strides = [1, 1]} : vector<14x64xf32> to vector<14x32xf32>
      %271 = vector.extract_strided_slice %269 {offsets = [0, 32], sizes = [14, 32], strides = [1, 1]} : vector<14x64xf32> to vector<14x32xf32>
      %272 = arith.index_cast %arg29 : i32 to index
      %c0_99 = arith.constant 0 : index
      %c0_100 = arith.constant 0 : index
      %273 = vector.load %arg16[%272, %c0_99, %c0_100] : memref<8x32x32xf32, #tpu.memory_space<vmem>>, vector<1x32x32xf32>
      %274 = vector.shape_cast %273 : vector<1x32x32xf32> to vector<32x32xf32>
      %275 = arith.index_cast %arg29 : i32 to index
      %c0_101 = arith.constant 0 : index
      %c0_102 = arith.constant 0 : index
      %276 = vector.load %arg17[%275, %c0_101, %c0_102] : memref<8x1x32xf32, #tpu.memory_space<vmem>>, vector<1x1x32xf32>
      %277 = vector.shape_cast %276 : vector<1x1x32xf32> to vector<1x32xf32>
      %cst_103 = arith.constant 0.000000e+00 : f32
      %278 = vector.broadcast %cst_103 : f32 to vector<8x32xf32>
      %279 = vector.broadcast %277 : vector<1x32xf32> to vector<8x32xf32>
      %280 = arith.addf %278, %279 : vector<8x32xf32>
      %281 = vector.extract_strided_slice %260 {offsets = [0, 0], sizes = [8, 4], strides = [1, 1]} : vector<8x32xf32> to vector<8x4xf32>
      %cst_104 = arith.constant 5.000000e-01 : f32
      %282 = vector.broadcast %cst_104 : f32 to vector<8x4xf32>
      %283 = arith.mulf %281, %282 : vector<8x4xf32>
      %284 = vector.extract_strided_slice %270 {offsets = [0, 0], sizes = [14, 4], strides = [1, 1]} : vector<14x32xf32> to vector<14x4xf32>
      %285 = vector.extract_strided_slice %271 {offsets = [0, 0], sizes = [14, 4], strides = [1, 1]} : vector<14x32xf32> to vector<14x4xf32>
      %286 = tpu.transpose %284, [1, 0] : vector<14x4xf32> -> vector<4x14xf32>
      %cst_105 = arith.constant dense<0.000000e+00> : vector<8x14xf32>
      %287 = tpu.matmul %283, %286, %cst_105 {dimension_numbers = #tpu.dot_dimension_numbers<[1], [0], [0], [1], [0, 0, 1, 1], [], []>} : vector<8x4xf32>, vector<4x14xf32>, vector<8x14xf32> -> vector<8x14xf32>
      %cst_106 = arith.constant dense<0xFF800000> : vector<8xf32>
      %288 = vector.multi_reduction <maximumf>, %287, %cst_106 [1] : vector<8x14xf32> to vector<8xf32>
      %289 = vector.shape_cast %288 : vector<8xf32> to vector<8x1xf32>
      %290 = vector.broadcast %289 : vector<8x1xf32> to vector<8x14xf32>
      %291 = arith.subf %287, %290 : vector<8x14xf32>
      %292 = math.exp %291 : vector<8x14xf32>
      %cst_107 = arith.constant dense<0.000000e+00> : vector<8xf32>
      %293 = vector.multi_reduction <add>, %292, %cst_107 [1] : vector<8x14xf32> to vector<8xf32>
      %294 = vector.shape_cast %293 : vector<8xf32> to vector<8x1xf32>
      %295 = tpu.reciprocal %294 {approx = true} : vector<8x1xf32> -> vector<8x1xf32>
      %296 = vector.broadcast %295 : vector<8x1xf32> to vector<8x14xf32>
      %297 = arith.mulf %292, %296 : vector<8x14xf32>
      %cst_108 = arith.constant dense<0.000000e+00> : vector<8x4xf32>
      %298 = tpu.matmul %297, %285, %cst_108 {dimension_numbers = #tpu.dot_dimension_numbers<[1], [0], [0], [1], [0, 0, 1, 1], [], []>} : vector<8x14xf32>, vector<14x4xf32>, vector<8x4xf32> -> vector<8x4xf32>
      %299 = vector.extract_strided_slice %274 {offsets = [0, 0], sizes = [4, 32], strides = [1, 1]} : vector<32x32xf32> to vector<4x32xf32>
      %cst_109 = arith.constant dense<0.000000e+00> : vector<8x32xf32>
      %300 = tpu.matmul %298, %299, %cst_109 {dimension_numbers = #tpu.dot_dimension_numbers<[1], [0], [0], [1], [0, 0, 1, 1], [], []>} : vector<8x4xf32>, vector<4x32xf32>, vector<8x32xf32> -> vector<8x32xf32>
      %301 = arith.addf %280, %300 : vector<8x32xf32>
      %302 = vector.extract_strided_slice %260 {offsets = [0, 4], sizes = [8, 4], strides = [1, 1]} : vector<8x32xf32> to vector<8x4xf32>
      %cst_110 = arith.constant 5.000000e-01 : f32
      %303 = vector.broadcast %cst_110 : f32 to vector<8x4xf32>
      %304 = arith.mulf %302, %303 : vector<8x4xf32>
      %305 = vector.extract_strided_slice %270 {offsets = [0, 4], sizes = [14, 4], strides = [1, 1]} : vector<14x32xf32> to vector<14x4xf32>
      %306 = vector.extract_strided_slice %271 {offsets = [0, 4], sizes = [14, 4], strides = [1, 1]} : vector<14x32xf32> to vector<14x4xf32>
      %307 = tpu.transpose %305, [1, 0] : vector<14x4xf32> -> vector<4x14xf32>
      %cst_111 = arith.constant dense<0.000000e+00> : vector<8x14xf32>
      %308 = tpu.matmul %304, %307, %cst_111 {dimension_numbers = #tpu.dot_dimension_numbers<[1], [0], [0], [1], [0, 0, 1, 1], [], []>} : vector<8x4xf32>, vector<4x14xf32>, vector<8x14xf32> -> vector<8x14xf32>
      %cst_112 = arith.constant dense<0xFF800000> : vector<8xf32>
      %309 = vector.multi_reduction <maximumf>, %308, %cst_112 [1] : vector<8x14xf32> to vector<8xf32>
      %310 = vector.shape_cast %309 : vector<8xf32> to vector<8x1xf32>
      %311 = vector.broadcast %310 : vector<8x1xf32> to vector<8x14xf32>
      %312 = arith.subf %308, %311 : vector<8x14xf32>
      %313 = math.exp %312 : vector<8x14xf32>
      %cst_113 = arith.constant dense<0.000000e+00> : vector<8xf32>
      %314 = vector.multi_reduction <add>, %313, %cst_113 [1] : vector<8x14xf32> to vector<8xf32>
      %315 = vector.shape_cast %314 : vector<8xf32> to vector<8x1xf32>
      %316 = tpu.reciprocal %315 {approx = true} : vector<8x1xf32> -> vector<8x1xf32>
      %317 = vector.broadcast %316 : vector<8x1xf32> to vector<8x14xf32>
      %318 = arith.mulf %313, %317 : vector<8x14xf32>
      %cst_114 = arith.constant dense<0.000000e+00> : vector<8x4xf32>
      %319 = tpu.matmul %318, %306, %cst_114 {dimension_numbers = #tpu.dot_dimension_numbers<[1], [0], [0], [1], [0, 0, 1, 1], [], []>} : vector<8x14xf32>, vector<14x4xf32>, vector<8x4xf32> -> vector<8x4xf32>
      %320 = vector.extract_strided_slice %274 {offsets = [4, 0], sizes = [4, 32], strides = [1, 1]} : vector<32x32xf32> to vector<4x32xf32>
      %cst_115 = arith.constant dense<0.000000e+00> : vector<8x32xf32>
      %321 = tpu.matmul %319, %320, %cst_115 {dimension_numbers = #tpu.dot_dimension_numbers<[1], [0], [0], [1], [0, 0, 1, 1], [], []>} : vector<8x4xf32>, vector<4x32xf32>, vector<8x32xf32> -> vector<8x32xf32>
      %322 = arith.addf %301, %321 : vector<8x32xf32>
      %323 = vector.extract_strided_slice %260 {offsets = [0, 8], sizes = [8, 4], strides = [1, 1]} : vector<8x32xf32> to vector<8x4xf32>
      %cst_116 = arith.constant 5.000000e-01 : f32
      %324 = vector.broadcast %cst_116 : f32 to vector<8x4xf32>
      %325 = arith.mulf %323, %324 : vector<8x4xf32>
      %326 = vector.extract_strided_slice %270 {offsets = [0, 8], sizes = [14, 4], strides = [1, 1]} : vector<14x32xf32> to vector<14x4xf32>
      %327 = vector.extract_strided_slice %271 {offsets = [0, 8], sizes = [14, 4], strides = [1, 1]} : vector<14x32xf32> to vector<14x4xf32>
      %328 = tpu.transpose %326, [1, 0] : vector<14x4xf32> -> vector<4x14xf32>
      %cst_117 = arith.constant dense<0.000000e+00> : vector<8x14xf32>
      %329 = tpu.matmul %325, %328, %cst_117 {dimension_numbers = #tpu.dot_dimension_numbers<[1], [0], [0], [1], [0, 0, 1, 1], [], []>} : vector<8x4xf32>, vector<4x14xf32>, vector<8x14xf32> -> vector<8x14xf32>
      %cst_118 = arith.constant dense<0xFF800000> : vector<8xf32>
      %330 = vector.multi_reduction <maximumf>, %329, %cst_118 [1] : vector<8x14xf32> to vector<8xf32>
      %331 = vector.shape_cast %330 : vector<8xf32> to vector<8x1xf32>
      %332 = vector.broadcast %331 : vector<8x1xf32> to vector<8x14xf32>
      %333 = arith.subf %329, %332 : vector<8x14xf32>
      %334 = math.exp %333 : vector<8x14xf32>
      %cst_119 = arith.constant dense<0.000000e+00> : vector<8xf32>
      %335 = vector.multi_reduction <add>, %334, %cst_119 [1] : vector<8x14xf32> to vector<8xf32>
      %336 = vector.shape_cast %335 : vector<8xf32> to vector<8x1xf32>
      %337 = tpu.reciprocal %336 {approx = true} : vector<8x1xf32> -> vector<8x1xf32>
      %338 = vector.broadcast %337 : vector<8x1xf32> to vector<8x14xf32>
      %339 = arith.mulf %334, %338 : vector<8x14xf32>
      %cst_120 = arith.constant dense<0.000000e+00> : vector<8x4xf32>
      %340 = tpu.matmul %339, %327, %cst_120 {dimension_numbers = #tpu.dot_dimension_numbers<[1], [0], [0], [1], [0, 0, 1, 1], [], []>} : vector<8x14xf32>, vector<14x4xf32>, vector<8x4xf32> -> vector<8x4xf32>
      %341 = vector.extract_strided_slice %274 {offsets = [8, 0], sizes = [4, 32], strides = [1, 1]} : vector<32x32xf32> to vector<4x32xf32>
      %cst_121 = arith.constant dense<0.000000e+00> : vector<8x32xf32>
      %342 = tpu.matmul %340, %341, %cst_121 {dimension_numbers = #tpu.dot_dimension_numbers<[1], [0], [0], [1], [0, 0, 1, 1], [], []>} : vector<8x4xf32>, vector<4x32xf32>, vector<8x32xf32> -> vector<8x32xf32>
      %343 = arith.addf %322, %342 : vector<8x32xf32>
      %344 = vector.extract_strided_slice %260 {offsets = [0, 12], sizes = [8, 4], strides = [1, 1]} : vector<8x32xf32> to vector<8x4xf32>
      %cst_122 = arith.constant 5.000000e-01 : f32
      %345 = vector.broadcast %cst_122 : f32 to vector<8x4xf32>
      %346 = arith.mulf %344, %345 : vector<8x4xf32>
      %347 = vector.extract_strided_slice %270 {offsets = [0, 12], sizes = [14, 4], strides = [1, 1]} : vector<14x32xf32> to vector<14x4xf32>
      %348 = vector.extract_strided_slice %271 {offsets = [0, 12], sizes = [14, 4], strides = [1, 1]} : vector<14x32xf32> to vector<14x4xf32>
      %349 = tpu.transpose %347, [1, 0] : vector<14x4xf32> -> vector<4x14xf32>
      %cst_123 = arith.constant dense<0.000000e+00> : vector<8x14xf32>
      %350 = tpu.matmul %346, %349, %cst_123 {dimension_numbers = #tpu.dot_dimension_numbers<[1], [0], [0], [1], [0, 0, 1, 1], [], []>} : vector<8x4xf32>, vector<4x14xf32>, vector<8x14xf32> -> vector<8x14xf32>
      %cst_124 = arith.constant dense<0xFF800000> : vector<8xf32>
      %351 = vector.multi_reduction <maximumf>, %350, %cst_124 [1] : vector<8x14xf32> to vector<8xf32>
      %352 = vector.shape_cast %351 : vector<8xf32> to vector<8x1xf32>
      %353 = vector.broadcast %352 : vector<8x1xf32> to vector<8x14xf32>
      %354 = arith.subf %350, %353 : vector<8x14xf32>
      %355 = math.exp %354 : vector<8x14xf32>
      %cst_125 = arith.constant dense<0.000000e+00> : vector<8xf32>
      %356 = vector.multi_reduction <add>, %355, %cst_125 [1] : vector<8x14xf32> to vector<8xf32>
      %357 = vector.shape_cast %356 : vector<8xf32> to vector<8x1xf32>
      %358 = tpu.reciprocal %357 {approx = true} : vector<8x1xf32> -> vector<8x1xf32>
      %359 = vector.broadcast %358 : vector<8x1xf32> to vector<8x14xf32>
      %360 = arith.mulf %355, %359 : vector<8x14xf32>
      %cst_126 = arith.constant dense<0.000000e+00> : vector<8x4xf32>
      %361 = tpu.matmul %360, %348, %cst_126 {dimension_numbers = #tpu.dot_dimension_numbers<[1], [0], [0], [1], [0, 0, 1, 1], [], []>} : vector<8x14xf32>, vector<14x4xf32>, vector<8x4xf32> -> vector<8x4xf32>
      %362 = vector.extract_strided_slice %274 {offsets = [12, 0], sizes = [4, 32], strides = [1, 1]} : vector<32x32xf32> to vector<4x32xf32>
      %cst_127 = arith.constant dense<0.000000e+00> : vector<8x32xf32>
      %363 = tpu.matmul %361, %362, %cst_127 {dimension_numbers = #tpu.dot_dimension_numbers<[1], [0], [0], [1], [0, 0, 1, 1], [], []>} : vector<8x4xf32>, vector<4x32xf32>, vector<8x32xf32> -> vector<8x32xf32>
      %364 = arith.addf %343, %363 : vector<8x32xf32>
      %365 = vector.extract_strided_slice %260 {offsets = [0, 16], sizes = [8, 4], strides = [1, 1]} : vector<8x32xf32> to vector<8x4xf32>
      %cst_128 = arith.constant 5.000000e-01 : f32
      %366 = vector.broadcast %cst_128 : f32 to vector<8x4xf32>
      %367 = arith.mulf %365, %366 : vector<8x4xf32>
      %368 = vector.extract_strided_slice %270 {offsets = [0, 16], sizes = [14, 4], strides = [1, 1]} : vector<14x32xf32> to vector<14x4xf32>
      %369 = vector.extract_strided_slice %271 {offsets = [0, 16], sizes = [14, 4], strides = [1, 1]} : vector<14x32xf32> to vector<14x4xf32>
      %370 = tpu.transpose %368, [1, 0] : vector<14x4xf32> -> vector<4x14xf32>
      %cst_129 = arith.constant dense<0.000000e+00> : vector<8x14xf32>
      %371 = tpu.matmul %367, %370, %cst_129 {dimension_numbers = #tpu.dot_dimension_numbers<[1], [0], [0], [1], [0, 0, 1, 1], [], []>} : vector<8x4xf32>, vector<4x14xf32>, vector<8x14xf32> -> vector<8x14xf32>
      %cst_130 = arith.constant dense<0xFF800000> : vector<8xf32>
      %372 = vector.multi_reduction <maximumf>, %371, %cst_130 [1] : vector<8x14xf32> to vector<8xf32>
      %373 = vector.shape_cast %372 : vector<8xf32> to vector<8x1xf32>
      %374 = vector.broadcast %373 : vector<8x1xf32> to vector<8x14xf32>
      %375 = arith.subf %371, %374 : vector<8x14xf32>
      %376 = math.exp %375 : vector<8x14xf32>
      %cst_131 = arith.constant dense<0.000000e+00> : vector<8xf32>
      %377 = vector.multi_reduction <add>, %376, %cst_131 [1] : vector<8x14xf32> to vector<8xf32>
      %378 = vector.shape_cast %377 : vector<8xf32> to vector<8x1xf32>
      %379 = tpu.reciprocal %378 {approx = true} : vector<8x1xf32> -> vector<8x1xf32>
      %380 = vector.broadcast %379 : vector<8x1xf32> to vector<8x14xf32>
      %381 = arith.mulf %376, %380 : vector<8x14xf32>
      %cst_132 = arith.constant dense<0.000000e+00> : vector<8x4xf32>
      %382 = tpu.matmul %381, %369, %cst_132 {dimension_numbers = #tpu.dot_dimension_numbers<[1], [0], [0], [1], [0, 0, 1, 1], [], []>} : vector<8x14xf32>, vector<14x4xf32>, vector<8x4xf32> -> vector<8x4xf32>
      %383 = vector.extract_strided_slice %274 {offsets = [16, 0], sizes = [4, 32], strides = [1, 1]} : vector<32x32xf32> to vector<4x32xf32>
      %cst_133 = arith.constant dense<0.000000e+00> : vector<8x32xf32>
      %384 = tpu.matmul %382, %383, %cst_133 {dimension_numbers = #tpu.dot_dimension_numbers<[1], [0], [0], [1], [0, 0, 1, 1], [], []>} : vector<8x4xf32>, vector<4x32xf32>, vector<8x32xf32> -> vector<8x32xf32>
      %385 = arith.addf %364, %384 : vector<8x32xf32>
      %386 = vector.extract_strided_slice %260 {offsets = [0, 20], sizes = [8, 4], strides = [1, 1]} : vector<8x32xf32> to vector<8x4xf32>
      %cst_134 = arith.constant 5.000000e-01 : f32
      %387 = vector.broadcast %cst_134 : f32 to vector<8x4xf32>
      %388 = arith.mulf %386, %387 : vector<8x4xf32>
      %389 = vector.extract_strided_slice %270 {offsets = [0, 20], sizes = [14, 4], strides = [1, 1]} : vector<14x32xf32> to vector<14x4xf32>
      %390 = vector.extract_strided_slice %271 {offsets = [0, 20], sizes = [14, 4], strides = [1, 1]} : vector<14x32xf32> to vector<14x4xf32>
      %391 = tpu.transpose %389, [1, 0] : vector<14x4xf32> -> vector<4x14xf32>
      %cst_135 = arith.constant dense<0.000000e+00> : vector<8x14xf32>
      %392 = tpu.matmul %388, %391, %cst_135 {dimension_numbers = #tpu.dot_dimension_numbers<[1], [0], [0], [1], [0, 0, 1, 1], [], []>} : vector<8x4xf32>, vector<4x14xf32>, vector<8x14xf32> -> vector<8x14xf32>
      %cst_136 = arith.constant dense<0xFF800000> : vector<8xf32>
      %393 = vector.multi_reduction <maximumf>, %392, %cst_136 [1] : vector<8x14xf32> to vector<8xf32>
      %394 = vector.shape_cast %393 : vector<8xf32> to vector<8x1xf32>
      %395 = vector.broadcast %394 : vector<8x1xf32> to vector<8x14xf32>
      %396 = arith.subf %392, %395 : vector<8x14xf32>
      %397 = math.exp %396 : vector<8x14xf32>
      %cst_137 = arith.constant dense<0.000000e+00> : vector<8xf32>
      %398 = vector.multi_reduction <add>, %397, %cst_137 [1] : vector<8x14xf32> to vector<8xf32>
      %399 = vector.shape_cast %398 : vector<8xf32> to vector<8x1xf32>
      %400 = tpu.reciprocal %399 {approx = true} : vector<8x1xf32> -> vector<8x1xf32>
      %401 = vector.broadcast %400 : vector<8x1xf32> to vector<8x14xf32>
      %402 = arith.mulf %397, %401 : vector<8x14xf32>
      %cst_138 = arith.constant dense<0.000000e+00> : vector<8x4xf32>
      %403 = tpu.matmul %402, %390, %cst_138 {dimension_numbers = #tpu.dot_dimension_numbers<[1], [0], [0], [1], [0, 0, 1, 1], [], []>} : vector<8x14xf32>, vector<14x4xf32>, vector<8x4xf32> -> vector<8x4xf32>
      %404 = vector.extract_strided_slice %274 {offsets = [20, 0], sizes = [4, 32], strides = [1, 1]} : vector<32x32xf32> to vector<4x32xf32>
      %cst_139 = arith.constant dense<0.000000e+00> : vector<8x32xf32>
      %405 = tpu.matmul %403, %404, %cst_139 {dimension_numbers = #tpu.dot_dimension_numbers<[1], [0], [0], [1], [0, 0, 1, 1], [], []>} : vector<8x4xf32>, vector<4x32xf32>, vector<8x32xf32> -> vector<8x32xf32>
      %406 = arith.addf %385, %405 : vector<8x32xf32>
      %407 = vector.extract_strided_slice %260 {offsets = [0, 24], sizes = [8, 4], strides = [1, 1]} : vector<8x32xf32> to vector<8x4xf32>
      %cst_140 = arith.constant 5.000000e-01 : f32
      %408 = vector.broadcast %cst_140 : f32 to vector<8x4xf32>
      %409 = arith.mulf %407, %408 : vector<8x4xf32>
      %410 = vector.extract_strided_slice %270 {offsets = [0, 24], sizes = [14, 4], strides = [1, 1]} : vector<14x32xf32> to vector<14x4xf32>
      %411 = vector.extract_strided_slice %271 {offsets = [0, 24], sizes = [14, 4], strides = [1, 1]} : vector<14x32xf32> to vector<14x4xf32>
      %412 = tpu.transpose %410, [1, 0] : vector<14x4xf32> -> vector<4x14xf32>
      %cst_141 = arith.constant dense<0.000000e+00> : vector<8x14xf32>
      %413 = tpu.matmul %409, %412, %cst_141 {dimension_numbers = #tpu.dot_dimension_numbers<[1], [0], [0], [1], [0, 0, 1, 1], [], []>} : vector<8x4xf32>, vector<4x14xf32>, vector<8x14xf32> -> vector<8x14xf32>
      %cst_142 = arith.constant dense<0xFF800000> : vector<8xf32>
      %414 = vector.multi_reduction <maximumf>, %413, %cst_142 [1] : vector<8x14xf32> to vector<8xf32>
      %415 = vector.shape_cast %414 : vector<8xf32> to vector<8x1xf32>
      %416 = vector.broadcast %415 : vector<8x1xf32> to vector<8x14xf32>
      %417 = arith.subf %413, %416 : vector<8x14xf32>
      %418 = math.exp %417 : vector<8x14xf32>
      %cst_143 = arith.constant dense<0.000000e+00> : vector<8xf32>
      %419 = vector.multi_reduction <add>, %418, %cst_143 [1] : vector<8x14xf32> to vector<8xf32>
      %420 = vector.shape_cast %419 : vector<8xf32> to vector<8x1xf32>
      %421 = tpu.reciprocal %420 {approx = true} : vector<8x1xf32> -> vector<8x1xf32>
      %422 = vector.broadcast %421 : vector<8x1xf32> to vector<8x14xf32>
      %423 = arith.mulf %418, %422 : vector<8x14xf32>
      %cst_144 = arith.constant dense<0.000000e+00> : vector<8x4xf32>
      %424 = tpu.matmul %423, %411, %cst_144 {dimension_numbers = #tpu.dot_dimension_numbers<[1], [0], [0], [1], [0, 0, 1, 1], [], []>} : vector<8x14xf32>, vector<14x4xf32>, vector<8x4xf32> -> vector<8x4xf32>
      %425 = vector.extract_strided_slice %274 {offsets = [24, 0], sizes = [4, 32], strides = [1, 1]} : vector<32x32xf32> to vector<4x32xf32>
      %cst_145 = arith.constant dense<0.000000e+00> : vector<8x32xf32>
      %426 = tpu.matmul %424, %425, %cst_145 {dimension_numbers = #tpu.dot_dimension_numbers<[1], [0], [0], [1], [0, 0, 1, 1], [], []>} : vector<8x4xf32>, vector<4x32xf32>, vector<8x32xf32> -> vector<8x32xf32>
      %427 = arith.addf %406, %426 : vector<8x32xf32>
      %428 = vector.extract_strided_slice %260 {offsets = [0, 28], sizes = [8, 4], strides = [1, 1]} : vector<8x32xf32> to vector<8x4xf32>
      %cst_146 = arith.constant 5.000000e-01 : f32
      %429 = vector.broadcast %cst_146 : f32 to vector<8x4xf32>
      %430 = arith.mulf %428, %429 : vector<8x4xf32>
      %431 = vector.extract_strided_slice %270 {offsets = [0, 28], sizes = [14, 4], strides = [1, 1]} : vector<14x32xf32> to vector<14x4xf32>
      %432 = vector.extract_strided_slice %271 {offsets = [0, 28], sizes = [14, 4], strides = [1, 1]} : vector<14x32xf32> to vector<14x4xf32>
      %433 = tpu.transpose %431, [1, 0] : vector<14x4xf32> -> vector<4x14xf32>
      %cst_147 = arith.constant dense<0.000000e+00> : vector<8x14xf32>
      %434 = tpu.matmul %430, %433, %cst_147 {dimension_numbers = #tpu.dot_dimension_numbers<[1], [0], [0], [1], [0, 0, 1, 1], [], []>} : vector<8x4xf32>, vector<4x14xf32>, vector<8x14xf32> -> vector<8x14xf32>
      %cst_148 = arith.constant dense<0xFF800000> : vector<8xf32>
      %435 = vector.multi_reduction <maximumf>, %434, %cst_148 [1] : vector<8x14xf32> to vector<8xf32>
      %436 = vector.shape_cast %435 : vector<8xf32> to vector<8x1xf32>
      %437 = vector.broadcast %436 : vector<8x1xf32> to vector<8x14xf32>
      %438 = arith.subf %434, %437 : vector<8x14xf32>
      %439 = math.exp %438 : vector<8x14xf32>
      %cst_149 = arith.constant dense<0.000000e+00> : vector<8xf32>
      %440 = vector.multi_reduction <add>, %439, %cst_149 [1] : vector<8x14xf32> to vector<8xf32>
      %441 = vector.shape_cast %440 : vector<8xf32> to vector<8x1xf32>
      %442 = tpu.reciprocal %441 {approx = true} : vector<8x1xf32> -> vector<8x1xf32>
      %443 = vector.broadcast %442 : vector<8x1xf32> to vector<8x14xf32>
      %444 = arith.mulf %439, %443 : vector<8x14xf32>
      %cst_150 = arith.constant dense<0.000000e+00> : vector<8x4xf32>
      %445 = tpu.matmul %444, %432, %cst_150 {dimension_numbers = #tpu.dot_dimension_numbers<[1], [0], [0], [1], [0, 0, 1, 1], [], []>} : vector<8x14xf32>, vector<14x4xf32>, vector<8x4xf32> -> vector<8x4xf32>
      %446 = vector.extract_strided_slice %274 {offsets = [28, 0], sizes = [4, 32], strides = [1, 1]} : vector<32x32xf32> to vector<4x32xf32>
      %cst_151 = arith.constant dense<0.000000e+00> : vector<8x32xf32>
      %447 = tpu.matmul %445, %446, %cst_151 {dimension_numbers = #tpu.dot_dimension_numbers<[1], [0], [0], [1], [0, 0, 1, 1], [], []>} : vector<8x4xf32>, vector<4x32xf32>, vector<8x32xf32> -> vector<8x32xf32>
      %448 = arith.addf %427, %447 : vector<8x32xf32>
      %449 = arith.addf %251, %448 : vector<8x32xf32>
      %450 = arith.index_cast %arg29 : i32 to index
      %c0_152 = arith.constant 0 : index
      %c0_153 = arith.constant 0 : index
      %451 = vector.load %arg18[%450, %c0_152, %c0_153] : memref<8x1x32xf32, #tpu.memory_space<vmem>>, vector<1x1x32xf32>
      %452 = vector.shape_cast %451 : vector<1x1x32xf32> to vector<1x32xf32>
      %453 = arith.index_cast %arg29 : i32 to index
      %c0_154 = arith.constant 0 : index
      %c0_155 = arith.constant 0 : index
      %454 = vector.load %arg19[%453, %c0_154, %c0_155] : memref<8x1x32xf32, #tpu.memory_space<vmem>>, vector<1x1x32xf32>
      %455 = vector.shape_cast %454 : vector<1x1x32xf32> to vector<1x32xf32>
      %cst_156 = arith.constant dense<0.000000e+00> : vector<8xf32>
      %456 = vector.multi_reduction <add>, %449, %cst_156 [1] : vector<8x32xf32> to vector<8xf32>
      %457 = vector.shape_cast %456 : vector<8xf32> to vector<8x1xf32>
      %cst_157 = arith.constant 3.200000e+01 : f32
      %458 = vector.broadcast %cst_157 : f32 to vector<8x1xf32>
      %459 = arith.divf %457, %458 : vector<8x1xf32>
      %460 = vector.broadcast %459 : vector<8x1xf32> to vector<8x32xf32>
      %461 = arith.subf %449, %460 : vector<8x32xf32>
      %462 = arith.mulf %461, %461 : vector<8x32xf32>
      %cst_158 = arith.constant dense<0.000000e+00> : vector<8xf32>
      %463 = vector.multi_reduction <add>, %462, %cst_158 [1] : vector<8x32xf32> to vector<8xf32>
      %464 = vector.shape_cast %463 : vector<8xf32> to vector<8x1xf32>
      %cst_159 = arith.constant 3.200000e+01 : f32
      %465 = vector.broadcast %cst_159 : f32 to vector<8x1xf32>
      %466 = arith.divf %464, %465 : vector<8x1xf32>
      %cst_160 = arith.constant 9.99999974E-6 : f32
      %467 = vector.broadcast %cst_160 : f32 to vector<8x1xf32>
      %468 = arith.addf %466, %467 : vector<8x1xf32>
      %469 = math.rsqrt %468 : vector<8x1xf32>
      %470 = vector.broadcast %469 : vector<8x1xf32> to vector<8x32xf32>
      %471 = arith.mulf %461, %470 : vector<8x32xf32>
      %472 = vector.broadcast %452 : vector<1x32xf32> to vector<8x32xf32>
      %473 = arith.mulf %471, %472 : vector<8x32xf32>
      %474 = vector.broadcast %455 : vector<1x32xf32> to vector<8x32xf32>
      %475 = arith.addf %473, %474 : vector<8x32xf32>
      %476 = arith.index_cast %arg29 : i32 to index
      %c0_161 = arith.constant 0 : index
      %c0_162 = arith.constant 0 : index
      %477 = vector.load %arg20[%476, %c0_161, %c0_162] : memref<8x32x128xf32, #tpu.memory_space<vmem>>, vector<1x32x128xf32>
      %478 = vector.shape_cast %477 : vector<1x32x128xf32> to vector<32x128xf32>
      %cst_163 = arith.constant dense<0.000000e+00> : vector<8x128xf32>
      %479 = tpu.matmul %475, %478, %cst_163 {dimension_numbers = #tpu.dot_dimension_numbers<[1], [0], [0], [1], [0, 0, 1, 1], [], []>} : vector<8x32xf32>, vector<32x128xf32>, vector<8x128xf32> -> vector<8x128xf32>
      %480 = arith.index_cast %arg29 : i32 to index
      %c0_164 = arith.constant 0 : index
      %c0_165 = arith.constant 0 : index
      %481 = vector.load %arg21[%480, %c0_164, %c0_165] : memref<8x1x128xf32, #tpu.memory_space<vmem>>, vector<1x1x128xf32>
      %482 = vector.shape_cast %481 : vector<1x1x128xf32> to vector<1x128xf32>
      %483 = vector.broadcast %482 : vector<1x128xf32> to vector<8x128xf32>
      %484 = arith.addf %479, %483 : vector<8x128xf32>
      %cst_166 = arith.constant 0.000000e+00 : f32
      %485 = vector.broadcast %cst_166 : f32 to vector<8x128xf32>
      %486 = arith.maximumf %484, %485 : vector<8x128xf32>
      %487 = arith.index_cast %arg29 : i32 to index
      %c0_167 = arith.constant 0 : index
      %c0_168 = arith.constant 0 : index
      %488 = vector.load %arg22[%487, %c0_167, %c0_168] : memref<8x128x32xf32, #tpu.memory_space<vmem>>, vector<1x128x32xf32>
      %489 = vector.shape_cast %488 : vector<1x128x32xf32> to vector<128x32xf32>
      %cst_169 = arith.constant dense<0.000000e+00> : vector<8x32xf32>
      %490 = tpu.matmul %486, %489, %cst_169 {dimension_numbers = #tpu.dot_dimension_numbers<[1], [0], [0], [1], [0, 0, 1, 1], [], []>} : vector<8x128xf32>, vector<128x32xf32>, vector<8x32xf32> -> vector<8x32xf32>
      %491 = arith.index_cast %arg29 : i32 to index
      %c0_170 = arith.constant 0 : index
      %c0_171 = arith.constant 0 : index
      %492 = vector.load %arg23[%491, %c0_170, %c0_171] : memref<8x1x32xf32, #tpu.memory_space<vmem>>, vector<1x1x32xf32>
      %493 = vector.shape_cast %492 : vector<1x1x32xf32> to vector<1x32xf32>
      %494 = vector.broadcast %493 : vector<1x32xf32> to vector<8x32xf32>
      %495 = arith.addf %490, %494 : vector<8x32xf32>
      %496 = arith.addf %475, %495 : vector<8x32xf32>
      %497 = arith.index_cast %arg29 : i32 to index
      %c0_172 = arith.constant 0 : index
      %c0_173 = arith.constant 0 : index
      %498 = vector.load %arg24[%497, %c0_172, %c0_173] : memref<8x1x32xf32, #tpu.memory_space<vmem>>, vector<1x1x32xf32>
      %499 = vector.shape_cast %498 : vector<1x1x32xf32> to vector<1x32xf32>
      %500 = arith.index_cast %arg29 : i32 to index
      %c0_174 = arith.constant 0 : index
      %c0_175 = arith.constant 0 : index
      %501 = vector.load %arg25[%500, %c0_174, %c0_175] : memref<8x1x32xf32, #tpu.memory_space<vmem>>, vector<1x1x32xf32>
      %502 = vector.shape_cast %501 : vector<1x1x32xf32> to vector<1x32xf32>
      %cst_176 = arith.constant dense<0.000000e+00> : vector<8xf32>
      %503 = vector.multi_reduction <add>, %496, %cst_176 [1] : vector<8x32xf32> to vector<8xf32>
      %504 = vector.shape_cast %503 : vector<8xf32> to vector<8x1xf32>
      %cst_177 = arith.constant 3.200000e+01 : f32
      %505 = vector.broadcast %cst_177 : f32 to vector<8x1xf32>
      %506 = arith.divf %504, %505 : vector<8x1xf32>
      %507 = vector.broadcast %506 : vector<8x1xf32> to vector<8x32xf32>
      %508 = arith.subf %496, %507 : vector<8x32xf32>
      %509 = arith.mulf %508, %508 : vector<8x32xf32>
      %cst_178 = arith.constant dense<0.000000e+00> : vector<8xf32>
      %510 = vector.multi_reduction <add>, %509, %cst_178 [1] : vector<8x32xf32> to vector<8xf32>
      %511 = vector.shape_cast %510 : vector<8xf32> to vector<8x1xf32>
      %cst_179 = arith.constant 3.200000e+01 : f32
      %512 = vector.broadcast %cst_179 : f32 to vector<8x1xf32>
      %513 = arith.divf %511, %512 : vector<8x1xf32>
      %cst_180 = arith.constant 9.99999974E-6 : f32
      %514 = vector.broadcast %cst_180 : f32 to vector<8x1xf32>
      %515 = arith.addf %513, %514 : vector<8x1xf32>
      %516 = math.rsqrt %515 : vector<8x1xf32>
      %517 = vector.broadcast %516 : vector<8x1xf32> to vector<8x32xf32>
      %518 = arith.mulf %508, %517 : vector<8x32xf32>
      %519 = vector.broadcast %499 : vector<1x32xf32> to vector<8x32xf32>
      %520 = arith.mulf %518, %519 : vector<8x32xf32>
      %521 = vector.broadcast %502 : vector<1x32xf32> to vector<8x32xf32>
      %522 = arith.addf %520, %521 : vector<8x32xf32>
      scf.yield %522 : vector<8x32xf32>
    }
    %c8_i32_13 = arith.constant 8 : i32
    %19 = arith.addf %18, %8 : vector<8x32xf32>
    %c0_14 = arith.constant 0 : index
    %c0_15 = arith.constant 0 : index
    %20 = vector.load %arg26[%c0_14, %c0_15] : memref<32x128xf32, #tpu.memory_space<vmem>>, vector<32x128xf32>
    %cst_16 = arith.constant dense<0.000000e+00> : vector<8x128xf32>
    %21 = tpu.matmul %19, %20, %cst_16 {dimension_numbers = #tpu.dot_dimension_numbers<[1], [0], [0], [1], [0, 0, 1, 1], [], []>} : vector<8x32xf32>, vector<32x128xf32>, vector<8x128xf32> -> vector<8x128xf32>
    %c0_17 = arith.constant 0 : index
    %c0_18 = arith.constant 0 : index
    %22 = vector.load %arg27[%c0_17, %c0_18] : memref<1x128xf32, #tpu.memory_space<vmem>>, vector<1x128xf32>
    %23 = vector.broadcast %22 : vector<1x128xf32> to vector<8x128xf32>
    %24 = arith.addf %21, %23 : vector<8x128xf32>
    %c0_19 = arith.constant 0 : index
    %c0_20 = arith.constant 0 : index
    %c0_21 = arith.constant 0 : index
    %25 = vector.load %arg28[%c0_19, %c0_20, %c0_21] : memref<1x8x128xf32, #tpu.memory_space<vmem>>, vector<1x8x128xf32>
    %26 = vector.shape_cast %25 : vector<1x8x128xf32> to vector<8x128xf32>
    %27 = vector.shape_cast %24 : vector<8x128xf32> to vector<1x8x128xf32>
    tpu.vector_store %arg28[%c0_19, %c0_20, %c0_21], %27 {strides = array<i32>} : memref<1x8x128xf32, #tpu.memory_space<vmem>>, vector<1x8x128xf32>,
    return
  }
  func.func @transform_0(%arg0: i32) -> (i32, i32, i32) {
    %c0_i32 = arith.constant 0 : i32
    %c0_i32_0 = arith.constant 0 : i32
    %c0_i32_1 = arith.constant 0 : i32
    return %arg0, %c0_i32, %c0_i32_0 : i32, i32, i32
  }
  func.func @transform_1(%arg0: i32) -> (i32, i32, i32) {
    %c0_i32 = arith.constant 0 : i32
    %c0_i32_0 = arith.constant 0 : i32
    %c0_i32_1 = arith.constant 0 : i32
    return %arg0, %c0_i32, %c0_i32_0 : i32, i32, i32
  }
  func.func @transform_2(%arg0: i32) -> (i32, i32) {
    %c0_i32 = arith.constant 0 : i32
    %c0_i32_0 = arith.constant 0 : i32
    %c0_i32_1 = arith.constant 0 : i32
    return %c0_i32, %c0_i32_0 : i32, i32
  }
  func.func @transform_3(%arg0: i32) -> (i32, i32) {
    %c0_i32 = arith.constant 0 : i32
    %c0_i32_0 = arith.constant 0 : i32
    %c0_i32_1 = arith.constant 0 : i32
    return %c0_i32, %c0_i32_0 : i32, i32
  }
  func.func @transform_4(%arg0: i32) -> (i32, i32) {
    %c0_i32 = arith.constant 0 : i32
    %c0_i32_0 = arith.constant 0 : i32
    %c0_i32_1 = arith.constant 0 : i32
    return %c0_i32, %c0_i32_0 : i32, i32
  }
  func.func @transform_5(%arg0: i32) -> (i32, i32, i32) {
    %c0_i32 = arith.constant 0 : i32
    %c0_i32_0 = arith.constant 0 : i32
    %c0_i32_1 = arith.constant 0 : i32
    %c0_i32_2 = arith.constant 0 : i32
    return %c0_i32, %c0_i32_0, %c0_i32_1 : i32, i32, i32
  }
  func.func @transform_6(%arg0: i32) -> (i32, i32, i32) {
    %c0_i32 = arith.constant 0 : i32
    %c0_i32_0 = arith.constant 0 : i32
    %c0_i32_1 = arith.constant 0 : i32
    %c0_i32_2 = arith.constant 0 : i32
    return %c0_i32, %c0_i32_0, %c0_i32_1 : i32, i32, i32
  }
  func.func @transform_7(%arg0: i32) -> (i32, i32, i32) {
    %c0_i32 = arith.constant 0 : i32
    %c0_i32_0 = arith.constant 0 : i32
    %c0_i32_1 = arith.constant 0 : i32
    %c0_i32_2 = arith.constant 0 : i32
    return %c0_i32, %c0_i32_0, %c0_i32_1 : i32, i32, i32
  }
  func.func @transform_8(%arg0: i32) -> (i32, i32, i32) {
    %c0_i32 = arith.constant 0 : i32
    %c0_i32_0 = arith.constant 0 : i32
    %c0_i32_1 = arith.constant 0 : i32
    %c0_i32_2 = arith.constant 0 : i32
    return %c0_i32, %c0_i32_0, %c0_i32_1 : i32, i32, i32
  }
  func.func @transform_9(%arg0: i32) -> (i32, i32, i32) {
    %c0_i32 = arith.constant 0 : i32
    %c0_i32_0 = arith.constant 0 : i32
    %c0_i32_1 = arith.constant 0 : i32
    %c0_i32_2 = arith.constant 0 : i32
    return %c0_i32, %c0_i32_0, %c0_i32_1 : i32, i32, i32
  }
  func.func @transform_10(%arg0: i32) -> (i32, i32, i32) {
    %c0_i32 = arith.constant 0 : i32
    %c0_i32_0 = arith.constant 0 : i32
    %c0_i32_1 = arith.constant 0 : i32
    %c0_i32_2 = arith.constant 0 : i32
    return %c0_i32, %c0_i32_0, %c0_i32_1 : i32, i32, i32
  }
  func.func @transform_11(%arg0: i32) -> (i32, i32, i32) {
    %c0_i32 = arith.constant 0 : i32
    %c0_i32_0 = arith.constant 0 : i32
    %c0_i32_1 = arith.constant 0 : i32
    %c0_i32_2 = arith.constant 0 : i32
    return %c0_i32, %c0_i32_0, %c0_i32_1 : i32, i32, i32
  }
  func.func @transform_12(%arg0: i32) -> (i32, i32, i32) {
    %c0_i32 = arith.constant 0 : i32
    %c0_i32_0 = arith.constant 0 : i32
    %c0_i32_1 = arith.constant 0 : i32
    %c0_i32_2 = arith.constant 0 : i32
    return %c0_i32, %c0_i32_0, %c0_i32_1 : i32, i32, i32
  }
  func.func @transform_13(%arg0: i32) -> (i32, i32, i32) {
    %c0_i32 = arith.constant 0 : i32
    %c0_i32_0 = arith.constant 0 : i32
    %c0_i32_1 = arith.constant 0 : i32
    %c0_i32_2 = arith.constant 0 : i32
    return %c0_i32, %c0_i32_0, %c0_i32_1 : i32, i32, i32
  }
  func.func @transform_14(%arg0: i32) -> (i32, i32, i32) {
    %c0_i32 = arith.constant 0 : i32
    %c0_i32_0 = arith.constant 0 : i32
    %c0_i32_1 = arith.constant 0 : i32
    %c0_i32_2 = arith.constant 0 : i32
    return %c0_i32, %c0_i32_0, %c0_i32_1 : i32, i32, i32
  }
  func.func @transform_15(%arg0: i32) -> (i32, i32, i32) {
    %c0_i32 = arith.constant 0 : i32
    %c0_i32_0 = arith.constant 0 : i32
    %c0_i32_1 = arith.constant 0 : i32
    %c0_i32_2 = arith.constant 0 : i32
    return %c0_i32, %c0_i32_0, %c0_i32_1 : i32, i32, i32
  }
  func.func @transform_16(%arg0: i32) -> (i32, i32, i32) {
    %c0_i32 = arith.constant 0 : i32
    %c0_i32_0 = arith.constant 0 : i32
    %c0_i32_1 = arith.constant 0 : i32
    %c0_i32_2 = arith.constant 0 : i32
    return %c0_i32, %c0_i32_0, %c0_i32_1 : i32, i32, i32
  }
  func.func @transform_17(%arg0: i32) -> (i32, i32, i32) {
    %c0_i32 = arith.constant 0 : i32
    %c0_i32_0 = arith.constant 0 : i32
    %c0_i32_1 = arith.constant 0 : i32
    %c0_i32_2 = arith.constant 0 : i32
    return %c0_i32, %c0_i32_0, %c0_i32_1 : i32, i32, i32
  }
  func.func @transform_18(%arg0: i32) -> (i32, i32, i32) {
    %c0_i32 = arith.constant 0 : i32
    %c0_i32_0 = arith.constant 0 : i32
    %c0_i32_1 = arith.constant 0 : i32
    %c0_i32_2 = arith.constant 0 : i32
    return %c0_i32, %c0_i32_0, %c0_i32_1 : i32, i32, i32
  }
  func.func @transform_19(%arg0: i32) -> (i32, i32, i32) {
    %c0_i32 = arith.constant 0 : i32
    %c0_i32_0 = arith.constant 0 : i32
    %c0_i32_1 = arith.constant 0 : i32
    %c0_i32_2 = arith.constant 0 : i32
    return %c0_i32, %c0_i32_0, %c0_i32_1 : i32, i32, i32
  }
  func.func @transform_20(%arg0: i32) -> (i32, i32, i32) {
    %c0_i32 = arith.constant 0 : i32
    %c0_i32_0 = arith.constant 0 : i32
    %c0_i32_1 = arith.constant 0 : i32
    %c0_i32_2 = arith.constant 0 : i32
    return %c0_i32, %c0_i32_0, %c0_i32_1 : i32, i32, i32
  }
  func.func @transform_21(%arg0: i32) -> (i32, i32, i32) {
    %c0_i32 = arith.constant 0 : i32
    %c0_i32_0 = arith.constant 0 : i32
    %c0_i32_1 = arith.constant 0 : i32
    %c0_i32_2 = arith.constant 0 : i32
    return %c0_i32, %c0_i32_0, %c0_i32_1 : i32, i32, i32
  }
  func.func @transform_22(%arg0: i32) -> (i32, i32, i32) {
    %c0_i32 = arith.constant 0 : i32
    %c0_i32_0 = arith.constant 0 : i32
    %c0_i32_1 = arith.constant 0 : i32
    %c0_i32_2 = arith.constant 0 : i32
    return %c0_i32, %c0_i32_0, %c0_i32_1 : i32, i32, i32
  }
  func.func @transform_23(%arg0: i32) -> (i32, i32, i32) {
    %c0_i32 = arith.constant 0 : i32
    %c0_i32_0 = arith.constant 0 : i32
    %c0_i32_1 = arith.constant 0 : i32
    %c0_i32_2 = arith.constant 0 : i32
    return %c0_i32, %c0_i32_0, %c0_i32_1 : i32, i32, i32
  }
  func.func @transform_24(%arg0: i32) -> (i32, i32, i32) {
    %c0_i32 = arith.constant 0 : i32
    %c0_i32_0 = arith.constant 0 : i32
    %c0_i32_1 = arith.constant 0 : i32
    %c0_i32_2 = arith.constant 0 : i32
    return %c0_i32, %c0_i32_0, %c0_i32_1 : i32, i32, i32
  }
  func.func @transform_25(%arg0: i32) -> (i32, i32) {
    %c0_i32 = arith.constant 0 : i32
    %c0_i32_0 = arith.constant 0 : i32
    %c0_i32_1 = arith.constant 0 : i32
    return %c0_i32, %c0_i32_0 : i32, i32
  }
  func.func @transform_26(%arg0: i32) -> (i32, i32) {
    %c0_i32 = arith.constant 0 : i32
    %c0_i32_0 = arith.constant 0 : i32
    %c0_i32_1 = arith.constant 0 : i32
    return %c0_i32, %c0_i32_0 : i32, i32
  }
  func.func @transform_27(%arg0: i32) -> (i32, i32, i32) {
    %c0_i32 = arith.constant 0 : i32
    %c0_i32_0 = arith.constant 0 : i32
    %c0_i32_1 = arith.constant 0 : i32
    return %arg0, %c0_i32, %c0_i32_0 : i32, i32, i32
  }
}

</mosaic_0001>

<bundles_post_ra>
// kernel: forward.2
= control target key start
LH: loop header
LB: loop body
LE: loop exit
PB: predicated region body
PF: predicated region fallthrough
CT: control target
= control target key end

     0   :  { %s2447_s21 = smov 0   ;;  %s2878_s0 = inlined_call_operand.vmem [shape: f32[2,16,4], index: 0, kind: input, shape index: {}]   ;;  %s2879_s1 = inlined_call_operand.vmem [shape: f32[14,32], index: 1, kind: input, shape index: {}]   ;;  %s2880_s2 = inlined_call_operand.vmem [shape: f32[3,4,32], index: 2, kind: input, shape index: {}]   ;;  %s2881_s3 = inlined_call_operand.vmem [shape: f32[1,32], index: 3, kind: input, shape index: {}]   ;;  %s2882_s4 = inlined_call_operand.vmem [shape: f32[9,32,96], index: 4, kind: input, shape index: {}]   ;;  %s2883_s5 = inlined_call_operand.vmem [shape: f32[9,1,96], index: 5, kind: input, shape index: {}]   ;;  %s2884_s6 = inlined_call_operand.vmem [shape: f32[9,32,32], index: 6, kind: input, shape index: {}]   ;;  %s2885_s7 = inlined_call_operand.vmem [shape: f32[9,1,32], index: 7, kind: input, shape index: {}]   ;;  %s2886_s8 = inlined_call_operand.vmem [shape: f32[9,1,32], index: 8, kind: input, shape index: {}]   ;;  %s2887_s9 = inlined_call_operand.vmem [shape: f32[9,1,32], index: 9, kind: input, shape index: {}]   ;;  %s2888_s10 = inlined_call_operand.vmem [shape: f32[9,32,128], index: 10, kind: input, shape index: {}]   ;;  %s2889_s11 = inlined_call_operand.vmem [shape: f32[9,1,128], index: 11, kind: input, shape index: {}]   ;;  %s2890_s12 = inlined_call_operand.vmem [shape: f32[9,128,32], index: 12, kind: input, shape index: {}]   ;;  %s2891_s13 = inlined_call_operand.vmem [shape: f32[9,1,32], index: 13, kind: input, shape index: {}]   ;;  %s2892_s14 = inlined_call_operand.vmem [shape: f32[9,1,32], index: 14, kind: input, shape index: {}]   ;;  %s2893_s15 = inlined_call_operand.vmem [shape: f32[9,1,32], index: 15, kind: input, shape index: {}]   ;;  %s2894_s16 = inlined_call_operand.vmem [shape: f32[2,14,32], index: 16, kind: output, shape index: {}]  }
   0x1   :  { %2895 = sst [smem:[#allocation2_spill]] %s2878_s0 }
   0x2 LB: > { %s2056_s22 = sadd.s32 4294967295, %s2324_s21   ;;  %p2060_p0 = scmp.ge.s32.totalorder %s2324_s21, 1  ;;  %s2324_s21 = sphi %s2447_s21, %s26_s21  }
   0x3   : > { %p462_p1 = scmp.lt.s32.totalorder %s2324_s21, 3 }
   0x5   : > { %p463_p2 = pnand %p2060_p0, %p462_p1 }
   0x6   : > { %p512_p3 = scmp.lt.s32.totalorder (!%p463_p2), %s2056_s22, 1  ;;  %s2896_s17 = sld [smem:[#allocation2_spill]] (!%p463_p2) }
   0x7   : > { %466 = sbr.rel (%p463_p2) target bundleno = 4073 (0xfe9), region = 84 }
   0xc   : > { %vm538_vm0 = vcmask 1043456   ;;  %v2072_v0 = vld [vmem:[%s2880_s2 + $0x8] sm:$0xf]  ;;  %v2065_v1 = vld [vmem:[%s2880_s2 + $0x4] sm:$0xf]  ;;  %s2900_s22 = smov (!%p512_p3, %s2056_s22), 1 }
   0xd   : > { %2073 = vmatpush.msk.msra.mxu2 %vm538_vm0, %v2072_v0  ;;  %v524_v2 = vld [vmem:[%s2880_s2] sm:$0xf]  ;;  %2066 = vmatpush.msk.msra.mxu0 %vm538_vm0, %v2065_v1  ;;  %s2164_s29 = sshll.u32 %s2900_s22, 4  ;;  %vm533_vm1 = vcmask 31744   ;;  %vm597_vm2 = vcmask 1045504   ;;  %vm529_vm3 = vcmask 1046528  }
   0xe   : > { %2069 = vmatpush.msk.msra.mxu1 %vm538_vm0, %v524_v2  ;;  %2166 = vmatpush.msk.msra.mxu3 %vm538_vm0, %v2065_v1  ;;  %s516_s18 = scalar_lea.vmem %s2896_s17, %s2164_s29  ;;  %s2474_s23 = scalar_lea.vmem %s2894_s16, %s2164_s29  ;;  %v639_v11 = vld [vmem:[%s2879_s1] sm:$0xff]   ;;  %v640_v12 = vld [vmem:[%s2879_s1 + $0x8] sm:$0x3f]  }
   0xf   : > { %v522_v3 = vld [vmem:[%s516_s18] sm:$0xff]  ;;  %v523_v4 = vld [vmem:[%s516_s18 + $0x8] sm:$0xff]  ;;  %s2500_s29 = smov 0  }
  0x10   : > { %v598_v5 = vrot.slane %v522_v3, 2  ;;  %v599_v6 = vrot.slane %v523_v4, 2  ;;  %v530_v7 = vrot.slane %v522_v3, 1  ;;  %v531_v8 = vrot.slane %v523_v4, 1  ;;  %2070 = vmatmul.msk.f32.vlgmr.msra.gmra.mxu1 %vm533_vm1, %v522_v3  ;;  %v2223_v16 = vld [vmem:[%s2881_s3] ss:$0 sm:$0xff] }
  0x12   : > { %v600_v9 = vsel %vm597_vm2, %v598_v5, %v599_v6  ;;  %v532_v10 = vsel %vm529_vm3, %v530_v7, %v531_v8  ;;  %2068 = vmatmul.msk.f32.vlgmr.msra.gmra.mxu3 %vm533_vm1, %v531_v8 }
  0x13   : > { %2074 = vmatmul.msk.f32.vlgmr.msra.gmra.mxu2 %vm533_vm1, %v600_v9  ;;  %2067 = vmatmul.msk.f32.vlgmr.msra.gmra.mxu0 %vm533_vm1, %v532_v10 }
  0x18   : > { %2071 = vmatmul.msk.f32.gmra.mxu1 %vm533_vm1, %v523_v4 }
  0x1b   : > { %2075 = vmatmul.msk.f32.gmra.mxu2 %vm533_vm1, %v599_v6 }
  0x8d   : > { %v589_v13 = vpop.f32.mrf.mxu1 }
  0x90   : > { %v559_v14 = vpop.f32.mrf.mxu0 }
  0x91   : > { %v590_v15 = vadd.f32 %v589_v13, %v559_v14 }
  0x95   : > { %v562_v19 = vpop.f32.mrf.mxu3  ;;  %v592_v20 = vpop.f32.mrf.mxu1 }
  0x96   : > { %v625_v17 = vpop.f32.mrf.mxu2  ;;  %v593_v22 = vadd.f32 %v592_v20, %v562_v19 }
  0x97   : > { %v631_v18 = vadd.f32 %v625_v17, %v590_v15 }
  0x99   : > { %v2492_v21 = vadd.f32 %v2223_v16, %v631_v18 }
  0x9e   : > { %v628_v23 = vpop.f32.mrf.mxu2 }
  0x9f   : > { %v632_v24 = vadd.f32 %v628_v23, %v593_v22 }
  0xa1   : > { %v2494_v25 = vadd.f32 %v2223_v16, %v632_v24 }
  0xa2 LB: >> { %s2512_s30 = sshll.u32 %s2336_s29, 5  ;;  %s655_s18 = scalar_lea.vmem %s2883_s5, %s2336_s29  ;;  %vm660_vm4 = vcmask 261120   ;;  %vm742_vm5 = vcmask 113664   ;;  %vm746_vm6 = vcmask 111616   ;;  %vm1762_vm7 = vcmask 259072   ;;  %s2336_s29 = sphi %s2500_s29, %s646_s29   ;;  %v2332_v11 = vphi %v639_v11, %v2898_v11   ;;  %v2328_v12 = vphi %v640_v12, %v2897_v12  }
  0xa3   : >> { %s650_s22 = scalar_lea.vmem %s2882_s4, %s2512_s30  ;;  %v2224_v31 = vld [vmem:[%s655_s18] ss:$0 sm:$0xff]  ;;  %s2338_s24 = smov 96  }
  0xa4   : >> { %v654_v26 = vld [vmem:[%s650_s22 + $0x18] sm:$0xff]  ;;  %v653_v27 = vld [vmem:[%s650_s22 + $0x10] sm:$0xff]  ;;  %v652_v28 = vld [vmem:[%s650_s22 + $0x8] sm:$0xff]  ;;  %s2339_s25 = smov 64   ;;  %s2340_s26 = smov 124  }
  0xa5   : >> { %679 = vmatpush.msra.mxu1 %v654_v26  ;;  %v651_v29 = vld [vmem:[%s650_s22] sm:$0xff]  ;;  %s2341_s27 = smov 60   ;;  %s2342_s28 = smov 92  }
  0xa6   : >> { %s2560_s18 = scalar_lea.vmem %s2884_s6, %s2512_s30  ;;  %s695_s22 = scalar_lea.vmem %s2885_s7, %s2336_s29 }
  0xa7   : >> { %680 = vmatpush.msra.mxu1 %v653_v27  ;;  %v691_v53 = vld [vmem:[%s2560_s18] sm:$0xff]  ;;  %s2347_s17 = smov 56   ;;  %s2348_s19 = smov 52  }
  0xa8   : >> { %2086 = vmatpush.msk.msra.mxu3 %vm538_vm0, %v691_v53  ;;  %v933_v16 = vrot.slane %v691_v53, 4  ;;  %s2349_s20 = smov 76   ;;  %s2356_s0 = smov 104  }
  0xa9   : >> { %681 = vmatpush.msra.mxu1 %v652_v28 }
  0xaa   : >> { %2096 = vmatpush.msk.msra.mxu0 %vm538_vm0, %v933_v16 }
  0xab   : >> { %682 = vmatpush.msra.mxu1 %v651_v29 }
  0xac   : >> { %2077 = vmatmul.msk.f32.vlgmr.msra.gmra.mxu1 %vm660_vm4, %v2332_v11 }
  0xb4   : >> { %2078 = vmatmul.msk.f32.gmra.mxu1 %vm660_vm4, %v2328_v12 }
 0x129   : >> { %v684_v30 = vpop.f32.mrf.mxu1 }
 0x12a   : >> { %v2529_v34 = vadd.f32 %v2224_v31, %v684_v30 }
 0x12c   : >> { %v2535_v37 = vmul.f32 0.5, %v2529_v34 }
 0x131   : >> { %v687_v32 = vpop.f32.mrf.mxu1 }
 0x132   : >> { %v2526_v33 = vadd.f32 %v2224_v31, %v687_v32 }
 0x134   : >> { %707 = vrot.lane.b32.xlu0 %v2526_v33, %s2338_s24  ;;  %v2540_v38 = vmul.f32 0.5, %v2526_v33 }
 0x13c   : >> { %705 = vrot.lane.b32.xlu0 %v2529_v34, %s2338_s24  ;;  %s2343_s24 = smov 88  }
 0x1a6   : >> { %v708_v35 = vpop.permute.xlu0 %707 }
 0x1a7   : >> { %2079 = vmatpush.xpose.msk.msrb.mxu1 %vm533_vm1, %v708_v35 }
 0x1ae   : >> { %v706_v36 = vpop.permute.xlu0 %705 }
 0x1af   : >> { %2080 = vmatpush.xpose.msk.msrb.mxu1 %vm533_vm1, %v706_v36 }
 0x1b2   : >> { %2081 = vmatmul.msk.f32.vlgmr.msrb.gmra.mxu1 %vm533_vm1, %v2535_v37 }
 0x1ba   : >> { %2082 = vmatmul.msk.f32.gmra.mxu1 %vm533_vm1, %v2540_v38 }
 0x22f   : >> { %v736_v39 = vpop.f32.mrf.mxu1 }
 0x230   : >> { %v743_v40 = vsel %vm742_vm5, %v736_v39, -inf }
 0x231   : >> { %744 = vmax.xlane.f32.xlu1 %v743_v40 }
 0x237   : >> { %v739_v41 = vpop.f32.mrf.mxu1 }
 0x238   : >> { %v747_v42 = vsel %vm746_vm6, %v739_v41, -inf }
 0x239   : >> { %748 = vmax.xlane.f32.xlu1 %v747_v42 }
 0x252   : >> { %766 = vrot.lane.b32.xlu1 %v2529_v34, %s2339_s25 }
 0x25a   : >> { %836 = vrot.lane.b32.xlu1 %v2535_v37, %s2340_s26 }
 0x2a4   : >> { %v745_v43 = vpop.xlane.xlu1 %744 }
 0x2a5   : >> { %v750_v44 = vsub.f32 %v736_v39, %v745_v43 }
 0x2a7   : >> { %v752_v45 = vmul.f32 1.442695, %v750_v44 }
 0x2a9   : >> { %2232 = vpow2.f32 %v752_v45 }
 0x2ac   : >> { %v749_v46 = vpop.xlane.xlu1 %748 }
 0x2ad   : >> { %v751_v47 = vsub.f32 %v739_v41, %v749_v46 }
 0x2af   : >> { %v2233_v48 = vpop.eup %2232  ;;  %v754_v49 = vmul.f32 1.442695, %v751_v47 }
 0x2b0   : >> { %v756_v50 = vsel %vm742_vm5, %v2233_v48, 0.0 }
 0x2b1   : >> { %2234 = vpow2.f32 %v754_v49  ;;  %757 = vadd.xlane.f32.xlu2 %v756_v50 }
 0x2b7   : >> { %v2235_v51 = vpop.eup %2234 }
 0x2b8   : >> { %v759_v52 = vsel %vm746_vm6, %v2235_v51, 0.0 }
 0x2b9   : >> { %760 = vadd.xlane.f32.xlu0 %v759_v52 }
 0x2c4   : >> { %v767_v58 = vpop.permute.xlu1 %766 }
 0x2c9   : >> { %768 = vrot.lane.b32.xlu2 %v2526_v33, %s2339_s25  ;;  %s2344_s25 = smov 120  }
 0x2cc   : >> { %v837_v3 = vpop.permute.xlu1 %836 }
 0x2cd   : >> { %899 = vrot.lane.b32.xlu0 %v2526_v33, %s2341_s27 }
 0x2d1   : >> { %842 = vrot.lane.b32.xlu2 %v2526_v33, %s2342_s28 }
 0x2d9   : >> { %840 = vrot.lane.b32.xlu2 %v2529_v34, %s2342_s28  ;;  %s2346_s28 = smov 116  }
 0x2e1   : >> { %838 = vrot.lane.b32.xlu2 %v2540_v38, %s2340_s26  ;;  %s2345_s26 = smov 84  }
 0x324   : >> { %v758_v54 = vpop.xlane.xlu2 %757 }
 0x325   : >> { %2236 = vrcp.f32 %v758_v54 }
 0x32b   : >> { %v2237_v55 = vpop.eup %2236 }
 0x32c   : >> { %v769_v56 = vpop.permute.xlu2 %768  ;;  %v761_v57 = vpop.xlane.xlu0 %760  ;;  %v764_v59 = vmul.f32 %v2237_v55, %v2233_v48 }
 0x32d   : >> { %2238 = vrcp.f32 %v761_v57  ;;  %2083 = vmatpush.msk.msra.mxu2 %vm597_vm2, %v769_v56  ;;  %v2225_v56 = vld [vmem:[%s695_s22] ss:$0 sm:$0xff]  ;;  %s2350_s22 = smov 108  }
 0x32f   : >> { %794 = vmatpush.msra.mxu2 %v767_v58 }
 0x330   : >> { %2084 = vmatmul.msk.f32.vlgmr.msra.gmra.mxu2 %vm742_vm5, %v764_v59 }
 0x333   : >> { %v2239_v60 = vpop.eup %2238 }
 0x334   : >> { %v843_v61 = vpop.permute.xlu2 %842  ;;  %v765_v62 = vmul.f32 %v2239_v60, %v2235_v51 }
 0x335   : >> { %2089 = vmatpush.xpose.msk.msrb.mxu3 %vm533_vm1, %v843_v61 }
 0x338   : >> { %2085 = vmatmul.msk.f32.gmra.mxu2 %vm742_vm5, %v765_v62 }
 0x33c   : >> { %v841_v63 = vpop.permute.xlu2 %840 }
 0x33d   : >> { %2090 = vmatpush.xpose.msk.msrb.mxu3 %vm533_vm1, %v841_v63 }
 0x33f   : >> { %v900_v0 = vpop.permute.xlu0 %899 }
 0x340   : >> { %2093 = vmatpush.msk.msrb.mxu2 %vm597_vm2, %v900_v0 }
 0x344   : >> { %v839_v4 = vpop.permute.xlu2 %838 }
 0x3b3   : >> { %v796_v1 = vpop.f32.mrf.mxu2 }
 0x3b4   : >> { %2087 = vmatmul.msk.f32.vlgmr.msra.gmra.mxu3 %vm533_vm1, %v796_v1 }
 0x3bb   : >> { %v799_v2 = vpop.f32.mrf.mxu2 }
 0x3bc   : >> { %2088 = vmatmul.msk.f32.gmra.mxu3 %vm533_vm1, %v799_v2 }
 0x3c4   : >> { %2091 = vmatmul.msk.f32.vlgmr.msrb.gmra.mxu3 %vm533_vm1, %v837_v3 }
 0x3cc   : >> { %2092 = vmatmul.msk.f32.gmra.mxu3 %vm533_vm1, %v839_v4 }
 0x437   : >> { %v2578_v5 = vpop.f32.mrf.mxu3 }
 0x438   : >> { %v834_v57 = vadd.f32 %v2225_v56, %v2578_v5 }
 0x43f   : >> { %v2580_v6 = vpop.f32.mrf.mxu3 }
 0x440   : >> { %v835_v60 = vadd.f32 %v2225_v56, %v2580_v6 }
 0x447   : >> { %v869_v7 = vpop.f32.mrf.mxu3 }
 0x448   : >> { %v875_v8 = vsel %vm742_vm5, %v869_v7, -inf }
 0x449   : >> { %876 = vmax.xlane.f32.xlu1 %v875_v8 }
 0x44f   : >> { %v872_v9 = vpop.f32.mrf.mxu3 }
 0x450   : >> { %v878_v10 = vsel %vm746_vm6, %v872_v9, -inf }
 0x451   : >> { %879 = vmax.xlane.f32.xlu2 %v878_v10 }
 0x462   : >> { %897 = vrot.lane.b32.xlu1 %v2529_v34, %s2341_s27  ;;  %s2355_s27 = smov 72  }
 0x469   : >> { %973 = vrot.lane.b32.xlu2 %v2526_v33, %s2343_s24 }
 0x46a   : >> { %971 = vrot.lane.b32.xlu1 %v2529_v34, %s2343_s24  ;;  %s2351_s24 = smov 80  }
 0x471   : >> { %967 = vrot.lane.b32.xlu2 %v2535_v37, %s2344_s25 }
 0x472   : >> { %1104 = vrot.lane.b32.xlu1 %v2526_v33, %s2345_s26 }
 0x479   : >> { %969 = vrot.lane.b32.xlu2 %v2540_v38, %s2344_s25  ;;  %s2352_s25 = smov 112  }
 0x47a   : >> { %1098 = vrot.lane.b32.xlu1 %v2535_v37, %s2346_s28 }
 0x481   : >> { %1100 = vrot.lane.b32.xlu2 %v2540_v38, %s2346_s28  ;;  %s2354_s28 = smov 44  }
 0x4bc   : >> { %v877_v13 = vpop.xlane.xlu1 %876 }
 0x4bd   : >> { %v881_v14 = vsub.f32 %v869_v7, %v877_v13 }
 0x4bf   : >> { %v883_v15 = vmul.f32 1.442695, %v881_v14 }
 0x4c1   : >> { %2240 = vpow2.f32 %v883_v15 }
 0x4c4   : >> { %v880_v17 = vpop.xlane.xlu2 %879 }
 0x4c5   : >> { %v882_v18 = vsub.f32 %v872_v9, %v880_v17 }
 0x4c7   : >> { %v2241_v19 = vpop.eup %2240  ;;  %v885_v20 = vmul.f32 1.442695, %v882_v18 }
 0x4c8   : >> { %v887_v22 = vsel %vm742_vm5, %v2241_v19, 0.0 }
 0x4c9   : >> { %2242 = vpow2.f32 %v885_v20  ;;  %888 = vadd.xlane.f32.xlu0 %v887_v22  ;;  %v692_v22 = vld [vmem:[%s2560_s18 + $0x8] sm:$0xff] }
 0x4cc   : >> { %v974_v23 = vpop.permute.xlu2 %973 }
 0x4cd   : >> { %2099 = vmatpush.xpose.msk.msra.mxu1 %vm533_vm1, %v974_v23 }
 0x4cf   : >> { %v2243_v24 = vpop.eup %2242 }
 0x4d0   : >> { %v890_v26 = vsel %vm746_vm6, %v2243_v24, 0.0 }
 0x4d1   : >> { %891 = vadd.xlane.f32.xlu0 %v890_v26 }
 0x4d4   : >> { %v898_v27 = vpop.permute.xlu1 %897  ;;  %v968_v29 = vpop.permute.xlu2 %967 }
 0x4d5   : >> { %925 = vmatpush.msrb.mxu2 %v898_v27  ;;  %v1195_v27 = vrot.slane %v692_v22, 4 }
 0x4d7   : >> { %2106 = vmatpush.msk.msra.mxu2 %vm538_vm0, %v692_v22 }
 0x4dc   : >> { %v972_v28 = vpop.permute.xlu1 %971  ;;  %v970_v31 = vpop.permute.xlu2 %969 }
 0x4dd   : >> { %2100 = vmatpush.xpose.msk.msra.mxu1 %vm533_vm1, %v972_v28 }
 0x4e0   : >> { %2101 = vmatmul.msk.f32.vlgmr.msra.gmra.mxu1 %vm533_vm1, %v968_v29 }
 0x4e4   : >> { %v1105_v30 = vpop.permute.xlu1 %1104  ;;  %v1101_v55 = vpop.permute.xlu2 %1100 }
 0x4e5   : >> { %2109 = vmatpush.xpose.msk.msrb.mxu0 %vm533_vm1, %v1105_v30  ;;  %1102 = vrot.lane.b32.xlu0 %v2529_v34, %s2345_s26  ;;  %s2353_s26 = smov 48  }
 0x4e8   : >> { %2102 = vmatmul.msk.f32.gmra.mxu1 %vm533_vm1, %v970_v31 }
 0x4ec   : >> { %v1099_v48 = vpop.permute.xlu1 %1098 }
 0x53c   : >> { %v889_v32 = vpop.xlane.xlu0 %888 }
 0x53d   : >> { %2244 = vrcp.f32 %v889_v32 }
 0x543   : >> { %v2245_v35 = vpop.eup %2244 }
 0x544   : >> { %v892_v36 = vpop.xlane.xlu0 %891  ;;  %v895_v39 = vmul.f32 %v2245_v35, %v2241_v19 }
 0x545   : >> { %2246 = vrcp.f32 %v892_v36 }
 0x546   : >> { %2094 = vmatmul.msk.f32.vlgmr.msrb.gmra.mxu2 %vm742_vm5, %v895_v39 }
 0x54b   : >> { %v2247_v40 = vpop.eup %2246 }
 0x54c   : >> { %v896_v41 = vmul.f32 %v2247_v40, %v2243_v24 }
 0x54e   : >> { %2095 = vmatmul.msk.f32.gmra.mxu2 %vm742_vm5, %v896_v41 }
 0x557   : >> { %v1103_v42 = vpop.permute.xlu0 %1102 }
 0x558   : >> { %2110 = vmatpush.xpose.msk.msrb.mxu0 %vm533_vm1, %v1103_v42 }
 0x55d   : >> { %v1000_v43 = vpop.f32.mrf.mxu1 }
 0x55e   : >> { %v1006_v44 = vsel %vm742_vm5, %v1000_v43, -inf }
 0x55f   : >> { %1007 = vmax.xlane.f32.xlu1 %v1006_v44 }
 0x565   : >> { %v1003_v45 = vpop.f32.mrf.mxu1 }
 0x566   : >> { %v1009_v46 = vsel %vm746_vm6, %v1003_v45, -inf }
 0x567   : >> { %1010 = vmax.xlane.f32.xlu2 %v1009_v46 }
 0x5c9   : >> { %v927_v47 = vpop.f32.mrf.mxu2 }
 0x5ca   : >> { %2097 = vmatmul.msk.f32.vlgmr.msra.gmra.mxu0 %vm533_vm1, %v927_v47 }
 0x5d1   : >> { %v930_v49 = vpop.f32.mrf.mxu2 }
 0x5d2   : >> { %2098 = vmatmul.msk.f32.gmra.mxu0 %vm533_vm1, %v930_v49  ;;  %v1008_v50 = vpop.xlane.xlu1 %1007 }
 0x5d3   : >> { %v1012_v51 = vsub.f32 %v1000_v43, %v1008_v50 }
 0x5d5   : >> { %v1014_v52 = vmul.f32 1.442695, %v1012_v51 }
 0x5d7   : >> { %2248 = vpow2.f32 %v1014_v52 }
 0x5da   : >> { %2111 = vmatmul.msk.f32.vlgmr.msrb.gmra.mxu0 %vm533_vm1, %v1099_v48  ;;  %v1011_v63 = vpop.xlane.xlu2 %1010 }
 0x5db   : >> { %v1013_v0 = vsub.f32 %v1003_v45, %v1011_v63 }
 0x5dd   : >> { %v2249_v53 = vpop.eup %2248  ;;  %v1016_v3 = vmul.f32 1.442695, %v1013_v0 }
 0x5de   : >> { %v1018_v54 = vsel %vm742_vm5, %v2249_v53, 0.0 }
 0x5df   : >> { %1019 = vadd.xlane.f32.xlu2 %v1018_v54  ;;  %2250 = vpow2.f32 %v1016_v3 }
 0x5e2   : >> { %2112 = vmatmul.msk.f32.gmra.mxu0 %vm533_vm1, %v1101_v55 }
 0x5e5   : >> { %v2251_v5 = vpop.eup %2250 }
 0x5e6   : >> { %v1021_v8 = vsel %vm746_vm6, %v2251_v5, 0.0 }
 0x647   : >> { %v959_v58 = vpop.f32.mrf.mxu0 }
 0x648   : >> { %v2620_v59 = vadd.f32 %v959_v58, %v834_v57 }
 0x64f   : >> { %v962_v61 = vpop.f32.mrf.mxu0 }
 0x650   : >> { %v2623_v62 = vadd.f32 %v962_v61, %v835_v60 }
 0x652   : >> { %v1020_v23 = vpop.xlane.xlu2 %1019 }
 0x657   : >> { %v1131_v1 = vpop.f32.mrf.mxu0 }
 0x658   : >> { %v1137_v2 = vsel %vm742_vm5, %v1131_v1, -inf }
 0x659   : >> { %1138 = vmax.xlane.f32.xlu0 %v1137_v2 }
 0x65f   : >> { %v1134_v4 = vpop.f32.mrf.mxu0 }
 0x660   : >> { %v1140_v7 = vsel %vm746_vm6, %v1134_v4, -inf }
 0x661   : >> { %1141 = vmax.xlane.f32.xlu1 %v1140_v7 }
 0x669   : >> { %1022 = vadd.xlane.f32.xlu1 %v1021_v8 }
 0x66d   : >> { %1030 = vrot.lane.b32.xlu0 %v2526_v33, %s2347_s17 }
 0x682   : >> { %1028 = vrot.lane.b32.xlu1 %v2529_v34, %s2347_s17  ;;  %s2357_s17 = smov 68  }
 0x68a   : >> { %1159 = vrot.lane.b32.xlu1 %v2529_v34, %s2348_s19 }
 0x692   : >> { %1366 = vrot.lane.b32.xlu1 %v2526_v33, %s2349_s20 }
 0x69a   : >> { %1364 = vrot.lane.b32.xlu1 %v2529_v34, %s2349_s20  ;;  %s2359_s20 = smov 36  }
 0x6a2   : >> { %1360 = vrot.lane.b32.xlu1 %v2535_v37, %s2350_s22 }
 0x6cc   : >> { %v1139_v6 = vpop.xlane.xlu0 %1138 }
 0x6cd   : >> { %v1143_v9 = vsub.f32 %v1131_v1, %v1139_v6 }
 0x6cf   : >> { %v1145_v10 = vmul.f32 1.442695, %v1143_v9 }
 0x6d1   : >> { %2252 = vpow2.f32 %v1145_v10  ;;  %v693_v10 = vld [vmem:[%s2560_s18 + $0x10] sm:$0xff] }
 0x6d4   : >> { %v1142_v13 = vpop.xlane.xlu1 %1141 }
 0x6d5   : >> { %v1144_v14 = vsub.f32 %v1134_v4, %v1142_v13 }
 0x6d7   : >> { %v2253_v15 = vpop.eup %2252  ;;  %v1147_v16 = vmul.f32 1.442695, %v1144_v14 }
 0x6d8   : >> { %v1149_v17 = vsel %vm742_vm5, %v2253_v15, 0.0 }
 0x6d9   : >> { %2254 = vpow2.f32 %v1147_v16  ;;  %1150 = vadd.xlane.f32.xlu2 %v1149_v17 }
 0x6da   : >> { %2256 = vrcp.f32 %v1020_v23 }
 0x6dc   : >> { %v1023_v24 = vpop.xlane.xlu1 %1022 }
 0x6dd   : >> { %2258 = vrcp.f32 %v1023_v24 }
 0x6df   : >> { %v2255_v18 = vpop.eup %2254  ;;  %v1031_v19 = vpop.permute.xlu0 %1030 }
 0x6e0   : >> { %2103 = vmatpush.msk.msra.mxu3 %vm597_vm2, %v1031_v19  ;;  %v1152_v20 = vsel %vm746_vm6, %v2255_v18, 0.0  ;;  %v2257_v26 = vpop.eup %2256 }
 0x6e1   : >> { %1153 = vadd.xlane.f32.xlu0 %v1152_v20  ;;  %v1026_v28 = vmul.f32 %v2257_v26, %v2249_v53 }
 0x6e3   : >> { %v2259_v30 = vpop.eup %2258 }
 0x6e4   : >> { %v1027_v32 = vmul.f32 %v2259_v30, %v2251_v5 }
 0x6f1   : >> { %1161 = vrot.lane.b32.xlu2 %v2526_v33, %s2348_s19  ;;  %s2358_s19 = smov 100  }
 0x6f4   : >> { %v1029_v29 = vpop.permute.xlu1 %1028 }
 0x6f5   : >> { %1362 = vrot.lane.b32.xlu0 %v2540_v38, %s2350_s22  ;;  %1056 = vmatpush.msra.mxu3 %v1029_v29  ;;  %s2360_s22 = smov 40  }
 0x6f6   : >> { %2104 = vmatmul.msk.f32.vlgmr.msra.gmra.mxu3 %vm742_vm5, %v1026_v28 }
 0x6f7   : >> { %2116 = vmatpush.msk.msrb.mxu3 %vm538_vm0, %v1195_v27 }
 0x6f9   : >> { %1235 = vrot.lane.b32.xlu2 %v2526_v33, %s2351_s24 }
 0x6fc   : >> { %v1160_v31 = vpop.permute.xlu1 %1159 }
 0x6fe   : >> { %2105 = vmatmul.msk.f32.gmra.mxu3 %vm742_vm5, %v1027_v32 }
 0x701   : >> { %1233 = vrot.lane.b32.xlu2 %v2529_v34, %s2351_s24  ;;  %s2161_s24 = sshll.u32 %s2336_s29, 7 }
 0x704   : >> { %v1367_v35 = vpop.permute.xlu1 %1366 }
 0x705   : >> { %2129 = vmatpush.xpose.msk.msra.mxu3 %vm533_vm1, %v1367_v35 }
 0x709   : >> { %1229 = vrot.lane.b32.xlu2 %v2535_v37, %s2352_s25 }
 0x70c   : >> { %v1365_v36 = vpop.permute.xlu1 %1364 }
 0x70d   : >> { %2130 = vmatpush.xpose.msk.msra.mxu3 %vm533_vm1, %v1365_v36 }
 0x711   : >> { %1231 = vrot.lane.b32.xlu2 %v2540_v38, %s2352_s25  ;;  %s1755_s25 = scalar_lea.vmem %s2886_s8, %s2336_s29 }
 0x714   : >> { %v1361_v54 = vpop.permute.xlu1 %1360 }
 0x74c   : >> { %v1151_v39 = vpop.xlane.xlu2 %1150 }
 0x74d   : >> { %2260 = vrcp.f32 %v1151_v39 }
 0x753   : >> { %v2261_v40 = vpop.eup %2260 }
 0x754   : >> { %v1154_v41 = vpop.xlane.xlu0 %1153  ;;  %v1162_v42 = vpop.permute.xlu2 %1161  ;;  %v1157_v43 = vmul.f32 %v2261_v40, %v2253_v15 }
 0x755   : >> { %2262 = vrcp.f32 %v1154_v41  ;;  %2113 = vmatpush.msk.msrb.mxu1 %vm597_vm2, %v1162_v42  ;;  %v1457_v41 = vrot.slane %v693_v10, 4 }
 0x757   : >> { %1187 = vmatpush.msrb.mxu1 %v1160_v31 }
 0x758   : >> { %2114 = vmatmul.msk.f32.vlgmr.msrb.gmra.mxu1 %vm742_vm5, %v1157_v43 }
 0x759   : >> { %2126 = vmatpush.msk.msra.mxu1 %vm538_vm0, %v693_v10 }
 0x75b   : >> { %v2263_v44 = vpop.eup %2262 }
 0x75c   : >> { %v1236_v45 = vpop.permute.xlu2 %1235  ;;  %v1158_v46 = vmul.f32 %v2263_v44, %v2255_v18 }
 0x75d   : >> { %2119 = vmatpush.xpose.msk.msrb.mxu2 %vm533_vm1, %v1236_v45 }
 0x760   : >> { %2115 = vmatmul.msk.f32.gmra.mxu1 %vm742_vm5, %v1158_v46 }
 0x764   : >> { %v1234_v47 = vpop.permute.xlu2 %1233 }
 0x765   : >> { %2120 = vmatpush.xpose.msk.msrb.mxu2 %vm533_vm1, %v1234_v47 }
 0x767   : >> { %v1363_v55 = vpop.permute.xlu0 %1362 }
 0x76c   : >> { %v1230_v50 = vpop.permute.xlu2 %1229 }
 0x774   : >> { %v1232_v51 = vpop.permute.xlu2 %1231 }
 0x779   : >> { %v1058_v48 = vpop.f32.mrf.mxu3 }
 0x77a   : >> { %2107 = vmatmul.msk.f32.vlgmr.msra.gmra.mxu2 %vm533_vm1, %v1058_v48 }
 0x781   : >> { %v1061_v49 = vpop.f32.mrf.mxu3 }
 0x782   : >> { %2108 = vmatmul.msk.f32.gmra.mxu2 %vm533_vm1, %v1061_v49 }
 0x78a   : >> { %2121 = vmatmul.msk.f32.vlgmr.msrb.gmra.mxu2 %vm533_vm1, %v1230_v50 }
 0x792   : >> { %2122 = vmatmul.msk.f32.gmra.mxu2 %vm533_vm1, %v1232_v51 }
 0x7d5   : >> { %v1189_v52 = vpop.f32.mrf.mxu1 }
 0x7d6   : >> { %2117 = vmatmul.msk.f32.vlgmr.msrb.gmra.mxu3 %vm533_vm1, %v1189_v52 }
 0x7dd   : >> { %v1192_v53 = vpop.f32.mrf.mxu1 }
 0x7de   : >> { %2118 = vmatmul.msk.f32.gmra.mxu3 %vm533_vm1, %v1192_v53 }
 0x7e6   : >> { %2131 = vmatmul.msk.f32.vlgmr.msra.gmra.mxu3 %vm533_vm1, %v1361_v54 }
 0x7ee   : >> { %2132 = vmatmul.msk.f32.gmra.mxu3 %vm533_vm1, %v1363_v55 }
 0x7fd   : >> { %v1090_v56 = vpop.f32.mrf.mxu2 }
 0x7fe   : >> { %v1096_v57 = vadd.f32 %v1090_v56, %v2620_v59 }
 0x805   : >> { %v1093_v58 = vpop.f32.mrf.mxu2 }
 0x806   : >> { %v1097_v60 = vadd.f32 %v1093_v58, %v2623_v62 }
 0x80d   : >> { %v1262_v61 = vpop.f32.mrf.mxu2 }
 0x80e   : >> { %v1268_v63 = vsel %vm742_vm5, %v1262_v61, -inf }
 0x80f   : >> { %1269 = vmax.xlane.f32.xlu1 %v1268_v63 }
 0x815   : >> { %v1265_v0 = vpop.f32.mrf.mxu2 }
 0x816   : >> { %v1271_v1 = vsel %vm746_vm6, %v1265_v0, -inf }
 0x817   : >> { %1272 = vmax.xlane.f32.xlu0 %v1271_v1 }
 0x82b   : >> { %1290 = vrot.lane.b32.xlu0 %v2529_v34, %s2353_s26 }
 0x833   : >> { %1421 = vrot.lane.b32.xlu0 %v2529_v34, %s2354_s28 }
 0x83b   : >> { %1497 = vrot.lane.b32.xlu0 %v2526_v33, %s2355_s27 }
 0x843   : >> { %1491 = vrot.lane.b32.xlu0 %v2535_v37, %s2356_s0 }
 0x84b   : >> { %1626 = vrot.lane.b32.xlu0 %v2529_v34, %s2357_s17 }
 0x853   : >> { %1622 = vrot.lane.b32.xlu0 %v2535_v37, %s2358_s19 }
 0x859   : >> { %v1221_v59 = vpop.f32.mrf.mxu3 }
 0x85a   : >> { %v2679_v62 = vadd.f32 %v1221_v59, %v1096_v57 }
 0x861   : >> { %v1224_v2 = vpop.f32.mrf.mxu3 }
 0x862   : >> { %v2681_v3 = vadd.f32 %v1224_v2, %v1097_v60 }
 0x869   : >> { %v1393_v4 = vpop.f32.mrf.mxu3 }
 0x86a   : >> { %v1399_v18 = vsel %vm742_vm5, %v1393_v4, -inf }
 0x871   : >> { %v1396_v7 = vpop.f32.mrf.mxu3 }
 0x872   : >> { %v1402_v5 = vsel %vm746_vm6, %v1396_v7, -inf }
 0x873   : >> { %1403 = vmax.xlane.f32.xlu1 %v1402_v5 }
 0x882   : >> { %v1270_v8 = vpop.xlane.xlu1 %1269 }
 0x883   : >> { %v1274_v6 = vsub.f32 %v1262_v61, %v1270_v8 }
 0x885   : >> { %v1276_v9 = vmul.f32 1.442695, %v1274_v6 }
 0x887   : >> { %2264 = vpow2.f32 %v1276_v9 }
 0x88a   : >> { %v1273_v13 = vpop.xlane.xlu0 %1272 }
 0x88b   : >> { %v1275_v37 = vsub.f32 %v1265_v0, %v1273_v13 }
 0x88d   : >> { %v2265_v14 = vpop.eup %2264  ;;  %v1278_v15 = vmul.f32 1.442695, %v1275_v37 }
 0x88e   : >> { %v1280_v16 = vsel %vm742_vm5, %v2265_v14, 0.0 }
 0x88f   : >> { %2266 = vpow2.f32 %v1278_v15  ;;  %1281 = vadd.xlane.f32.xlu2 %v1280_v16 }
 0x895   : >> { %v2267_v17 = vpop.eup %2266 }
 0x896   : >> { %v1283_v19 = vsel %vm746_vm6, %v2267_v17, 0.0 }
 0x897   : >> { %1400 = vmax.xlane.f32.xlu2 %v1399_v18  ;;  %1284 = vadd.xlane.f32.xlu1 %v1283_v19 }
 0x89d   : >> { %v1291_v20 = vpop.permute.xlu0 %1290 }
 0x8a5   : >> { %v1422_v22 = vpop.permute.xlu0 %1421 }
 0x8ad   : >> { %v1498_v23 = vpop.permute.xlu0 %1497 }
 0x8ae   : >> { %2139 = vmatpush.xpose.msk.msrb.mxu1 %vm533_vm1, %v1498_v23 }
 0x8af   : >> { %1292 = vrot.lane.b32.xlu2 %v2526_v33, %s2353_s26 }
 0x8b5   : >> { %v1492_v55 = vpop.permute.xlu0 %1491 }
 0x8bd   : >> { %v1627_v58 = vpop.permute.xlu0 %1626 }
 0x8c5   : >> { %v1623_v8 = vpop.permute.xlu0 %1622 }
 0x8e6   : >> { %v1404_v24 = vpop.xlane.xlu1 %1403 }
 0x8e7   : >> { %v1406_v26 = vsub.f32 %v1396_v7, %v1404_v24 }
 0x8e9   : >> { %v1409_v27 = vmul.f32 1.442695, %v1406_v26 }
 0x8eb   : >> { %2268 = vpow2.f32 %v1409_v27 }
 0x8f1   : >> { %v2269_v28 = vpop.eup %2268 }
 0x8f2   : >> { %v1414_v29 = vsel %vm746_vm6, %v2269_v28, 0.0 }
 0x8f3   : >> { %1415 = vadd.xlane.f32.xlu2 %v1414_v29 }
 0x902   : >> { %v1282_v30 = vpop.xlane.xlu2 %1281 }
 0x903   : >> { %2270 = vrcp.f32 %v1282_v30 }
 0x909   : >> { %v2271_v39 = vpop.eup %2270 }
 0x90a   : >> { %v1401_v31 = vpop.xlane.xlu2 %1400  ;;  %v1285_v36 = vpop.xlane.xlu1 %1284  ;;  %v1288_v42 = vmul.f32 %v2271_v39, %v2265_v14 }
 0x90b   : >> { %v1405_v32 = vsub.f32 %v1393_v4, %v1401_v31 }
 0x90d   : >> { %v1407_v35 = vmul.f32 1.442695, %v1405_v32 }
 0x90f   : >> { %2272 = vpow2.f32 %v1407_v35 }
 0x910   : >> { %2274 = vrcp.f32 %v1285_v36 }
 0x912   : >> { %v1293_v40 = vpop.permute.xlu2 %1292 }
 0x913   : >> { %2123 = vmatpush.msk.msra.mxu0 %vm597_vm2, %v1293_v40 }
 0x915   : >> { %v2273_v43 = vpop.eup %2272  ;;  %1318 = vmatpush.msra.mxu0 %v1291_v20 }
 0x916   : >> { %2124 = vmatmul.msk.f32.vlgmr.msra.gmra.mxu0 %vm742_vm5, %v1288_v42  ;;  %v1411_v44 = vsel %vm742_vm5, %v2273_v43, 0.0  ;;  %v2275_v45 = vpop.eup %2274 }
 0x917   : >> { %1412 = vadd.xlane.f32.xlu1 %v1411_v44  ;;  %2136 = vmatpush.msk.msrb.mxu0 %vm538_vm0, %v1457_v41  ;;  %v1289_v46 = vmul.f32 %v2275_v45, %v2267_v17 }
 0x91e   : >> { %2125 = vmatmul.msk.f32.gmra.mxu0 %vm742_vm5, %v1289_v46 }
 0x930   : >> { %1423 = vrot.lane.b32.xlu1 %v2526_v33, %s2354_s28 }
 0x938   : >> { %1495 = vrot.lane.b32.xlu1 %v2529_v34, %s2355_s27  ;;  %s1757_s27 = scalar_lea.vmem %s2887_s9, %s2336_s29 }
 0x940   : >> { %1628 = vrot.lane.b32.xlu1 %v2526_v33, %s2357_s17 }
 0x948   : >> { %1493 = vrot.lane.b32.xlu1 %v2540_v38, %s2356_s0  ;;  %s2794_s0 = scalar_lea.vmem %s2890_s12, %s2161_s24 }
 0x950   : >> { %1624 = vrot.lane.b32.xlu1 %v2540_v38, %s2358_s19  ;;  %s1826_s19 = scalar_lea.vmem %s2889_s11, %s2336_s29 }
 0x966   : >> { %v1416_v50 = vpop.xlane.xlu2 %1415 }
 0x98a   : >> { %v1413_v48 = vpop.xlane.xlu1 %1412 }
 0x98b   : >> { %2276 = vrcp.f32 %v1413_v48 }
 0x98c   : >> { %2278 = vrcp.f32 %v1416_v50 }
 0x991   : >> { %v2277_v51 = vpop.eup %2276 }
 0x992   : >> { %v1419_v53 = vmul.f32 %v2277_v51, %v2273_v43  ;;  %v2279_v54 = vpop.eup %2278  ;;  %v694_v51 = vld [vmem:[%s2560_s18 + $0x18] sm:$0xff]  ;;  %s1821_s18 = scalar_lea.vmem %s2888_s10, %s2512_s30 }
 0x993   : >> { %v1320_v47 = vpop.f32.mrf.mxu0  ;;  %v1420_v56 = vmul.f32 %v2279_v54, %v2269_v28 }
 0x994   : >> { %2127 = vmatmul.msk.f32.vlgmr.msra.gmra.mxu1 %vm533_vm1, %v1320_v47 }
 0x99b   : >> { %v1323_v49 = vpop.f32.mrf.mxu0 }
 0x99c   : >> { %2128 = vmatmul.msk.f32.gmra.mxu1 %vm533_vm1, %v1323_v49 }
 0x9a2   : >> { %v1424_v52 = vpop.permute.xlu1 %1423 }
 0x9a3   : >> { %2133 = vmatpush.msk.msra.mxu2 %vm597_vm2, %v1424_v52  ;;  %v1719_v52 = vrot.slane %v694_v51, 4 }
 0x9a5   : >> { %1449 = vmatpush.msra.mxu2 %v1422_v22 }
 0x9a6   : >> { %2134 = vmatmul.msk.f32.vlgmr.msra.gmra.mxu2 %vm742_vm5, %v1419_v53 }
 0x9a7   : >> { %2146 = vmatpush.msk.msrb.mxu2 %vm538_vm0, %v694_v51  ;;  %v1872_v51 = vld [vmem:[%s2794_s0 + $0x40] sm:$0xff] }
 0x9aa   : >> { %v1496_v38 = vpop.permute.xlu1 %1495 }
 0x9ab   : >> { %2140 = vmatpush.xpose.msk.msrb.mxu1 %vm533_vm1, %v1496_v38 }
 0x9ae   : >> { %2135 = vmatmul.msk.f32.gmra.mxu2 %vm742_vm5, %v1420_v56  ;;  %2141 = vmatmul.msk.f32.vlgmr.msrb.gmra.mxu1 %vm533_vm1, %v1492_v55 }
 0x9b2   : >> { %v1629_v57 = vpop.permute.xlu1 %1628 }
 0x9b3   : >> { %2149 = vmatpush.xpose.msk.msra.mxu0 %vm533_vm1, %v1629_v57 }
 0x9b7   : >> { %2150 = vmatpush.xpose.msk.msra.mxu0 %vm533_vm1, %v1627_v58 }
 0x9ba   : >> { %v1494_v60 = vpop.permute.xlu1 %1493 }
 0x9bb   : >> { %2142 = vmatmul.msk.f32.gmra.mxu1 %vm533_vm1, %v1494_v60 }
 0xa11   : >> { %v1352_v61 = vpop.f32.mrf.mxu1 }
 0xa12   : >> { %v1358_v63 = vadd.f32 %v1352_v61, %v2679_v62  ;;  %v1625_v62 = vpop.permute.xlu1 %1624 }
 0xa19   : >> { %v1355_v0 = vpop.f32.mrf.mxu1 }
 0xa1a   : >> { %v1359_v1 = vadd.f32 %v1355_v0, %v2681_v3 }
 0xa29   : >> { %v1451_v59 = vpop.f32.mrf.mxu2 }
 0xa2a   : >> { %2137 = vmatmul.msk.f32.vlgmr.msrb.gmra.mxu0 %vm533_vm1, %v1451_v59 }
 0xa2b   : >> { %v1524_v2 = vpop.f32.mrf.mxu1 }
 0xa2c   : >> { %v1530_v4 = vsel %vm742_vm5, %v1524_v2, -inf }
 0xa2d   : >> { %1531 = vmax.xlane.f32.xlu2 %v1530_v4 }
 0xa31   : >> { %v1454_v7 = vpop.f32.mrf.mxu2 }
 0xa32   : >> { %2138 = vmatmul.msk.f32.gmra.mxu0 %vm533_vm1, %v1454_v7 }
 0xa38   : >> { %v1527_v5 = vpop.f32.mrf.mxu1 }
 0xa39   : >> { %v1533_v6 = vsel %vm746_vm6, %v1527_v5, -inf }
 0xa3a   : >> { %1534 = vmax.xlane.f32.xlu0 %v1533_v6  ;;  %2151 = vmatmul.msk.f32.vlgmr.msra.gmra.mxu0 %vm533_vm1, %v1623_v8 }
 0xa42   : >> { %2152 = vmatmul.msk.f32.gmra.mxu0 %vm533_vm1, %v1625_v62 }
 0xaa0   : >> { %v1532_v3 = vpop.xlane.xlu2 %1531 }
 0xaa1   : >> { %v1536_v9 = vsub.f32 %v1524_v2, %v1532_v3 }
 0xaa3   : >> { %v1538_v10 = vmul.f32 1.442695, %v1536_v9 }
 0xaa5   : >> { %2280 = vpow2.f32 %v1538_v10  ;;  %v2361_v10 = vmov 32.0  }
 0xaa7   : >> { %v1483_v13 = vpop.f32.mrf.mxu0 }
 0xaa8   : >> { %v2726_v37 = vadd.f32 %v1483_v13, %v1358_v63 }
 0xaab   : >> { %v2281_v14 = vpop.eup %2280 }
 0xaac   : >> { %v1542_v15 = vsel %vm742_vm5, %v2281_v14, 0.0 }
 0xaad   : >> { %v1535_v16 = vpop.xlane.xlu0 %1534  ;;  %1543 = vadd.xlane.f32.xlu2 %v1542_v15 }
 0xaae   : >> { %v1537_v17 = vsub.f32 %v1527_v5, %v1535_v16 }
 0xaaf   : >> { %v1486_v18 = vpop.f32.mrf.mxu0 }
 0xab0   : >> { %v1540_v19 = vmul.f32 1.442695, %v1537_v17  ;;  %v2729_v20 = vadd.f32 %v1486_v18, %v1359_v1 }
 0xab2   : >> { %2282 = vpow2.f32 %v1540_v19 }
 0xab7   : >> { %v1655_v22 = vpop.f32.mrf.mxu0 }
 0xab8   : >> { %v2283_v23 = vpop.eup %2282  ;;  %v1661_v24 = vsel %vm742_vm5, %v1655_v22, -inf }
 0xab9   : >> { %1662 = vmax.xlane.f32.xlu1 %v1661_v24  ;;  %v1545_v26 = vsel %vm746_vm6, %v2283_v23, 0.0 }
 0xaba   : >> { %1546 = vadd.xlane.f32.xlu0 %v1545_v26 }
 0xabf   : >> { %v1658_v27 = vpop.f32.mrf.mxu0 }
 0xac0   : >> { %v1664_v28 = vsel %vm746_vm6, %v1658_v27, -inf }
 0xac1   : >> { %1665 = vmax.xlane.f32.xlu2 %v1664_v28  ;;  %v1825_v28 = vld [vmem:[%s1821_s18 + $0x18] sm:$0xff] }
 0xac2   : >> { %1849 = vmatpush.msra.mxu2 %v1825_v28 }
 0xace   : >> { %1685 = vrot.lane.b32.xlu0 %v2526_v33, %s2359_s20 }
 0xad9   : >> { %1554 = vrot.lane.b32.xlu2 %v2526_v33, %s2360_s22 }
 0xae1   : >> { %1552 = vrot.lane.b32.xlu2 %v2529_v34, %s2360_s22 }
 0xae9   : >> { %1683 = vrot.lane.b32.xlu2 %v2529_v34, %s2359_s20  ;;  %s1912_s20 = scalar_lea.vmem %s2893_s15, %s2336_s29 }
 0xb20   : >> { %v1544_v29 = vpop.xlane.xlu2 %1543 }
 0xb2c   : >> { %v1663_v30 = vpop.xlane.xlu1 %1662 }
 0xb2d   : >> { %v1667_v31 = vsub.f32 %v1655_v22, %v1663_v30  ;;  %v1547_v41 = vpop.xlane.xlu0 %1546  ;;  %v1823_v30 = vld [vmem:[%s1821_s18 + $0x8] sm:$0xff] }
 0xb2f   : >> { %v1669_v32 = vmul.f32 1.442695, %v1667_v31  ;;  %v1822_v31 = vld [vmem:[%s1821_s18] sm:$0xff] }
 0xb31   : >> { %2284 = vpow2.f32 %v1669_v32 }
 0xb34   : >> { %v1666_v35 = vpop.xlane.xlu2 %1665 }
 0xb35   : >> { %v1668_v36 = vsub.f32 %v1658_v27, %v1666_v35 }
 0xb37   : >> { %v2285_v39 = vpop.eup %2284  ;;  %v1671_v40 = vmul.f32 1.442695, %v1668_v36 }
 0xb38   : >> { %v1673_v42 = vsel %vm742_vm5, %v2285_v39, 0.0 }
 0xb39   : >> { %2286 = vpow2.f32 %v1671_v40  ;;  %1674 = vadd.xlane.f32.xlu1 %v1673_v42  ;;  %v1878_v40 = vld [vmem:[%s2794_s0 + $0x70] sm:$0xff] }
 0xb3a   : >> { %2288 = vrcp.f32 %v1544_v29  ;;  %v1824_v29 = vld [vmem:[%s1821_s18 + $0x10] sm:$0xff]  ;;  %s1880_s18 = scalar_lea.vmem %s2891_s13, %s2336_s29 }
 0xb3b   : >> { %2290 = vrcp.f32 %v1547_v41  ;;  %1850 = vmatpush.msra.mxu2 %v1824_v29  ;;  %v1877_v41 = vld [vmem:[%s2794_s0 + $0x68] sm:$0xff] }
 0xb3c   : >> { %v1555_v33 = vpop.permute.xlu2 %1554 }
 0xb3d   : >> { %2143 = vmatpush.msk.msrb.mxu3 %vm597_vm2, %v1555_v33  ;;  %1851 = vmatpush.msra.mxu2 %v1823_v30 }
 0xb3f   : >> { %v2287_v43 = vpop.eup %2286  ;;  %1852 = vmatpush.msra.mxu2 %v1822_v31 }
 0xb40   : >> { %v1686_v34 = vpop.permute.xlu0 %1685  ;;  %v1676_v44 = vsel %vm746_vm6, %v2287_v43, 0.0  ;;  %v2289_v45 = vpop.eup %2288 }
 0xb41   : >> { %2153 = vmatpush.msk.msra.mxu1 %vm597_vm2, %v1686_v34  ;;  %1677 = vadd.xlane.f32.xlu1 %v1676_v44  ;;  %v1550_v46 = vmul.f32 %v2289_v45, %v2281_v14  ;;  %v2291_v48 = vpop.eup %2290  ;;  %v1875_v45 = vld [vmem:[%s2794_s0 + $0x58] sm:$0xff] }
 0xb42   : >> { %v1551_v50 = vmul.f32 %v2291_v48, %v2283_v23 }
 0xb44   : >> { %v1553_v47 = vpop.permute.xlu2 %1552 }
 0xb45   : >> { %1580 = vmatpush.msrb.mxu3 %v1553_v47  ;;  %v1874_v47 = vld [vmem:[%s2794_s0 + $0x50] sm:$0xff] }
 0xb46   : >> { %2144 = vmatmul.msk.f32.vlgmr.msrb.gmra.mxu3 %vm742_vm5, %v1550_v46 }
 0xb47   : >> { %2156 = vmatpush.msk.msra.mxu3 %vm538_vm0, %v1719_v52 }
 0xb4c   : >> { %v1684_v49 = vpop.permute.xlu2 %1683 }
 0xb4d   : >> { %1711 = vmatpush.msra.mxu1 %v1684_v49  ;;  %v1873_v49 = vld [vmem:[%s2794_s0 + $0x48] sm:$0xff] }
 0xb4e   : >> { %2145 = vmatmul.msk.f32.gmra.mxu3 %vm742_vm5, %v1551_v50 }
 0xbac   : >> { %v1675_v53 = vpop.xlane.xlu1 %1674 }
 0xbad   : >> { %2292 = vrcp.f32 %v1675_v53 }
 0xbb3   : >> { %v2293_v54 = vpop.eup %2292 }
 0xbb4   : >> { %v1681_v38 = vmul.f32 %v2293_v54, %v2285_v39  ;;  %v1678_v55 = vpop.xlane.xlu1 %1677  ;;  %v1879_v39 = vld [vmem:[%s2794_s0 + $0x78] sm:$0xff] }
 0xbb5   : >> { %2294 = vrcp.f32 %v1678_v55  ;;  %1885 = vmatpush.msrb.mxu0 %v1879_v39  ;;  %v1871_v54 = vld [vmem:[%s2794_s0 + $0x38] sm:$0xff] }
 0xbb6   : >> { %2154 = vmatmul.msk.f32.vlgmr.msra.gmra.mxu1 %vm742_vm5, %v1681_v38  ;;  %2296 = vrcp.f32 %v2361_v10  ;;  %v1866_v10 = vld [vmem:[%s2794_s0 + $0x10] sm:$0xff] }
 0xbb7   : >> { %1886 = vmatpush.msrb.mxu0 %v1878_v40 }
 0xbb9   : >> { %1887 = vmatpush.msrb.mxu0 %v1877_v41 }
 0xbbb   : >> { %v2295_v56 = vpop.eup %2294 }
 0xbbc   : >> { %v1682_v57 = vmul.f32 %v2295_v56, %v2287_v43  ;;  %v1876_v43 = vld [vmem:[%s2794_s0 + $0x60] sm:$0xff] }
 0xbbd   : >> { %1888 = vmatpush.msrb.mxu0 %v1876_v43  ;;  %v2226_v56 = vld [vmem:[%s1755_s25] ss:$0 sm:$0xff] }
 0xbbe   : >> { %2155 = vmatmul.msk.f32.gmra.mxu1 %vm742_vm5, %v1682_v57  ;;  %v1870_v57 = vld [vmem:[%s2794_s0 + $0x30] sm:$0xff] }
 0xbbf   : >> { %1889 = vmatpush.msrb.mxu0 %v1875_v45 }
 0xbc1   : >> { %1890 = vmatpush.msrb.mxu0 %v1874_v47 }
 0xbc3   : >> { %1891 = vmatpush.msrb.mxu0 %v1873_v49 }
 0xbc5   : >> { %1892 = vmatpush.msrb.mxu0 %v1872_v51 }
 0xbc7   : >> { %1893 = vmatpush.msrb.mxu0 %v1871_v54 }
 0xbc9   : >> { %v1582_v58 = vpop.f32.mrf.mxu3  ;;  %1894 = vmatpush.msrb.mxu0 %v1870_v57 }
 0xbca   : >> { %2147 = vmatmul.msk.f32.vlgmr.msrb.gmra.mxu2 %vm533_vm1, %v1582_v58 }
 0xbd1   : >> { %v1585_v60 = vpop.f32.mrf.mxu3 }
 0xbd2   : >> { %2148 = vmatmul.msk.f32.gmra.mxu2 %vm533_vm1, %v1585_v60 }
 0xc33   : >> { %v1713_v61 = vpop.f32.mrf.mxu1 }
 0xc34   : >> { %2157 = vmatmul.msk.f32.vlgmr.msra.gmra.mxu3 %vm533_vm1, %v1713_v61 }
 0xc3b   : >> { %v1716_v63 = vpop.f32.mrf.mxu1 }
 0xc3c   : >> { %2158 = vmatmul.msk.f32.gmra.mxu3 %vm533_vm1, %v1716_v63  ;;  %v2227_v63 = vld [vmem:[%s1757_s27] ss:$0 sm:$0xff] }
 0xc4d   : >> { %v1614_v0 = vpop.f32.mrf.mxu2 }
 0xc4e   : >> { %v1620_v1 = vadd.f32 %v1614_v0, %v2726_v37  ;;  %v1869_v0 = vld [vmem:[%s2794_s0 + $0x28] sm:$0xff] }
 0xc4f   : >> { %1895 = vmatpush.msrb.mxu0 %v1869_v0 }
 0xc55   : >> { %v1617_v7 = vpop.f32.mrf.mxu2 }
 0xc56   : >> { %v1621_v8 = vadd.f32 %v1617_v7, %v2729_v20 }
 0xcb7   : >> { %v1745_v59 = vpop.f32.mrf.mxu3 }
 0xcb8   : >> { %v1751_v2 = vadd.f32 %v1745_v59, %v1620_v1 }
 0xcba   : >> { %v1753_v4 = vadd.f32 %v2332_v11, %v1751_v2  ;;  %v2297_v11 = vpop.eup %2296  ;;  %v1868_v2 = vld [vmem:[%s2794_s0 + $0x20] sm:$0xff] }
 0xcbb   : >> { %v1767_v13 = vmul.f32 32.0, %v2297_v11  ;;  %vm1771_vm8 = vweird.f32 %v2297_v11  ;;  %1896 = vmatpush.msrb.mxu0 %v1868_v2 }
 0xcbc   : >> { %v1759_v5 = vsel %vm660_vm4, %v1753_v4, 0.0 }
 0xcbd   : >> { %1760 = vadd.xlane.f32.xlu1 %v1759_v5  ;;  %v1768_v37 = vsub.f32 1.0, %v1767_v13  ;;  %v1867_v5 = vld [vmem:[%s2794_s0 + $0x18] sm:$0xff]  ;;  %v1864_v13 = vld [vmem:[%s2794_s0] sm:$0xff] }
 0xcbe   : >> { %1897 = vmatpush.msrb.mxu0 %v1867_v5 }
 0xcbf   : >> { %v1748_v6 = vpop.f32.mrf.mxu3  ;;  %v1769_v14 = vmul.f32 %v2297_v11, %v1768_v37  ;;  %v2228_v37 = vld [vmem:[%s1826_s19] ss:$0 sm:$0xff] }
 0xcc0   : >> { %v1752_v62 = vadd.f32 %v1748_v6, %v1621_v8  ;;  %1898 = vmatpush.msrb.mxu0 %v1866_v10 }
 0xcc1   : >> { %v1770_v15 = vadd.f32 %v2297_v11, %v1769_v14 }
 0xcc2   : >> { %v1754_v3 = vadd.f32 %v2328_v12, %v1752_v62 }
 0xcc3   : >> { %v2763_v16 = vsel %vm1771_vm8, %v2297_v11, %v1770_v15  ;;  %v1865_v11 = vld [vmem:[%s2794_s0 + $0x8] sm:$0xff]  ;;  %s1910_s0 = scalar_lea.vmem %s2892_s14, %s2336_s29  ;;  %s646_s29 = sadd.s32 1, %s2336_s29  }
 0xcc4   : >> { %v1763_v9 = vsel %vm1762_vm7, %v1754_v3, 0.0  ;;  %1899 = vmatpush.msrb.mxu0 %v1865_v11  ;;  %p643_p4 = scmp.ge.s32.totalorder %s646_s29, 9  }
 0xcc5   : >> { %1764 = vadd.xlane.f32.xlu2 %v1763_v9 }
 0xcc6   : >> { %1900 = vmatpush.msrb.mxu0 %v1864_v13 }
 0xd30   : >> { %v1761_v17 = vpop.xlane.xlu1 %1760 }
 0xd31   : >> { %v1773_v18 = vmul.f32 %v2763_v16, %v1761_v17 }
 0xd33   : >> { %v2766_v12 = vsub.f32 %v1753_v4, %v1773_v18 }
 0xd35   : >> { %v1777_v19 = vmul.f32 %v2766_v12, %v2766_v12 }
 0xd37   : >> { %v1779_v20 = vsel %vm660_vm4, %v1777_v19, 0.0 }
 0xd38   : >> { %1780 = vadd.xlane.f32.xlu0 %v1779_v20  ;;  %v1765_v22 = vpop.xlane.xlu2 %1764  ;;  %v2229_v20 = vld [vmem:[%s1880_s18] ss:$0 sm:$0xff] }
 0xd39   : >> { %v1774_v23 = vmul.f32 %v2763_v16, %v1765_v22 }
 0xd3b   : >> { %v2772_v24 = vsub.f32 %v1754_v3, %v1774_v23 }
 0xd3d   : >> { %v1778_v26 = vmul.f32 %v2772_v24, %v2772_v24 }
 0xd3f   : >> { %v1782_v27 = vsel %vm1762_vm7, %v1778_v26, 0.0 }
 0xd40   : >> { %1783 = vadd.xlane.f32.xlu1 %v1782_v27 }
 0xdab   : >> { %v1781_v32 = vpop.xlane.xlu0 %1780 }
 0xdac   : >> { %v1785_v35 = vmul.f32 %v1781_v32, %v2763_v16 }
 0xdae   : >> { %v1787_v36 = vadd.f32 1e-05, %v1785_v35 }
 0xdb0   : >> { %2298 = vrsqrt.f32 %v1787_v36  ;;  %vm1795_vm10 = vweird.f32 %v1787_v36 }
 0xdb3   : >> { %v1784_v42 = vpop.xlane.xlu1 %1783 }
 0xdb4   : >> { %v1786_v33 = vmul.f32 %v1784_v42, %v2763_v16 }
 0xdb6   : >> { %v2299_v34 = vpop.eup %2298  ;;  %v1788_v44 = vadd.f32 1e-05, %v1786_v33 }
 0xdb7   : >> { %v1790_v46 = vmul.f32 %v2299_v34, %v1787_v36  ;;  %vm1796_vm9 = vweird.f32 %v2299_v34 }
 0xdb8   : >> { %2300 = vrsqrt.f32 %v1788_v44  ;;  %vm1797_vm11 = vmor %vm1795_vm10, %vm1796_vm9  ;;  %vm1805_vm13 = vweird.f32 %v1788_v44 }
 0xdb9   : >> { %v1791_v48 = vmul.f32 %v2299_v34, %v1790_v46 }
 0xdbb   : >> { %v1792_v50 = vmul.f32 0.5, %v1791_v48 }
 0xdbd   : >> { %v1793_v52 = vsub.f32 1.5, %v1792_v50 }
 0xdbe   : >> { %v2301_v53 = vpop.eup %2300 }
 0xdbf   : >> { %v1794_v38 = vmul.f32 %v2299_v34, %v1793_v52  ;;  %v1800_v55 = vmul.f32 %v2301_v53, %v1788_v44  ;;  %vm1806_vm12 = vweird.f32 %v2301_v53 }
 0xdc0   : >> { %vm1807_vm14 = vmor %vm1805_vm13, %vm1806_vm12 }
 0xdc1   : >> { %v1798_v58 = vsel %vm1797_vm11, %v2299_v34, %v1794_v38  ;;  %v1801_v60 = vmul.f32 %v2301_v53, %v1800_v55 }
 0xdc2   : >> { %v1809_v61 = vmul.f32 %v1798_v58, %v2766_v12  ;;  %v2231_v58 = vld [vmem:[%s1912_s20] ss:$0 sm:$0xff] }
 0xdc3   : >> { %v1802_v1 = vmul.f32 0.5, %v1801_v60 }
 0xdc4   : >> { %v1814_v59 = vmul.f32 %v2226_v56, %v1809_v61 }
 0xdc5   : >> { %v1803_v4 = vsub.f32 1.5, %v1802_v1 }
 0xdc6   : >> { %v1819_v7 = vadd.f32 %v2227_v63, %v1814_v59 }
 0xdc7   : >> { %v1804_v8 = vmul.f32 %v2301_v53, %v1803_v4 }
 0xdc8   : >> { %2159 = vmatmul.msk.f32.vlgmr.msra.gmra.mxu2 %vm660_vm4, %v1819_v7 }
 0xdc9   : >> { %v1808_v6 = vsel %vm1807_vm14, %v2301_v53, %v1804_v8 }
 0xdca   : >> { %v1810_v62 = vmul.f32 %v1808_v6, %v2772_v24 }
 0xdcc   : >> { %v1815_v3 = vmul.f32 %v2226_v56, %v1810_v62  ;;  %v2230_v56 = vld [vmem:[%s1910_s0] ss:$0 sm:$0xff] }
 0xdce   : >> { %v1820_v9 = vadd.f32 %v2227_v63, %v1815_v3 }
 0xdd0   : >> { %2160 = vmatmul.msk.f32.gmra.mxu2 %vm660_vm4, %v1820_v9 }
 0xe4b   : >> { %v1854_v14 = vpop.f32.mrf.mxu2 }
 0xe4c   : >> { %v1855_v15 = vadd.f32 %v2228_v37, %v1854_v14 }
 0xe4e   : >> { %v1860_v17 = vmax.f32 %v1855_v15, 0.0 }
 0xe50   : >> { %1901 = vmatmul.f32.vlgmr.msrb.gmra.mxu0 %v1860_v17 }
 0xe53   : >> { %v1857_v18 = vpop.f32.mrf.mxu2 }
 0xe54   : >> { %v1858_v12 = vadd.f32 %v2228_v37, %v1857_v18 }
 0xe56   : >> { %v1861_v19 = vmax.f32 %v1858_v12, 0.0 }
 0xe58   : >> { %1904 = vmatmul.f32.gmra.mxu0 %v1861_v19 }
 0xecd   : >> { %v1902_v22 = vpop.f32.mrf.mxu0 }
 0xece   : >> { %v1903_v23 = vadd.f32 %v2229_v20, %v1902_v22 }
 0xed0   : >> { %v1908_v24 = vadd.f32 %v1903_v23, %v1819_v7 }
 0xed2   : >> { %v1914_v26 = vsel %vm660_vm4, %v1908_v24, 0.0 }
 0xed3   : >> { %1915 = vadd.xlane.f32.xlu1 %v1914_v26 }
 0xed5   : >> { %v1905_v27 = vpop.f32.mrf.mxu0 }
 0xed6   : >> { %v1906_v28 = vadd.f32 %v2229_v20, %v1905_v27 }
 0xed8   : >> { %v1909_v29 = vadd.f32 %v1906_v28, %v1820_v9 }
 0xeda   : >> { %v1917_v30 = vsel %vm1762_vm7, %v1909_v29, 0.0 }
 0xedb   : >> { %1918 = vadd.xlane.f32.xlu1 %v1917_v30 }
 0xf46   : >> { %v1916_v31 = vpop.xlane.xlu1 %1915 }
 0xf47   : >> { %v1920_v32 = vmul.f32 %v1916_v31, %v2763_v16 }
 0xf49   : >> { %v1922_v35 = vsub.f32 %v1908_v24, %v1920_v32 }
 0xf4b   : >> { %v1924_v36 = vmul.f32 %v1922_v35, %v1922_v35 }
 0xf4d   : >> { %v1926_v39 = vsel %vm660_vm4, %v1924_v36, 0.0 }
 0xf4e   : >> { %1927 = vadd.xlane.f32.xlu1 %v1926_v39  ;;  %v1919_v40 = vpop.xlane.xlu1 %1918 }
 0xf4f   : >> { %v1921_v41 = vmul.f32 %v1919_v40, %v2763_v16 }
 0xf51   : >> { %v1923_v42 = vsub.f32 %v1909_v29, %v1921_v41 }
 0xf53   : >> { %v1925_v33 = vmul.f32 %v1923_v42, %v1923_v42 }
 0xf55   : >> { %v1929_v43 = vsel %vm1762_vm7, %v1925_v33, 0.0 }
 0xf56   : >> { %1930 = vadd.xlane.f32.xlu1 %v1929_v43 }
 0xfc1   : >> { %v1928_v34 = vpop.xlane.xlu1 %1927 }
 0xfc2   : >> { %v1932_v44 = vmul.f32 %v1928_v34, %v2763_v16 }
 0xfc4   : >> { %v1934_v45 = vadd.f32 1e-05, %v1932_v44 }
 0xfc6   : >> { %2302 = vrsqrt.f32 %v1934_v45  ;;  %vm1942_vm3 = vweird.f32 %v1934_v45 }
 0xfc9   : >> { %v1931_v46 = vpop.xlane.xlu1 %1930 }
 0xfca   : >> { %v1933_v47 = vmul.f32 %v1931_v46, %v2763_v16 }
 0xfcc   : >> { %v2303_v48 = vpop.eup %2302  ;;  %v1935_v49 = vadd.f32 1e-05, %v1933_v47 }
 0xfcd   : >> { %v1937_v50 = vmul.f32 %v2303_v48, %v1934_v45  ;;  %vm1943_vm15 = vweird.f32 %v2303_v48 }
 0xfce   : >> { %2304 = vrsqrt.f32 %v1935_v49  ;;  %vm1944_vm5 = vmor %vm1942_vm3, %vm1943_vm15  ;;  %vm1952_vm8 = vweird.f32 %v1935_v49 }
 0xfcf   : >> { %v1938_v51 = vmul.f32 %v2303_v48, %v1937_v50 }
 0xfd1   : >> { %v1939_v52 = vmul.f32 0.5, %v1938_v51 }
 0xfd3   : >> { %v1940_v53 = vsub.f32 1.5, %v1939_v52 }
 0xfd4   : >> { %v2305_v54 = vpop.eup %2304 }
 0xfd5   : >> { %v1941_v38 = vmul.f32 %v2303_v48, %v1940_v53  ;;  %v1947_v55 = vmul.f32 %v2305_v54, %v1935_v49  ;;  %vm1953_vm6 = vweird.f32 %v2305_v54 }
 0xfd6   : >> { %vm1954_vm9 = vmor %vm1952_vm8, %vm1953_vm6 }
 0xfd7   : >> { %v1945_v16 = vsel %vm1944_vm5, %v2303_v48, %v1941_v38  ;;  %v1948_v57 = vmul.f32 %v2305_v54, %v1947_v55 }
 0xfd8   : >> { %v1956_v60 = vmul.f32 %v1945_v16, %v1922_v35 }
 0xfd9   : >> { %v1949_v61 = vmul.f32 0.5, %v1948_v57 }
 0xfda   : >> { %v1961_v63 = vmul.f32 %v2230_v56, %v1956_v60 }
 0xfdb   : >> { %v1950_v0 = vsub.f32 1.5, %v1949_v61 }
 0xfdc   : >> { %v1966_v1 = vadd.f32 %v2231_v58, %v1961_v63  }
 0xfdd   : >> { %v1951_v59 = vmul.f32 %v2305_v54, %v1950_v0 }
 0xfde   : >> { %v2898_v11 = vmov %v1966_v1  ;;  %v1968_v8 = vadd.f32 (%p643_p4), %v1966_v1, %v2492_v21 }
 0xfdf   : >> { %v1955_v2 = vsel %vm1954_vm9, %v2305_v54, %v1951_v59 }
 0xfe0   : >> { %v1957_v4 = vmul.f32 %v1955_v2, %v1923_v42  ;;  %1971 = vst.msk [vmem:[%s2474_s23] sm:$0xff] (%p643_p4), %vm660_vm4, %v1968_v8 }
 0xfe2   : >> { %v1962_v7 = vmul.f32 %v2230_v56, %v1957_v4  ;;  %645 = sbr.rel (!%p643_p4) target bundleno = 162 (0xa2), region = 135 }
 0xfe4   : >> { %v1967_v5 = vadd.f32 %v2231_v58, %v1962_v7  }
 0xfe6   : >> { %v2897_v12 = vmov %v1967_v5  ;;  %v1969_v6 = vadd.f32 (%p643_p4), %v1967_v5, %v2494_v25 }
 0xfe8   : > { %1973 = vst.msk [vmem:[%s2474_s23 + $0x8] sm:$0x3f] %vm1762_vm7, %v1969_v6 }
 0xfe9 PF: > { %s26_s21 = sadd.s32 1, %s2324_s21  }
 0xfea   : > { %p23_p5 = scmp.ge.s32.totalorder %s26_s21, 4  }
 0xfec   :  { %25 = sbr.rel (!%p23_p5) target bundleno = 2 (0x2), region = 146 }

// kernel: forward.3
= control target key start
LH: loop header
LB: loop body
LE: loop exit
PB: predicated region body
PF: predicated region fallthrough
CT: control target
= control target key end

     0   :  { %s3917_s0 = inlined_call_operand.vmem [shape: f32[2,8,4], index: 0, kind: input, shape index: {}]   ;;  %s3918_s1 = inlined_call_operand.vmem [shape: f32[2,14,32], index: 1, kind: input, shape index: {}]   ;;  %s3919_s2 = inlined_call_operand.vmem [shape: f32[8,32], index: 2, kind: input, shape index: {}]   ;;  %s3920_s3 = inlined_call_operand.vmem [shape: f32[4,32], index: 3, kind: input, shape index: {}]   ;;  %s3921_s4 = inlined_call_operand.vmem [shape: f32[1,32], index: 4, kind: input, shape index: {}]   ;;  %s3922_s5 = inlined_call_operand.vmem [shape: f32[8,32,96], index: 5, kind: input, shape index: {}]   ;;  %s3923_s6 = inlined_call_operand.vmem [shape: f32[8,1,96], index: 6, kind: input, shape index: {}]   ;;  %s3924_s7 = inlined_call_operand.vmem [shape: f32[8,32,32], index: 7, kind: input, shape index: {}]   ;;  %s3925_s8 = inlined_call_operand.vmem [shape: f32[8,1,32], index: 8, kind: input, shape index: {}]   ;;  %s3926_s9 = inlined_call_operand.vmem [shape: f32[8,1,32], index: 9, kind: input, shape index: {}]   ;;  %s3927_s10 = inlined_call_operand.vmem [shape: f32[8,1,32], index: 10, kind: input, shape index: {}]   ;;  %s3928_s11 = inlined_call_operand.vmem [shape: f32[8,32,32], index: 11, kind: input, shape index: {}]   ;;  %s3929_s12 = inlined_call_operand.vmem [shape: f32[8,1,32], index: 12, kind: input, shape index: {}]   ;;  %s3930_s13 = inlined_call_operand.vmem [shape: f32[8,32,64], index: 13, kind: input, shape index: {}]   ;;  %s3931_s14 = inlined_call_operand.vmem [shape: f32[8,1,64], index: 14, kind: input, shape index: {}]   ;;  %s3932_s15 = inlined_call_operand.vmem [shape: f32[8,32,32], index: 15, kind: input, shape index: {}]   ;;  %s3933_s16 = inlined_call_operand.vmem [shape: f32[8,1,32], index: 16, kind: input, shape index: {}]   ;;  %s3934_s17 = inlined_call_operand.vmem [shape: f32[8,1,32], index: 17, kind: input, shape index: {}]   ;;  %s3935_s18 = inlined_call_operand.vmem [shape: f32[8,1,32], index: 18, kind: input, shape index: {}]   ;;  %s3936_s19 = inlined_call_operand.vmem [shape: f32[8,32,128], index: 19, kind: input, shape index: {}]   ;;  %s3937_s20 = inlined_call_operand.vmem [shape: f32[8,1,128], index: 20, kind: input, shape index: {}]   ;;  %s3938_s21 = inlined_call_operand.vmem [shape: f32[8,128,32], index: 21, kind: input, shape index: {}]   ;;  %s3939_s22 = inlined_call_operand.vmem [shape: f32[8,1,32], index: 22, kind: input, shape index: {}]   ;;  %s3940_s23 = inlined_call_operand.vmem [shape: f32[8,1,32], index: 23, kind: input, shape index: {}]   ;;  %s3941_s24 = inlined_call_operand.vmem [shape: f32[8,1,32], index: 24, kind: input, shape index: {}]   ;;  %s3942_s25 = inlined_call_operand.vmem [shape: f32[32,128], index: 25, kind: input, shape index: {}]   ;;  %s3943_s26 = inlined_call_operand.hbm [shape: f32[1,128], index: 26, kind: input, shape index: {}]   ;;  %s3944_s27 = inlined_call_operand.vmem [shape: f32[2,8,128], index: 27, kind: output, shape index: {}]  }
   0x1   :  { %3981 = sst [smem:[#allocation6_spill]] %s3917_s0 }
   0x2   :  { %3982 = sst [smem:[#allocation7_spill]] %s3918_s1 }
   0x3   :  { %3983 = sst [smem:[#allocation8_spill]] %s3919_s2 }
   0x4   :  { %3984 = sst [smem:[#allocation9_spill]] %s3920_s3 }
   0x5   :  { %3985 = sst [smem:[#allocation10_spill]] %s3921_s4 }
   0x6   :  { %3986 = sst [smem:[#allocation11_spill]] %s3922_s5 }
   0x7   :  { %3987 = sst [smem:[#allocation12_spill]] %s3923_s6 }
   0x8   :  { %3988 = sst [smem:[#allocation13_spill]] %s3924_s7 }
   0x9   :  { %3989 = sst [smem:[#allocation14_spill]] %s3925_s8 }
   0xa   :  { %3990 = sst [smem:[#allocation15_spill]] %s3926_s9 }
   0xb   :  { %3991 = sst [smem:[#allocation16_spill]] %s3927_s10 }
   0xc   :  { %3992 = sst [smem:[#allocation17_spill]] %s3928_s11 }
   0xd   :  { %3993 = sst [smem:[#allocation18_spill]] %s3942_s25 }
   0xe   :  { %3994 = sst [smem:[#allocation19_spill]] %s3943_s26 }
   0xf   :  { %3995 = sst [smem:[#allocation20_spill]] %s3944_s27 }
  0x10   :  { %32 = vsyncpa [#allocation3], 0  ;;  %s3393_s7 = smov 0  }
  0x11 LB: > { %3996 = sst [smem:[#allocation5_spill]] %s3217_s7  ;;  %s2902_s4 = sadd.s32 4294967295, %s3217_s7   ;;  %s3217_s7 = sphi %s3393_s7, %s38_s7  }
  0x12   : > { %p2904_p0 = scmp.ge.s32.totalorder %s3217_s7, 1  ;;  %p646_p1 = scmp.lt.s32.totalorder %s3217_s7, 3 }
  0x13   : > { %s3997_s26 = sld [smem:[#allocation19_spill]]  ;;  %p3030_p3 = scmp.eq.s32.totalorder %s2902_s4, 0 }
  0x14   : > { %p647_p2 = pnand %p2904_p0, %p646_p1  ;;  %s3227_s5 = smov [#allocation2]  }
  0x15   : > { %s732_s28 = sshll.u32 %s3227_s5, 4  ;;  %s733_s28 = int_to_ptr.vmem [resolvable:$true] %s732_s28 }
  0x16   : > { %p3026_p4 = pneg %p647_p2  ;;  %760 = sbr.rel (%p647_p2) target bundleno = 6731 (0x1a4b), region = 128 }
  0x18   : > { %p3027_p5 = pnand %p3030_p3, %p3026_p4 }
  0x19   : > { %s730_s9 = sshll.u32 %s3997_s26, 4  ;;  %s731_s9 = int_to_ptr.hbm [resolvable:$true] %s730_s9 }
  0x1a   : > { %3029 = dma.hbm_to_vmem [thread:$0]  (!%p3027_p5), %s731_s9, 16, %s733_s28, [#allocation3]  }
  0x1b   : > { %3212 = dma.done.wait (%p3030_p3), [#allocation3], 16  }
  0x1c   : > { %3214 = vsyncadd (%p3030_p3), [#allocation3], 4294967280  ;;  %p836_p6 = scmp.lt.s32.totalorder %s2902_s4, 1  ;;  %vm861_vm0 = vcmask 1043456   ;;  %s3998_s6 = sld [smem:[#allocation6_spill]]  ;;  %vm857_vm1 = vcmask 31744   ;;  %v887_v4 = vlaneseq }
  0x1d   : > { %s3999_s8 = sld [smem:[#allocation7_spill]]  ;;  %v3228_v7 = vmov -1e+30   ;;  %s3437_s29 = smov 0  }
  0x1e   : > { %s4032_s4 = smov (!%p836_p6, %s2902_s4), 1  ;;  %s4000_s27 = sld [smem:[#allocation20_spill]]  ;;  %v888_v5 = vshrl.u32 %v887_v4, 7  ;;  %v890_v6 = vand.u32 127, %v887_v4 }
  0x1f   : > { %s2909_s0 = sshll.u32 %s4032_s4, 3  ;;  %s3021_s10 = sshll.u32 %s4032_s4, 4 }
  0x20   : > { %s4001_s25 = sld [smem:[#allocation9_spill]]  ;;  %vm891_vm2 = vcmp.le.s32.totalorder %v890_v6, %v888_v5 }
  0x21   : > { %v3424_v8 = vsel %vm891_vm2, 0.0, %v3228_v7  ;;  %s4002_s7 = sld [smem:[#allocation10_spill]] }
  0x22   : > { %s839_s11 = scalar_lea.vmem %s3998_s6, %s2909_s0 }
  0x23   : > { %s844_s30 = scalar_lea.vmem %s3999_s8, %s3021_s10  ;;  %v849_v1 = vld [vmem:[%s839_s11] sm:$0xff]  ;;  %s4003_s10 = sld [smem:[#allocation8_spill]] }
  0x24   : > { %s3413_s9 = scalar_lea.vmem %s4000_s27, %s2909_s0  ;;  %v3418_v2 = vld [vmem:[%s844_s30] sm:$0xff]  ;;  %v3421_v3 = vld [vmem:[%s844_s30 + $0x8] sm:$0x3f] }
  0x26   : > { %v852_v0 = vld [vmem:[%s4001_s25] sm:$0xf] }
  0x27   : > { %2913 = vmatpush.msk.msra.mxu0 %vm861_vm0, %v852_v0  ;;  %v3082_v9 = vld [vmem:[%s4002_s7] ss:$0 sm:$0xff] }
  0x28   : > { %2914 = vmatmul.msk.f32.vlgmr.msra.gmra.mxu0 %vm857_vm1, %v849_v1 }
  0x29   : > { %v885_v11 = vld [vmem:[%s4003_s10] sm:$0xff] }
  0xa5   : > { %v882_v10 = vpop.f32.mrf.mxu0 }
  0xa6   : > { %v3432_v12 = vadd.f32 %v3082_v9, %v882_v10 }
  0xa8   : > { %v886_v13 = vadd.f32 %v885_v11, %v3432_v12  }
  0xa9 LB: >> { %s3446_s1 = sshll.u32 %s3225_s29, 5  ;;  %s4004_s2 = sld [smem:[#allocation12_spill]]  ;;  %vm911_vm3 = vcmask 261120   ;;  %vm975_vm4 = vcmask 64512   ;;  %vm1839_vm9 = vcmask 113664   ;;  %vm1859_vm10 = vcmask 1045504   ;;  %s3225_s29 = sphi %s3437_s29, %s898_s29   ;;  %v3221_v13 = vphi %v886_v13, %v4027_v13  }
  0xaa   : >> { %s4005_s5 = sld [smem:[#allocation11_spill]]  ;;  %s3974_s26 = smov 92  }
  0xab   : >> { %s3976_s4 = smov 96   ;;  %s3978_s7 = smov 124  }
  0xac   : >> { %s3232_s25 = smov 60   ;;  %s3972_s0 = smov 120  }
  0xad   : >> { %s3970_s10 = smov 116   ;;  %s3235_s6 = smov 64  }
  0xae   : >> { %s3966_s11 = smov 84   ;;  %s3952_s30 = smov 80  }
  0xaf   : >> { %s906_s3 = scalar_lea.vmem %s4004_s2, %s3225_s29  ;;  %s3238_s2 = smov 56  }
  0xb0   : >> { %s901_s28 = scalar_lea.vmem %s4005_s5, %s3446_s1  ;;  %v3083_v18 = vld [vmem:[%s906_s3] ss:$0 sm:$0xff]  ;;  %s4006_s3 = sld [smem:[#allocation14_spill]] }
  0xb1   : >> { %v905_v14 = vld [vmem:[%s901_s28 + $0x18] sm:$0xff]  ;;  %v904_v15 = vld [vmem:[%s901_s28 + $0x10] sm:$0xff]  ;;  %v903_v16 = vld [vmem:[%s901_s28 + $0x8] sm:$0xff]  ;;  %s3950_s5 = smov 76  }
  0xb2   : >> { %927 = vmatpush.msra.mxu0 %v905_v14  ;;  %v902_v17 = vld [vmem:[%s901_s28] sm:$0xff]  ;;  %s4007_s28 = sld [smem:[#allocation13_spill]] }
  0xb4   : >> { %928 = vmatpush.msra.mxu0 %v904_v15 }
  0xb6   : >> { %929 = vmatpush.msra.mxu0 %v903_v16  ;;  %s940_s8 = scalar_lea.vmem %s4006_s3, %s3225_s29  ;;  %s4010_s3 = sld [smem:[#allocation17_spill]] }
  0xb8   : >> { %930 = vmatpush.msra.mxu0 %v902_v17 }
  0xb9   : >> { %2916 = vmatmul.msk.f32.vlgmr.msra.gmra.mxu0 %vm911_vm3, %v3221_v13 }
  0xbc   : >> { %s1726_s27 = scalar_lea.vmem %s4010_s3, %s3446_s1 }
 0x136   : >> { %v932_v19 = vpop.f32.mrf.mxu0 }
 0x137   : >> { %v3458_v20 = vadd.f32 %v3083_v18, %v932_v19 }
 0x139   : >> { %1042 = vrot.lane.b32.xlu2 %v3458_v20, %s3974_s26  ;;  %948 = vrot.lane.b32.xlu0 %v3458_v20, %s3976_s4  ;;  %v3465_v21 = vmul.f32 0.5, %v3458_v20  ;;  %s1759_s4 = scalar_lea.vmem %s3930_s13, %s3446_s1  ;;  %s4015_s26 = smov 120  }
 0x141   : >> { %1040 = vrot.lane.b32.xlu2 %v3465_v21, %s3978_s7  ;;  %s4016_s7 = smov 116  }
 0x193   : >> { %v1043_v34 = vpop.permute.xlu2 %1042 }
 0x19b   : >> { %v1041_v37 = vpop.permute.xlu2 %1040 }
 0x1ab   : >> { %v949_v22 = vpop.permute.xlu0 %948 }
 0x1ac   : >> { %2917 = vmatpush.xpose.msk.msra.mxu1 %vm857_vm1, %v949_v22 }
 0x1af   : >> { %2918 = vmatmul.msk.f32.vlgmr.msra.gmra.mxu1 %vm857_vm1, %v3465_v21 }
 0x22c   : >> { %v972_v23 = vpop.f32.mrf.mxu1 }
 0x22d   : >> { %v973_v24 = vadd.f32 %v972_v23, %v3424_v8 }
 0x22f   : >> { %v976_v25 = vsel %vm975_vm4, %v973_v24, -inf }
 0x230   : >> { %977 = vmax.xlane.f32.xlu0 %v976_v25 }
 0x244   : >> { %1079 = vrot.lane.b32.xlu0 %v3458_v20, %s3232_s25  ;;  %s3492_s25 = scalar_lea.vmem %s4007_s28, %s3446_s1  ;;  %s3954_s28 = smov 108  }
 0x245   : >> { %v936_v38 = vld [vmem:[%s3492_s25] sm:$0xff]  ;;  %v937_v9 = vld [vmem:[%s3492_s25 + $0x8] sm:$0xff] }
 0x246   : >> { %2920 = vmatpush.msk.msrb.mxu1 %vm861_vm0, %v936_v38  ;;  %v1105_v39 = vrot.slane %v936_v38, 4  ;;  %2930 = vmatpush.msk.msra.mxu3 %vm861_vm0, %v937_v9  ;;  %v1289_v19 = vrot.slane %v937_v9, 4 }
 0x248   : >> { %2925 = vmatpush.msk.msra.mxu1 %vm861_vm0, %v1105_v39 }
 0x24c   : >> { %1132 = vrot.lane.b32.xlu0 %v3465_v21, %s3972_s0  ;;  %s3699_s0 = scalar_lea.vmem %s3932_s15, %s3446_s1 }
 0x254   : >> { %1224 = vrot.lane.b32.xlu0 %v3465_v21, %s3970_s10  ;;  %s1764_s10 = scalar_lea.vmem %s3931_s14, %s3225_s29 }
 0x2a3   : >> { %v978_v26 = vpop.xlane.xlu0 %977 }
 0x2a4   : >> { %v979_v27 = vsub.f32 %v973_v24, %v978_v26 }
 0x2a6   : >> { %v980_v28 = vmul.f32 1.442695, %v979_v27 }
 0x2a8   : >> { %3096 = vpow2.f32 %v980_v28 }
 0x2ae   : >> { %v3097_v29 = vpop.eup %3096 }
 0x2af   : >> { %v982_v30 = vsel %vm975_vm4, %v3097_v29, 0.0 }
 0x2b0   : >> { %983 = vadd.xlane.f32.xlu1 %v982_v30 }
 0x2b6   : >> { %v1080_v31 = vpop.permute.xlu0 %1079 }
 0x2b7   : >> { %1100 = vmatpush.msrb.mxu0 %v1080_v31 }
 0x2be   : >> { %v1133_v53 = vpop.permute.xlu0 %1132 }
 0x2c6   : >> { %v1225_v56 = vpop.permute.xlu0 %1224 }
 0x2c9   : >> { %987 = vrot.lane.b32.xlu1 %v3458_v20, %s3235_s6  ;;  %s3968_s6 = smov 88  }
 0x323   : >> { %v984_v32 = vpop.xlane.xlu1 %983 }
 0x324   : >> { %3098 = vrcp.f32 %v984_v32 }
 0x32a   : >> { %v3099_v33 = vpop.eup %3098 }
 0x32b   : >> { %v986_v36 = vmul.f32 %v3099_v33, %v3097_v29 }
 0x33b   : >> { %v988_v35 = vpop.permute.xlu1 %987 }
 0x33c   : >> { %1008 = vmatpush.msra.mxu2 %v988_v35 }
 0x33d   : >> { %2919 = vmatmul.msk.f32.vlgmr.msra.gmra.mxu2 %vm975_vm4, %v986_v36 }
 0x33e   : >> { %2922 = vmatpush.xpose.msk.msrb.mxu2 %vm857_vm1, %v1043_v34  ;;  %v3084_v34 = vld [vmem:[%s940_s8] ss:$0 sm:$0xff]  ;;  %s3244_s8 = smov 48  }
 0x345   : >> { %2923 = vmatmul.msk.f32.vlgmr.msrb.gmra.mxu2 %vm857_vm1, %v1041_v37 }
 0x3c0   : >> { %v1010_v40 = vpop.f32.mrf.mxu2 }
 0x3c1   : >> { %2921 = vmatmul.msk.f32.vlgmr.msrb.gmra.mxu1 %vm857_vm1, %v1010_v40 }
 0x3c8   : >> { %v1065_v41 = vpop.f32.mrf.mxu2 }
 0x3c9   : >> { %v1066_v42 = vadd.f32 %v1065_v41, %v3424_v8 }
 0x3cb   : >> { %v1068_v43 = vsel %vm975_vm4, %v1066_v42, -inf }
 0x3cc   : >> { %1069 = vmax.xlane.f32.xlu2 %v1068_v43 }
 0x3e4   : >> { %1134 = vrot.lane.b32.xlu2 %v3458_v20, %s3968_s6  ;;  %s4025_s6 = smov 72  }
 0x43e   : >> { %v3513_v60 = vpop.f32.mrf.mxu1 }
 0x43f   : >> { %v1070_v44 = vpop.xlane.xlu2 %1069  ;;  %v1039_v35 = vadd.f32 %v3084_v34, %v3513_v60 }
 0x440   : >> { %v1071_v45 = vsub.f32 %v1066_v42, %v1070_v44 }
 0x442   : >> { %v1072_v46 = vmul.f32 1.442695, %v1071_v45 }
 0x444   : >> { %3100 = vpow2.f32 %v1072_v46 }
 0x447   : >> { %v1135_v47 = vpop.permute.xlu2 %1134 }
 0x448   : >> { %2927 = vmatpush.xpose.msk.msra.mxu0 %vm857_vm1, %v1135_v47 }
 0x44a   : >> { %v3101_v48 = vpop.eup %3100 }
 0x44b   : >> { %v1074_v49 = vsel %vm975_vm4, %v3101_v48, 0.0 }
 0x44c   : >> { %1075 = vadd.xlane.f32.xlu1 %v1074_v49 }
 0x465   : >> { %1226 = vrot.lane.b32.xlu1 %v3458_v20, %s3966_s11  ;;  %s1803_s11 = scalar_lea.vmem %s3933_s16, %s3225_s29 }
 0x4bf   : >> { %v1076_v50 = vpop.xlane.xlu1 %1075 }
 0x4c0   : >> { %3102 = vrcp.f32 %v1076_v50 }
 0x4c6   : >> { %v3103_v51 = vpop.eup %3102 }
 0x4c7   : >> { %v1078_v52 = vmul.f32 %v3103_v51, %v3101_v48 }
 0x4c9   : >> { %2924 = vmatmul.msk.f32.vlgmr.msrb.gmra.mxu0 %vm975_vm4, %v1078_v52  ;;  %v938_v52 = vld [vmem:[%s3492_s25 + $0x10] sm:$0xff] }
 0x4d1   : >> { %2928 = vmatmul.msk.f32.vlgmr.msra.gmra.mxu0 %vm857_vm1, %v1133_v53 }
 0x4d7   : >> { %v1227_v54 = vpop.permute.xlu1 %1226 }
 0x4d8   : >> { %2932 = vmatpush.xpose.msk.msrb.mxu1 %vm857_vm1, %v1227_v54 }
 0x546   : >> { %v1102_v55 = vpop.f32.mrf.mxu0 }
 0x547   : >> { %2926 = vmatmul.msk.f32.vlgmr.msra.gmra.mxu1 %vm857_vm1, %v1102_v55 }
 0x54e   : >> { %v1157_v57 = vpop.f32.mrf.mxu0 }
 0x54f   : >> { %v1158_v58 = vadd.f32 %v1157_v57, %v3424_v8  ;;  %2933 = vmatmul.msk.f32.vlgmr.msrb.gmra.mxu1 %vm857_vm1, %v1225_v56 }
 0x551   : >> { %v1160_v59 = vsel %vm975_vm4, %v1158_v58, -inf }
 0x552   : >> { %1161 = vmax.xlane.f32.xlu2 %v1160_v59  ;;  %v1473_v59 = vrot.slane %v938_v52, 4 }
 0x5c4   : >> { %v3515_v61 = vpop.f32.mrf.mxu1 }
 0x5c5   : >> { %v1162_v62 = vpop.xlane.xlu2 %1161  ;;  %v1131_v36 = vadd.f32 %v3515_v61, %v1039_v35 }
 0x5c6   : >> { %v1163_v63 = vsub.f32 %v1158_v58, %v1162_v62 }
 0x5c8   : >> { %v1164_v0 = vmul.f32 1.442695, %v1163_v63 }
 0x5ca   : >> { %3104 = vpow2.f32 %v1164_v0 }
 0x5cc   : >> { %v1249_v1 = vpop.f32.mrf.mxu1 }
 0x5cd   : >> { %v1250_v4 = vadd.f32 %v1249_v1, %v3424_v8 }
 0x5cf   : >> { %v1252_v5 = vsel %vm975_vm4, %v1250_v4, -inf }
 0x5d0   : >> { %v3105_v6 = vpop.eup %3104  ;;  %1253 = vmax.xlane.f32.xlu0 %v1252_v5 }
 0x5d1   : >> { %v1166_v7 = vsel %vm975_vm4, %v3105_v6, 0.0 }
 0x5d2   : >> { %1167 = vadd.xlane.f32.xlu1 %v1166_v7 }
 0x5e4   : >> { %1171 = vrot.lane.b32.xlu0 %v3458_v20, %s3238_s2  ;;  %s3242_s2 = smov 52  }
 0x5eb   : >> { %1318 = vrot.lane.b32.xlu1 %v3458_v20, %s3952_s30  ;;  %s3964_s30 = smov 104  }
 0x5ec   : >> { %1410 = vrot.lane.b32.xlu0 %v3458_v20, %s3950_s5  ;;  %s3956_s5 = smov 112  }
 0x5f4   : >> { %1408 = vrot.lane.b32.xlu0 %v3465_v21, %s3954_s28  ;;  %s3247_s28 = smov 44  }
 0x643   : >> { %v1254_v10 = vpop.xlane.xlu0 %1253 }
 0x644   : >> { %v1255_v11 = vsub.f32 %v1250_v4, %v1254_v10 }
 0x645   : >> { %v1168_v15 = vpop.xlane.xlu1 %1167 }
 0x646   : >> { %v1256_v14 = vmul.f32 1.442695, %v1255_v11 }
 0x648   : >> { %3106 = vpow2.f32 %v1256_v14 }
 0x649   : >> { %3108 = vrcp.f32 %v1168_v15 }
 0x64e   : >> { %v3107_v16 = vpop.eup %3106 }
 0x64f   : >> { %v1258_v17 = vsel %vm975_vm4, %v3107_v16, 0.0  ;;  %v3109_v18 = vpop.eup %3108 }
 0x650   : >> { %1259 = vadd.xlane.f32.xlu2 %v1258_v17  ;;  %v1170_v22 = vmul.f32 %v3109_v18, %v3105_v6 }
 0x656   : >> { %v1172_v23 = vpop.permute.xlu0 %1171 }
 0x657   : >> { %1192 = vmatpush.msra.mxu2 %v1172_v23 }
 0x658   : >> { %2929 = vmatmul.msk.f32.vlgmr.msra.gmra.mxu2 %vm975_vm4, %v1170_v22 }
 0x659   : >> { %2935 = vmatpush.msk.msrb.mxu2 %vm861_vm0, %v1289_v19 }
 0x65d   : >> { %v1319_v24 = vpop.permute.xlu1 %1318 }
 0x65e   : >> { %2937 = vmatpush.xpose.msk.msrb.mxu3 %vm857_vm1, %v1319_v24  ;;  %v1411_v25 = vpop.permute.xlu0 %1410 }
 0x65f   : >> { %2942 = vmatpush.xpose.msk.msra.mxu2 %vm857_vm1, %v1411_v25 }
 0x666   : >> { %v1409_v33 = vpop.permute.xlu0 %1408 }
 0x668   : >> { %1263 = vrot.lane.b32.xlu2 %v3458_v20, %s3242_s2  ;;  %s3958_s2 = smov 68  }
 0x670   : >> { %1316 = vrot.lane.b32.xlu2 %v3465_v21, %s3956_s5  ;;  %s3962_s5 = smov 100  }
 0x6c3   : >> { %v1260_v26 = vpop.xlane.xlu2 %1259 }
 0x6c4   : >> { %3110 = vrcp.f32 %v1260_v26 }
 0x6ca   : >> { %v3111_v27 = vpop.eup %3110 }
 0x6cb   : >> { %v1262_v28 = vmul.f32 %v3111_v27, %v3107_v16  ;;  %v1264_v29 = vpop.permute.xlu2 %1263 }
 0x6cc   : >> { %1284 = vmatpush.msrb.mxu0 %v1264_v29 }
 0x6cd   : >> { %2934 = vmatmul.msk.f32.vlgmr.msrb.gmra.mxu0 %vm975_vm4, %v1262_v28 }
 0x6ce   : >> { %2940 = vmatpush.msk.msra.mxu0 %vm861_vm0, %v938_v52  ;;  %v3252_v52 = vmov 32.0  }
 0x6d3   : >> { %v1317_v31 = vpop.permute.xlu2 %1316 }
 0x6db   : >> { %v1194_v30 = vpop.f32.mrf.mxu2 }
 0x6dc   : >> { %2931 = vmatmul.msk.f32.vlgmr.msra.gmra.mxu3 %vm857_vm1, %v1194_v30 }
 0x6e4   : >> { %2938 = vmatmul.msk.f32.vlgmr.msrb.gmra.mxu3 %vm857_vm1, %v1317_v31 }
 0x74a   : >> { %v1286_v32 = vpop.f32.mrf.mxu0 }
 0x74b   : >> { %2936 = vmatmul.msk.f32.vlgmr.msrb.gmra.mxu2 %vm857_vm1, %v1286_v32 }
 0x753   : >> { %2943 = vmatmul.msk.f32.vlgmr.msra.gmra.mxu2 %vm857_vm1, %v1409_v33 }
 0x75f   : >> { %v1220_v37 = vpop.f32.mrf.mxu3 }
 0x760   : >> { %v1223_v38 = vadd.f32 %v1220_v37, %v1131_v36 }
 0x767   : >> { %v1341_v39 = vpop.f32.mrf.mxu3 }
 0x768   : >> { %v1342_v40 = vadd.f32 %v1341_v39, %v3424_v8 }
 0x76a   : >> { %v1344_v41 = vsel %vm975_vm4, %v1342_v40, -inf }
 0x76b   : >> { %1345 = vmax.xlane.f32.xlu2 %v1344_v41 }
 0x7ce   : >> { %v1312_v42 = vpop.f32.mrf.mxu2 }
 0x7cf   : >> { %v1315_v43 = vadd.f32 %v1312_v42, %v1223_v38 }
 0x7d6   : >> { %v1433_v44 = vpop.f32.mrf.mxu2 }
 0x7d7   : >> { %v1434_v45 = vadd.f32 %v1433_v44, %v3424_v8 }
 0x7d9   : >> { %v1436_v46 = vsel %vm975_vm4, %v1434_v45, -inf }
 0x7da   : >> { %1437 = vmax.xlane.f32.xlu0 %v1436_v46 }
 0x7de   : >> { %v1346_v47 = vpop.xlane.xlu2 %1345 }
 0x7df   : >> { %v1347_v48 = vsub.f32 %v1342_v40, %v1346_v47 }
 0x7e1   : >> { %v1348_v49 = vmul.f32 1.442695, %v1347_v48 }
 0x7e3   : >> { %3112 = vpow2.f32 %v1348_v49 }
 0x7e9   : >> { %v3113_v50 = vpop.eup %3112 }
 0x7ea   : >> { %v1350_v51 = vsel %vm975_vm4, %v3113_v50, 0.0 }
 0x7eb   : >> { %1351 = vadd.xlane.f32.xlu1 %v1350_v51 }
 0x7ee   : >> { %1355 = vrot.lane.b32.xlu0 %v3458_v20, %s3244_s8  ;;  %s3250_s8 = smov 40  }
 0x7f6   : >> { %1500 = vrot.lane.b32.xlu0 %v3465_v21, %s3964_s30 }
 0x7fe   : >> { %1594 = vrot.lane.b32.xlu0 %v3458_v20, %s3958_s2  ;;  %s3251_s2 = smov 36  }
 0x804   : >> { %1447 = vrot.lane.b32.xlu1 %v3458_v20, %s3247_s28  ;;  %s3960_s28 = smov 72  }
 0x80c   : >> { %1592 = vrot.lane.b32.xlu1 %v3465_v21, %s3962_s5  ;;  %s4009_s5 = sld [smem:[#allocation16_spill]] }
 0x812   : >> { %s1687_s30 = scalar_lea.vmem %s4009_s5, %s3225_s29 }
 0x84d   : >> { %v1438_v53 = vpop.xlane.xlu0 %1437 }
 0x84e   : >> { %v1439_v54 = vsub.f32 %v1434_v45, %v1438_v53 }
 0x850   : >> { %v1440_v55 = vmul.f32 1.442695, %v1439_v54 }
 0x852   : >> { %3114 = vpow2.f32 %v1440_v55 }
 0x858   : >> { %v3115_v56 = vpop.eup %3114 }
 0x859   : >> { %v1442_v57 = vsel %vm975_vm4, %v3115_v56, 0.0 }
 0x85a   : >> { %1443 = vadd.xlane.f32.xlu2 %v1442_v57 }
 0x85e   : >> { %v1352_v58 = vpop.xlane.xlu1 %1351 }
 0x85f   : >> { %3116 = vrcp.f32 %v1352_v58 }
 0x860   : >> { %v1356_v60 = vpop.permute.xlu0 %1355 }
 0x861   : >> { %1376 = vmatpush.msra.mxu1 %v1356_v60 }
 0x863   : >> { %2945 = vmatpush.msk.msrb.mxu1 %vm861_vm0, %v1473_v59 }
 0x865   : >> { %v3117_v61 = vpop.eup %3116 }
 0x866   : >> { %v1354_v21 = vmul.f32 %v3117_v61, %v3113_v50 }
 0x868   : >> { %2939 = vmatmul.msk.f32.vlgmr.msra.gmra.mxu1 %vm975_vm4, %v1354_v21  ;;  %v1501_v62 = vpop.permute.xlu0 %1500 }
 0x870   : >> { %v1595_v63 = vpop.permute.xlu0 %1594 }
 0x871   : >> { %2952 = vmatpush.xpose.msk.msra.mxu1 %vm857_vm1, %v1595_v63  ;;  %v1762_v63 = vld [vmem:[%s1759_s4 + $0x10] sm:$0xff] }
 0x872   : >> { %1502 = vrot.lane.b32.xlu2 %v3458_v20, %s3960_s28  ;;  %s4017_s28 = smov 88  }
 0x876   : >> { %v1448_v0 = vpop.permute.xlu1 %1447 }
 0x877   : >> { %1468 = vmatpush.msra.mxu3 %v1448_v0  ;;  %v1761_v0 = vld [vmem:[%s1759_s4 + $0x8] sm:$0xff] }
 0x87e   : >> { %v1593_v10 = vpop.permute.xlu1 %1592 }
 0x8cd   : >> { %v1444_v1 = vpop.xlane.xlu2 %1443 }
 0x8ce   : >> { %3118 = vrcp.f32 %v1444_v1  ;;  %v1760_v1 = vld [vmem:[%s1759_s4] sm:$0xff] }
 0x8d4   : >> { %v3119_v4 = vpop.eup %3118 }
 0x8d5   : >> { %v1446_v5 = vmul.f32 %v3119_v4, %v3115_v56  ;;  %v1503_v6 = vpop.permute.xlu2 %1502  ;;  %v1730_v4 = vld [vmem:[%s1726_s27 + $0x18] sm:$0xff] }
 0x8d6   : >> { %2947 = vmatpush.xpose.msk.msrb.mxu0 %vm857_vm1, %v1503_v6  ;;  %v1728_v6 = vld [vmem:[%s1726_s27 + $0x8] sm:$0xff] }
 0x8d7   : >> { %2944 = vmatmul.msk.f32.vlgmr.msra.gmra.mxu3 %vm975_vm4, %v1446_v5  ;;  %v1729_v5 = vld [vmem:[%s1726_s27 + $0x10] sm:$0xff] }
 0x8e5   : >> { %v1378_v7 = vpop.f32.mrf.mxu1 }
 0x8e6   : >> { %2941 = vmatmul.msk.f32.vlgmr.msra.gmra.mxu0 %vm857_vm1, %v1378_v7  ;;  %v1727_v7 = vld [vmem:[%s1726_s27] sm:$0xff]  ;;  %s4023_s27 = smov 104  }
 0x8ee   : >> { %2948 = vmatmul.msk.f32.vlgmr.msrb.gmra.mxu0 %vm857_vm1, %v1501_v62  ;;  %v1763_v62 = vld [vmem:[%s1759_s4 + $0x18] sm:$0xff]  ;;  %s1731_s4 = scalar_lea.vmem %s3929_s12, %s3225_s29 }
 0x95a   : >> { %v1470_v9 = vpop.f32.mrf.mxu3 }
 0x95b   : >> { %2946 = vmatmul.msk.f32.vlgmr.msrb.gmra.mxu1 %vm857_vm1, %v1470_v9 }
 0x95c   : >> { %1787 = vmatpush.msrb.mxu1 %v1763_v62  ;;  %v1799_v62 = vld [vmem:[%s3699_s0] sm:$0xff] }
 0x95e   : >> { %1788 = vmatpush.msrb.mxu1 %v1762_v63  ;;  %v1982_v63 = vrot.slane %v1799_v62, 4 }
 0x960   : >> { %1789 = vmatpush.msrb.mxu1 %v1761_v0 }
 0x962   : >> { %1790 = vmatpush.msrb.mxu1 %v1760_v1 }
 0x963   : >> { %v1404_v11 = vpop.f32.mrf.mxu0  ;;  %2953 = vmatmul.msk.f32.vlgmr.msra.gmra.mxu1 %vm857_vm1, %v1593_v10 }
 0x964   : >> { %v1407_v14 = vadd.f32 %v1404_v11, %v1315_v43 }
 0x96b   : >> { %v1525_v15 = vpop.f32.mrf.mxu0  ;;  %2958 = vmatmul.msk.f32.vlgmr.msrb.gmra.mxu1 %vm911_vm3, %v3418_v2 }
 0x96c   : >> { %v1526_v16 = vadd.f32 %v1525_v15, %v3424_v8 }
 0x96e   : >> { %v1528_v17 = vsel %vm975_vm4, %v1526_v16, -inf }
 0x96f   : >> { %1529 = vmax.xlane.f32.xlu2 %v1528_v17 }
 0x973   : >> { %2959 = vmatmul.msk.f32.gmra.mxu1 %vm911_vm3, %v3421_v3 }
 0x9d8   : >> { %v1496_v18 = vpop.f32.mrf.mxu1 }
 0x9d9   : >> { %v1499_v19 = vadd.f32 %v1496_v18, %v1407_v14 }
 0x9e0   : >> { %v1617_v22 = vpop.f32.mrf.mxu1 }
 0x9e1   : >> { %v1618_v23 = vadd.f32 %v1617_v22, %v3424_v8 }
 0x9e2   : >> { %v1530_v24 = vpop.xlane.xlu2 %1529 }
 0x9e3   : >> { %v1531_v25 = vsub.f32 %v1526_v16, %v1530_v24  ;;  %v1620_v26 = vsel %vm975_vm4, %v1618_v23, -inf }
 0x9e4   : >> { %1621 = vmax.xlane.f32.xlu0 %v1620_v26 }
 0x9e5   : >> { %v1532_v27 = vmul.f32 1.442695, %v1531_v25  ;;  %v3086_v25 = vld [vmem:[%s1687_s30] ss:$0 sm:$0xff]  ;;  %s4014_s30 = smov 92  }
 0x9e7   : >> { %3120 = vpow2.f32 %v1532_v27 }
 0x9ed   : >> { %v3121_v28 = vpop.eup %3120 }
 0x9ee   : >> { %v1534_v29 = vsel %vm975_vm4, %v3121_v28, 0.0 }
 0x9ef   : >> { %1535 = vadd.xlane.f32.xlu1 %v1534_v29  ;;  %v1792_v29 = vpop.f32.mrf.mxu1 }
 0x9f8   : >> { %1539 = vrot.lane.b32.xlu0 %v3458_v20, %s3250_s8  ;;  %s4008_s8 = sld [smem:[#allocation15_spill]] }
 0x9fe   : >> { %s4011_s3 = scalar_lea.vmem %s4008_s8, %s3225_s29 }
 0x9ff   : >> { %v3085_v22 = vld [vmem:[%s4011_s3] ss:$0 sm:$0xff]  ;;  %s4024_s3 = smov 100  }
 0xa08   : >> { %1631 = vrot.lane.b32.xlu1 %v3458_v20, %s3251_s2  ;;  %v939_v20 = vld [vmem:[%s3492_s25 + $0x18] sm:$0xff]  ;;  %s4012_s2 = smov 124   ;;  %s4018_s25 = smov 84  }
 0xa09   : >> { %2950 = vmatpush.msk.msrb.mxu3 %vm861_vm0, %v939_v20  ;;  %v1657_v40 = vrot.slane %v939_v20, 4 }
 0xa0b   : >> { %1751 = vmatpush.msra.mxu3 %v1730_v4 }
 0xa0d   : >> { %1752 = vmatpush.msra.mxu3 %v1729_v5 }
 0xa0f   : >> { %1753 = vmatpush.msra.mxu3 %v1728_v6 }
 0xa11   : >> { %1754 = vmatpush.msra.mxu3 %v1727_v7 }
 0xa57   : >> { %v1622_v30 = vpop.xlane.xlu0 %1621 }
 0xa58   : >> { %v1623_v31 = vsub.f32 %v1618_v23, %v1622_v30 }
 0xa5a   : >> { %v1624_v32 = vmul.f32 1.442695, %v1623_v31  ;;  %v1795_v31 = vpop.f32.mrf.mxu1 }
 0xa5c   : >> { %3122 = vpow2.f32 %v1624_v32 }
 0xa62   : >> { %v3123_v33 = vpop.eup %3122  ;;  %v1536_v34 = vpop.xlane.xlu1 %1535 }
 0xa63   : >> { %3124 = vrcp.f32 %v1536_v34  ;;  %v1626_v35 = vsel %vm975_vm4, %v3123_v33, 0.0 }
 0xa64   : >> { %1627 = vadd.xlane.f32.xlu2 %v1626_v35 }
 0xa69   : >> { %v3125_v36 = vpop.eup %3124 }
 0xa6a   : >> { %v1538_v37 = vmul.f32 %v3125_v36, %v3121_v28  ;;  %v1540_v38 = vpop.permute.xlu0 %1539  ;;  %v3087_v28 = vld [vmem:[%s1764_s10] ss:$0 sm:$0xff]  ;;  %s4013_s10 = smov 96  }
 0xa6b   : >> { %1560 = vmatpush.msrb.mxu2 %v1540_v38  ;;  %v3645_v30 = vadd.f32 %v3087_v28, %v1792_v29  ;;  %v3649_v32 = vadd.f32 %v3087_v28, %v1795_v31 }
 0xa6c   : >> { %2949 = vmatmul.msk.f32.vlgmr.msrb.gmra.mxu2 %vm975_vm4, %v1538_v37 }
 0xa6d   : >> { %2955 = vmatpush.msk.msra.mxu2 %vm861_vm0, %v1657_v40  ;;  %1911 = vrot.lane.b32.xlu0 %v3645_v30, %s4012_s2 }
 0xa7a   : >> { %v1632_v39 = vpop.permute.xlu1 %1631 }
 0xa7b   : >> { %1652 = vmatpush.msra.mxu0 %v1632_v39 }
 0xa7d   : >> { %2960 = vmatpush.xpose.msk.msrb.mxu0 %vm857_vm1, %v3649_v32 }
 0xa81   : >> { %2961 = vmatpush.xpose.msk.msrb.mxu0 %vm857_vm1, %v3645_v30 }
 0xad7   : >> { %v1628_v41 = vpop.xlane.xlu2 %1627 }
 0xad8   : >> { %3126 = vrcp.f32 %v1628_v41 }
 0xad9   : >> { %3128 = vrcp.f32 %v3252_v52 }
 0xade   : >> { %v3127_v42 = vpop.eup %3126 }
 0xadf   : >> { %v1630_v43 = vmul.f32 %v3127_v42, %v3123_v33  ;;  %v3129_v53 = vpop.eup %3128  ;;  %v3088_v33 = vld [vmem:[%s1731_s4] ss:$0 sm:$0xff]  ;;  %v1912_v38 = vpop.permute.xlu0 %1911  ;;  %s4022_s4 = smov 76  }
 0xae0   : >> { %v1693_v54 = vmul.f32 32.0, %v3129_v53  ;;  %vm1697_vm5 = vweird.f32 %v3129_v53 }
 0xae1   : >> { %2954 = vmatmul.msk.f32.vlgmr.msra.gmra.mxu0 %vm975_vm4, %v1630_v43 }
 0xae2   : >> { %v1694_v55 = vsub.f32 1.0, %v1693_v54 }
 0xae4   : >> { %v1695_v56 = vmul.f32 %v3129_v53, %v1694_v55 }
 0xae6   : >> { %v1696_v57 = vadd.f32 %v3129_v53, %v1695_v56 }
 0xae8   : >> { %v3597_v58 = vsel %vm1697_vm5, %v3129_v53, %v1696_v57 }
 0xaef   : >> { %v1562_v44 = vpop.f32.mrf.mxu2 }
 0xaf0   : >> { %2951 = vmatmul.msk.f32.vlgmr.msrb.gmra.mxu3 %vm857_vm1, %v1562_v44 }
 0xaf1   : >> { %2965 = vmatpush.msk.msrb.mxu3 %vm861_vm0, %v1799_v62 }
 0xb5e   : >> { %v1654_v45 = vpop.f32.mrf.mxu0 }
 0xb5f   : >> { %2956 = vmatmul.msk.f32.vlgmr.msra.gmra.mxu2 %vm857_vm1, %v1654_v45 }
 0xb73   : >> { %v1588_v46 = vpop.f32.mrf.mxu3 }
 0xb74   : >> { %v1591_v47 = vadd.f32 %v1588_v46, %v1499_v19 }
 0xbe2   : >> { %v1680_v48 = vpop.f32.mrf.mxu2 }
 0xbe3   : >> { %v1683_v49 = vadd.f32 %v1680_v48, %v1591_v47 }
 0xbe5   : >> { %v1684_v50 = vadd.f32 %v3221_v13, %v1683_v49 }
 0xbe7   : >> { %v1689_v51 = vsel %vm911_vm3, %v1684_v50, 0.0 }
 0xbe8   : >> { %1690 = vadd.xlane.f32.xlu2 %v1689_v51 }
 0xc5b   : >> { %v1691_v59 = vpop.xlane.xlu2 %1690 }
 0xc5c   : >> { %v1699_v13 = vmul.f32 %v3597_v58, %v1691_v59 }
 0xc5e   : >> { %v1700_v60 = vsub.f32 %v1684_v50, %v1699_v13 }
 0xc60   : >> { %v1701_v61 = vmul.f32 %v1700_v60, %v1700_v60 }
 0xc62   : >> { %v1702_v21 = vsel %vm911_vm3, %v1701_v61, 0.0 }
 0xc63   : >> { %1703 = vadd.xlane.f32.xlu2 %v1702_v21 }
 0xc7b   : >> { %1913 = vrot.lane.b32.xlu2 %v3649_v32, %s4012_s2 }
 0xcd6   : >> { %v1704_v9 = vpop.xlane.xlu2 %1703 }
 0xcd7   : >> { %v1705_v10 = vmul.f32 %v1704_v9, %v3597_v58 }
 0xcd9   : >> { %v1706_v11 = vadd.f32 1e-05, %v1705_v10 }
 0xcdb   : >> { %3130 = vrsqrt.f32 %v1706_v11  ;;  %vm1713_vm7 = vweird.f32 %v1706_v11 }
 0xcde   : >> { %v1914_v37 = vpop.permute.xlu2 %1913 }
 0xcdf   : >> { %2967 = vmatpush.xpose.msk.msra.mxu0 %vm857_vm1, %v1914_v37 }
 0xce1   : >> { %v3131_v14 = vpop.eup %3130 }
 0xce2   : >> { %v1708_v15 = vmul.f32 %v3131_v14, %v1706_v11  ;;  %vm1714_vm6 = vweird.f32 %v3131_v14 }
 0xce3   : >> { %vm1715_vm8 = vmor %vm1713_vm7, %vm1714_vm6  ;;  %2968 = vmatpush.xpose.msk.msra.mxu0 %vm857_vm1, %v1912_v38 }
 0xce4   : >> { %v1709_v16 = vmul.f32 %v3131_v14, %v1708_v15 }
 0xce6   : >> { %v1710_v17 = vmul.f32 0.5, %v1709_v16 }
 0xce8   : >> { %v1711_v18 = vsub.f32 1.5, %v1710_v17 }
 0xcea   : >> { %v1712_v19 = vmul.f32 %v3131_v14, %v1711_v18 }
 0xcec   : >> { %v1716_v23 = vsel %vm1715_vm8, %v3131_v14, %v1712_v19 }
 0xced   : >> { %v1717_v24 = vmul.f32 %v1716_v23, %v1700_v60  ;;  %v1800_v23 = vld [vmem:[%s3699_s0 + $0x8] sm:$0xff] }
 0xcee   : >> { %v2182_v29 = vrot.slane %v1800_v23, 4 }
 0xcef   : >> { %v1721_v26 = vmul.f32 %v3085_v22, %v1717_v24 }
 0xcf1   : >> { %v3636_v27 = vadd.f32 %v3086_v25, %v1721_v26 }
 0xcf3   : >> { %2957 = vmatmul.msk.f32.vlgmr.msra.gmra.mxu3 %vm911_vm3, %v3636_v27 }
 0xcf4   : >> { %2972 = vmatpush.msk.msra.mxu3 %vm861_vm0, %v1982_v63 }
 0xd76   : >> { %v1756_v34 = vpop.f32.mrf.mxu3 }
 0xd77   : >> { %v1757_v35 = vadd.f32 %v3088_v33, %v1756_v34 }
 0xd79   : >> { %v3657_v36 = vmul.f32 0.5, %v1757_v35 }
 0xd7b   : >> { %1909 = vrot.lane.b32.xlu1 %v3657_v36, %s4012_s2  ;;  %2962 = vmatmul.msk.f32.vlgmr.msrb.gmra.mxu0 %vm857_vm1, %v3657_v36  ;;  %s4019_s2 = smov 112  }
 0xded   : >> { %v1910_v39 = vpop.permute.xlu1 %1909 }
 0xdee   : >> { %2969 = vmatmul.msk.f32.vlgmr.msra.gmra.mxu0 %vm857_vm1, %v1910_v39 }
 0xdf8   : >> { %v1836_v20 = vpop.f32.mrf.mxu0 }
 0xdf9   : >> { %v1840_v40 = vsel %vm1839_vm9, %v1836_v20, -inf }
 0xdfa   : >> { %1841 = vmax.xlane.f32.xlu0 %v1840_v40 }
 0xe0e   : >> { %1853 = vrot.lane.b32.xlu0 %v3649_v32, %s4013_s10 }
 0xe16   : >> { %1952 = vrot.lane.b32.xlu0 %v3645_v30, %s4014_s30 }
 0xe1e   : >> { %2013 = vrot.lane.b32.xlu0 %v3649_v32, %s4015_s26 }
 0xe26   : >> { %2011 = vrot.lane.b32.xlu0 %v3645_v30, %s4015_s26 }
 0xe2e   : >> { %2109 = vrot.lane.b32.xlu0 %v3657_v36, %s4016_s7 }
 0xe6b   : >> { %v1938_v41 = vpop.f32.mrf.mxu0 }
 0xe6c   : >> { %v1941_v42 = vsel %vm1839_vm9, %v1938_v41, -inf }
 0xe6d   : >> { %1942 = vmax.xlane.f32.xlu1 %v1941_v42  ;;  %v1842_v43 = vpop.xlane.xlu0 %1841 }
 0xe6e   : >> { %v1843_v44 = vsub.f32 %v1836_v20, %v1842_v43 }
 0xe70   : >> { %v1844_v45 = vmul.f32 1.442695, %v1843_v44 }
 0xe72   : >> { %3132 = vpow2.f32 %v1844_v45 }
 0xe78   : >> { %v3133_v46 = vpop.eup %3132 }
 0xe79   : >> { %v1846_v47 = vsel %vm1839_vm9, %v3133_v46, 0.0 }
 0xe7a   : >> { %1847 = vadd.xlane.f32.xlu2 %v1846_v47 }
 0xe80   : >> { %v1854_v48 = vpop.permute.xlu0 %1853 }
 0xe81   : >> { %2963 = vmatpush.msk.msrb.mxu2 %vm1859_vm10, %v1854_v48  ;;  %v3089_v48 = vld [vmem:[%s1803_s11] ss:$0 sm:$0xff]  ;;  %s4026_s11 = smov 68  }
 0xe88   : >> { %v1953_v49 = vpop.permute.xlu0 %1952 }
 0xe90   : >> { %v2014_v50 = vpop.permute.xlu0 %2013 }
 0xe91   : >> { %2974 = vmatpush.xpose.msk.msra.mxu1 %vm857_vm1, %v2014_v50 }
 0xe92   : >> { %1851 = vrot.lane.b32.xlu2 %v3645_v30, %s4013_s10  ;;  %s4020_s10 = smov 108  }
 0xe98   : >> { %v2012_v51 = vpop.permute.xlu0 %2011 }
 0xe99   : >> { %2975 = vmatpush.xpose.msk.msra.mxu1 %vm857_vm1, %v2012_v51 }
 0xe9a   : >> { %2113 = vrot.lane.b32.xlu2 %v3649_v32, %s4016_s7 }
 0xea0   : >> { %v2110_v19 = vpop.permute.xlu0 %2109 }
 0xea2   : >> { %2009 = vrot.lane.b32.xlu2 %v3657_v36, %s4015_s26 }
 0xee0   : >> { %v1943_v52 = vpop.xlane.xlu1 %1942 }
 0xee1   : >> { %v1944_v53 = vsub.f32 %v1938_v41, %v1943_v52 }
 0xee3   : >> { %v1945_v54 = vmul.f32 1.442695, %v1944_v53 }
 0xee5   : >> { %3134 = vpow2.f32 %v1945_v54 }
 0xeeb   : >> { %v3135_v55 = vpop.eup %3134 }
 0xeec   : >> { %v1947_v56 = vsel %vm1839_vm9, %v3135_v55, 0.0 }
 0xeed   : >> { %1948 = vadd.xlane.f32.xlu1 %v1947_v56  ;;  %v1848_v57 = vpop.xlane.xlu2 %1847 }
 0xeee   : >> { %3136 = vrcp.f32 %v1848_v57 }
 0xef4   : >> { %v3137_v59 = vpop.eup %3136 }
 0xef5   : >> { %v1850_v13 = vmul.f32 %v3137_v59, %v3133_v46  ;;  %v1852_v60 = vpop.permute.xlu2 %1851 }
 0xef6   : >> { %1877 = vmatpush.msrb.mxu2 %v1852_v60 }
 0xef7   : >> { %2964 = vmatmul.msk.f32.vlgmr.msrb.gmra.mxu2 %vm1839_vm9, %v1850_v13 }
 0xefd   : >> { %v2114_v61 = vpop.permute.xlu2 %2113 }
 0xf05   : >> { %v2010_v21 = vpop.permute.xlu2 %2009 }
 0xf06   : >> { %1954 = vrot.lane.b32.xlu1 %v3649_v32, %s4014_s30  ;;  %2976 = vmatmul.msk.f32.vlgmr.msra.gmra.mxu1 %vm857_vm1, %v2010_v21  ;;  %s2612_s30 = scalar_lea.vmem %s3935_s18, %s3225_s29 }
 0xf0e   : >> { %2111 = vrot.lane.b32.xlu1 %v3645_v30, %s4016_s7  ;;  %s4021_s7 = smov 80  }
 0xf60   : >> { %v1949_v0 = vpop.xlane.xlu1 %1948 }
 0xf61   : >> { %3138 = vrcp.f32 %v1949_v0 }
 0xf67   : >> { %v3139_v1 = vpop.eup %3138 }
 0xf68   : >> { %v1951_v5 = vmul.f32 %v3139_v1, %v3135_v55 }
 0xf78   : >> { %v1955_v4 = vpop.permute.xlu1 %1954 }
 0xf79   : >> { %2970 = vmatpush.msk.msra.mxu2 %vm1859_vm10, %v1955_v4 }
 0xf7a   : >> { %v1879_v6 = vpop.f32.mrf.mxu2 }
 0xf7b   : >> { %2966 = vmatmul.msk.f32.vlgmr.msrb.gmra.mxu3 %vm857_vm1, %v1879_v6  ;;  %1977 = vmatpush.msra.mxu2 %v1953_v49 }
 0xf7c   : >> { %2981 = vmatpush.xpose.msk.msrb.mxu3 %vm857_vm1, %v2114_v61  ;;  %2971 = vmatmul.msk.f32.vlgmr.msra.gmra.mxu2 %vm1839_vm9, %v1951_v5 }
 0xf7d   : >> { %2979 = vmatpush.msk.msrb.mxu2 %vm861_vm0, %v1800_v23 }
 0xf80   : >> { %v2112_v7 = vpop.permute.xlu1 %2111 }
 0xf81   : >> { %2982 = vmatpush.xpose.msk.msrb.mxu3 %vm857_vm1, %v2112_v7  ;;  %v1801_v7 = vld [vmem:[%s3699_s0 + $0x10] sm:$0xff] }
 0xf83   : >> { %v2038_v9 = vpop.f32.mrf.mxu1 }
 0xf84   : >> { %v2041_v10 = vsel %vm1839_vm9, %v2038_v9, -inf }
 0xf85   : >> { %2042 = vmax.xlane.f32.xlu1 %v2041_v10 }
 0xf9e   : >> { %2054 = vrot.lane.b32.xlu1 %v3649_v32, %s4017_s28 }
 0xfa6   : >> { %2152 = vrot.lane.b32.xlu1 %v3645_v30, %s4018_s25 }
 0xfae   : >> { %2211 = vrot.lane.b32.xlu1 %v3645_v30, %s4019_s2 }
 0xfb6   : >> { %2311 = vrot.lane.b32.xlu1 %v3645_v30, %s4020_s10 }
 0xff8   : >> { %v2043_v11 = vpop.xlane.xlu1 %2042 }
 0xff9   : >> { %v2044_v14 = vsub.f32 %v2038_v9, %v2043_v11 }
 0xffb   : >> { %v2045_v15 = vmul.f32 1.442695, %v2044_v14 }
 0xffd   : >> { %3140 = vpow2.f32 %v2045_v15 }
 0xffe   : >> { %v1905_v24 = vpop.f32.mrf.mxu3 }
 0xfff   : >> { %v1979_v16 = vpop.f32.mrf.mxu2  ;;  %v1908_v51 = vadd.f32 %v3089_v48, %v1905_v24 }
0x1000   : >> { %2973 = vmatmul.msk.f32.vlgmr.msra.gmra.mxu3 %vm857_vm1, %v1979_v16 }
0x1003   : >> { %v3141_v17 = vpop.eup %3140 }
0x1004   : >> { %v2047_v18 = vsel %vm1839_vm9, %v3141_v17, 0.0 }
0x1005   : >> { %2048 = vadd.xlane.f32.xlu0 %v2047_v18 }
0x1008   : >> { %2983 = vmatmul.msk.f32.vlgmr.msrb.gmra.mxu3 %vm857_vm1, %v2110_v19 }
0x1010   : >> { %v2055_v22 = vpop.permute.xlu1 %2054 }
0x1011   : >> { %2977 = vmatpush.msk.msrb.mxu0 %vm1859_vm10, %v2055_v22  ;;  %v2382_v22 = vrot.slane %v1801_v7, 4 }
0x1018   : >> { %v2153_v37 = vpop.permute.xlu1 %2152 }
0x1019   : >> { %2052 = vrot.lane.b32.xlu0 %v3645_v30, %s4017_s28  ;;  %s2722_s28 = scalar_lea.vmem %s3940_s23, %s3225_s29 }
0x1020   : >> { %v2212_v39 = vpop.permute.xlu1 %2211 }
0x1021   : >> { %2213 = vrot.lane.b32.xlu0 %v3649_v32, %s4019_s2 }
0x1028   : >> { %v2312_v56 = vpop.permute.xlu1 %2311 }
0x1029   : >> { %2209 = vrot.lane.b32.xlu0 %v3657_v36, %s4019_s2 }
0x1031   : >> { %2309 = vrot.lane.b32.xlu0 %v3657_v36, %s4020_s10 }
0x1078   : >> { %v2049_v25 = vpop.xlane.xlu0 %2048 }
0x1079   : >> { %3142 = vrcp.f32 %v2049_v25 }
0x107f   : >> { %v3143_v28 = vpop.eup %3142 }
0x1080   : >> { %v2051_v31 = vmul.f32 %v3143_v28, %v3141_v17 }
0x1083   : >> { %v2005_v26 = vpop.f32.mrf.mxu3 }
0x1084   : >> { %v2008_v52 = vadd.f32 %v2005_v26, %v1908_v51 }
0x108b   : >> { %v2138_v33 = vpop.f32.mrf.mxu3  ;;  %v2053_v34 = vpop.permute.xlu0 %2052 }
0x108c   : >> { %2077 = vmatpush.msrb.mxu0 %v2053_v34  ;;  %v2141_v35 = vsel %vm1839_vm9, %v2138_v33, -inf }
0x108d   : >> { %2142 = vmax.xlane.f32.xlu2 %v2141_v35  ;;  %2978 = vmatmul.msk.f32.vlgmr.msrb.gmra.mxu0 %vm1839_vm9, %v2051_v31 }
0x108e   : >> { %2986 = vmatpush.msk.msra.mxu0 %vm861_vm0, %v2182_v29 }
0x1093   : >> { %v2214_v38 = vpop.permute.xlu0 %2213 }
0x1094   : >> { %2988 = vmatpush.xpose.msk.msra.mxu2 %vm857_vm1, %v2214_v38 }
0x1098   : >> { %2989 = vmatpush.xpose.msk.msra.mxu2 %vm857_vm1, %v2212_v39 }
0x109b   : >> { %v2210_v45 = vpop.permute.xlu0 %2209 }
0x10a3   : >> { %v2310_v62 = vpop.permute.xlu0 %2309 }
0x1100   : >> { %v2143_v20 = vpop.xlane.xlu2 %2142 }
0x1101   : >> { %v2144_v40 = vsub.f32 %v2138_v33, %v2143_v20 }
0x1103   : >> { %v2145_v41 = vmul.f32 1.442695, %v2144_v40 }
0x1105   : >> { %3144 = vpow2.f32 %v2145_v41 }
0x110a   : >> { %v2079_v42 = vpop.f32.mrf.mxu0 }
0x110b   : >> { %v3145_v43 = vpop.eup %3144  ;;  %2980 = vmatmul.msk.f32.vlgmr.msrb.gmra.mxu2 %vm857_vm1, %v2079_v42 }
0x110c   : >> { %v2147_v44 = vsel %vm1839_vm9, %v3145_v43, 0.0 }
0x110d   : >> { %2148 = vadd.xlane.f32.xlu2 %v2147_v44 }
0x1113   : >> { %2990 = vmatmul.msk.f32.vlgmr.msra.gmra.mxu2 %vm857_vm1, %v2210_v45 }
0x1125   : >> { %2154 = vrot.lane.b32.xlu2 %v3649_v32, %s4018_s25  ;;  %s2610_s25 = scalar_lea.vmem %s3934_s17, %s3225_s29 }
0x112d   : >> { %2313 = vrot.lane.b32.xlu2 %v3649_v32, %s4020_s10 }
0x1180   : >> { %v2149_v46 = vpop.xlane.xlu2 %2148 }
0x1181   : >> { %3146 = vrcp.f32 %v2149_v46 }
0x1187   : >> { %v3147_v47 = vpop.eup %3146 }
0x1188   : >> { %v2155_v49 = vpop.permute.xlu2 %2154  ;;  %v2151_v50 = vmul.f32 %v3147_v47, %v3145_v43 }
0x1189   : >> { %2984 = vmatpush.msk.msrb.mxu1 %vm1859_vm10, %v2155_v49 }
0x118b   : >> { %2177 = vmatpush.msrb.mxu1 %v2153_v37 }
0x118c   : >> { %2985 = vmatmul.msk.f32.vlgmr.msrb.gmra.mxu1 %vm1839_vm9, %v2151_v50 }
0x118d   : >> { %2993 = vmatpush.msk.msra.mxu1 %vm861_vm0, %v1801_v7 }
0x118e   : >> { %v2105_v53 = vpop.f32.mrf.mxu2 }
0x118f   : >> { %v2108_v54 = vadd.f32 %v2105_v53, %v2008_v52 }
0x1190   : >> { %v2314_v55 = vpop.permute.xlu2 %2313 }
0x1191   : >> { %2995 = vmatpush.xpose.msk.msrb.mxu0 %vm857_vm1, %v2314_v55 }
0x1195   : >> { %2996 = vmatpush.xpose.msk.msrb.mxu0 %vm857_vm1, %v2312_v56 }
0x1196   : >> { %v2238_v57 = vpop.f32.mrf.mxu2 }
0x1197   : >> { %v2241_v59 = vsel %vm1839_vm9, %v2238_v57, -inf }
0x1198   : >> { %2242 = vmax.xlane.f32.xlu2 %v2241_v59 }
0x1209   : >> { %v2179_v13 = vpop.f32.mrf.mxu1 }
0x120a   : >> { %2987 = vmatmul.msk.f32.vlgmr.msra.gmra.mxu0 %vm857_vm1, %v2179_v13 }
0x120b   : >> { %v2243_v60 = vpop.xlane.xlu2 %2242 }
0x120c   : >> { %v2244_v61 = vsub.f32 %v2238_v57, %v2243_v60 }
0x120e   : >> { %v2245_v21 = vmul.f32 1.442695, %v2244_v61 }
0x1210   : >> { %3148 = vpow2.f32 %v2245_v21 }
0x1212   : >> { %2997 = vmatmul.msk.f32.vlgmr.msrb.gmra.mxu0 %vm857_vm1, %v2310_v62 }
0x1216   : >> { %v3149_v63 = vpop.eup %3148 }
0x1217   : >> { %v2247_v0 = vsel %vm1839_vm9, %v3149_v63, 0.0 }
0x1218   : >> { %2248 = vadd.xlane.f32.xlu0 %v2247_v0 }
0x122c   : >> { %2252 = vrot.lane.b32.xlu0 %v3645_v30, %s4021_s7 }
0x1234   : >> { %2352 = vrot.lane.b32.xlu0 %v3645_v30, %s4022_s4 }
0x123c   : >> { %2411 = vrot.lane.b32.xlu0 %v3645_v30, %s4023_s27 }
0x1244   : >> { %2509 = vrot.lane.b32.xlu0 %v3657_v36, %s4024_s3 }
0x1287   : >> { %v2205_v1 = vpop.f32.mrf.mxu0 }
0x1288   : >> { %v2208_v4 = vadd.f32 %v2205_v1, %v2108_v54 }
0x128b   : >> { %v2249_v14 = vpop.xlane.xlu0 %2248 }
0x128f   : >> { %v2338_v5 = vpop.f32.mrf.mxu0 }
0x1290   : >> { %v2341_v6 = vsel %vm1839_vm9, %v2338_v5, -inf }
0x1291   : >> { %2342 = vmax.xlane.f32.xlu1 %v2341_v6 }
0x129e   : >> { %v2253_v17 = vpop.permute.xlu0 %2252 }
0x12a6   : >> { %v2353_v24 = vpop.permute.xlu0 %2352 }
0x12aa   : >> { %2254 = vrot.lane.b32.xlu1 %v3649_v32, %s4021_s7 }
0x12ae   : >> { %v2412_v26 = vpop.permute.xlu0 %2411 }
0x12b2   : >> { %2413 = vrot.lane.b32.xlu1 %v3649_v32, %s4023_s27 }
0x12b6   : >> { %v2510_v39 = vpop.permute.xlu0 %2509 }
0x12ba   : >> { %2511 = vrot.lane.b32.xlu1 %v3645_v30, %s4024_s3 }
0x1304   : >> { %v2343_v9 = vpop.xlane.xlu1 %2342 }
0x1305   : >> { %v2344_v10 = vsub.f32 %v2338_v5, %v2343_v9 }
0x1307   : >> { %v2345_v11 = vmul.f32 1.442695, %v2344_v10 }
0x1309   : >> { %3150 = vpow2.f32 %v2345_v11 }
0x130a   : >> { %3152 = vrcp.f32 %v2249_v14 }
0x130f   : >> { %v3151_v15 = vpop.eup %3150 }
0x1310   : >> { %v2347_v16 = vsel %vm1839_vm9, %v3151_v15, 0.0  ;;  %v3153_v18 = vpop.eup %3152 }
0x1311   : >> { %2348 = vadd.xlane.f32.xlu2 %v2347_v16  ;;  %v2251_v23 = vmul.f32 %v3153_v18, %v3149_v63 }
0x131c   : >> { %v2255_v19 = vpop.permute.xlu1 %2254 }
0x131d   : >> { %2991 = vmatpush.msk.msra.mxu3 %vm1859_vm10, %v2255_v19 }
0x131f   : >> { %2277 = vmatpush.msra.mxu3 %v2253_v17 }
0x1320   : >> { %2992 = vmatmul.msk.f32.vlgmr.msra.gmra.mxu3 %vm1839_vm9, %v2251_v23 }
0x1321   : >> { %3000 = vmatpush.msk.msrb.mxu3 %vm861_vm0, %v2382_v22 }
0x1324   : >> { %v2414_v25 = vpop.permute.xlu1 %2413 }
0x1325   : >> { %3002 = vmatpush.xpose.msk.msrb.mxu1 %vm857_vm1, %v2414_v25 }
0x1329   : >> { %2354 = vrot.lane.b32.xlu2 %v3649_v32, %s4022_s4  ;;  %3003 = vmatpush.xpose.msk.msrb.mxu1 %vm857_vm1, %v2412_v26  ;;  %s2649_s4 = scalar_lea.vmem %s3937_s20, %s3225_s29 }
0x132c   : >> { %v2512_v35 = vpop.permute.xlu1 %2511 }
0x1331   : >> { %2513 = vrot.lane.b32.xlu2 %v3649_v32, %s4024_s3 }
0x1339   : >> { %2409 = vrot.lane.b32.xlu2 %v3657_v36, %s4023_s27 }
0x1384   : >> { %v2349_v28 = vpop.xlane.xlu2 %2348 }
0x1385   : >> { %3154 = vrcp.f32 %v2349_v28 }
0x138b   : >> { %v3155_v29 = vpop.eup %3154 }
0x138c   : >> { %v2355_v31 = vpop.permute.xlu2 %2354  ;;  %v2351_v33 = vmul.f32 %v3155_v29, %v3151_v15 }
0x138d   : >> { %2998 = vmatpush.msk.msrb.mxu2 %vm1859_vm10, %v2355_v31 }
0x138f   : >> { %2377 = vmatpush.msrb.mxu2 %v2353_v24 }
0x1390   : >> { %2999 = vmatmul.msk.f32.vlgmr.msrb.gmra.mxu2 %vm1839_vm9, %v2351_v33 }
0x1394   : >> { %v2514_v34 = vpop.permute.xlu2 %2513 }
0x1395   : >> { %3009 = vmatpush.xpose.msk.msra.mxu3 %vm857_vm1, %v2514_v34 }
0x1399   : >> { %3010 = vmatpush.xpose.msk.msra.mxu3 %vm857_vm1, %v2512_v35 }
0x139c   : >> { %v2410_v36 = vpop.permute.xlu2 %2409 }
0x13a3   : >> { %v2279_v37 = vpop.f32.mrf.mxu3 }
0x13a4   : >> { %2994 = vmatmul.msk.f32.vlgmr.msra.gmra.mxu1 %vm857_vm1, %v2279_v37 }
0x13ac   : >> { %3004 = vmatmul.msk.f32.vlgmr.msrb.gmra.mxu1 %vm857_vm1, %v2410_v36 }
0x1413   : >> { %v2379_v38 = vpop.f32.mrf.mxu2 }
0x1414   : >> { %3001 = vmatmul.msk.f32.vlgmr.msrb.gmra.mxu3 %vm857_vm1, %v2379_v38 }
0x141c   : >> { %3011 = vmatmul.msk.f32.vlgmr.msra.gmra.mxu3 %vm857_vm1, %v2510_v39 }
0x1421   : >> { %v2305_v20 = vpop.f32.mrf.mxu1 }
0x1422   : >> { %v2308_v40 = vadd.f32 %v2305_v20, %v2208_v4 }
0x1429   : >> { %v2438_v41 = vpop.f32.mrf.mxu1 }
0x142a   : >> { %v2441_v42 = vsel %vm1839_vm9, %v2438_v41, -inf }
0x142b   : >> { %2442 = vmax.xlane.f32.xlu1 %v2441_v42 }
0x1444   : >> { %2454 = vrot.lane.b32.xlu1 %v3649_v32, %s4025_s6 }
0x1497   : >> { %v2405_v43 = vpop.f32.mrf.mxu3 }
0x1498   : >> { %v2408_v44 = vadd.f32 %v2405_v43, %v2308_v40 }
0x149e   : >> { %v2443_v45 = vpop.xlane.xlu1 %2442 }
0x149f   : >> { %v2444_v46 = vsub.f32 %v2438_v41, %v2443_v45  ;;  %v2538_v47 = vpop.f32.mrf.mxu3 }
0x14a0   : >> { %v2541_v48 = vsel %vm1839_vm9, %v2538_v47, -inf }
0x14a1   : >> { %v2445_v49 = vmul.f32 1.442695, %v2444_v46  ;;  %2542 = vmax.xlane.f32.xlu2 %v2541_v48 }
0x14a3   : >> { %3156 = vpow2.f32 %v2445_v49  ;;  %v3090_v49 = vld [vmem:[%s2610_s25] ss:$0 sm:$0xff] }
0x14a9   : >> { %v3157_v50 = vpop.eup %3156 }
0x14aa   : >> { %v2447_v51 = vsel %vm1839_vm9, %v3157_v50, 0.0 }
0x14ab   : >> { %2448 = vadd.xlane.f32.xlu0 %v2447_v51 }
0x14b6   : >> { %v2455_v52 = vpop.permute.xlu1 %2454 }
0x14b7   : >> { %3005 = vmatpush.msk.msra.mxu0 %vm1859_vm10, %v2455_v52  ;;  %v3091_v52 = vld [vmem:[%s2612_s30] ss:$0 sm:$0xff] }
0x14bf   : >> { %2452 = vrot.lane.b32.xlu0 %v3645_v30, %s4025_s6  ;;  %s2644_s6 = scalar_lea.vmem %s3936_s19, %s3446_s1 }
0x14c0   : >> { %v2647_v22 = vld [vmem:[%s2644_s6 + $0x10] sm:$0xff]  ;;  %v2646_v23 = vld [vmem:[%s2644_s6 + $0x8] sm:$0xff]  ;;  %v2645_v24 = vld [vmem:[%s2644_s6] sm:$0xff] }
0x14c7   : >> { %2552 = vrot.lane.b32.xlu0 %v3645_v30, %s4026_s11  ;;  %v1802_v30 = vld [vmem:[%s3699_s0 + $0x18] sm:$0xff] }
0x14c8   : >> { %3007 = vmatpush.msk.msra.mxu2 %vm861_vm0, %v1802_v30  ;;  %v2582_v21 = vrot.slane %v1802_v30, 4 }
0x1514   : >> { %v2543_v53 = vpop.xlane.xlu2 %2542 }
0x1515   : >> { %v2544_v54 = vsub.f32 %v2538_v47, %v2543_v53 }
0x1517   : >> { %v2545_v55 = vmul.f32 1.442695, %v2544_v54 }
0x1519   : >> { %3158 = vpow2.f32 %v2545_v55 }
0x151e   : >> { %v2449_v59 = vpop.xlane.xlu0 %2448 }
0x151f   : >> { %v3159_v56 = vpop.eup %3158  ;;  %3160 = vrcp.f32 %v2449_v59  ;;  %v3092_v59 = vld [vmem:[%s2649_s4] ss:$0 sm:$0xff] }
0x1520   : >> { %v2547_v57 = vsel %vm1839_vm9, %v3159_v56, 0.0 }
0x1521   : >> { %2548 = vadd.xlane.f32.xlu2 %v2547_v57 }
0x1525   : >> { %v3161_v13 = vpop.eup %3160 }
0x1526   : >> { %v2451_v60 = vmul.f32 %v3161_v13, %v3157_v50 }
0x1531   : >> { %v2453_v61 = vpop.permute.xlu0 %2452 }
0x1532   : >> { %2477 = vmatpush.msra.mxu0 %v2453_v61 }
0x1533   : >> { %3006 = vmatmul.msk.f32.vlgmr.msra.gmra.mxu0 %vm1839_vm9, %v2451_v60 }
0x1534   : >> { %3014 = vmatpush.msk.msrb.mxu0 %vm861_vm0, %v2582_v21 }
0x1539   : >> { %2554 = vrot.lane.b32.xlu2 %v3649_v32, %s4026_s11  ;;  %v2553_v1 = vpop.permute.xlu0 %2552  ;;  %s3017_s11 = sshll.u32 %s3225_s29, 7 }
0x153a   : >> { %s3843_s2 = scalar_lea.vmem %s3938_s21, %s3017_s11 }
0x153b   : >> { %v2695_v25 = vld [vmem:[%s3843_s2 + $0x78] sm:$0xff]  ;;  %v2694_v26 = vld [vmem:[%s3843_s2 + $0x70] sm:$0xff]  ;;  %v2693_v28 = vld [vmem:[%s3843_s2 + $0x68] sm:$0xff] }
0x153c   : >> { %2701 = vmatpush.msrb.mxu3 %v2695_v25  ;;  %v2692_v33 = vld [vmem:[%s3843_s2 + $0x60] sm:$0xff]  ;;  %v2691_v35 = vld [vmem:[%s3843_s2 + $0x58] sm:$0xff]  ;;  %v2690_v37 = vld [vmem:[%s3843_s2 + $0x50] sm:$0xff] }
0x153d   : >> { %v2689_v36 = vld [vmem:[%s3843_s2 + $0x48] sm:$0xff]  ;;  %v2688_v38 = vld [vmem:[%s3843_s2 + $0x40] sm:$0xff]  ;;  %v2687_v20 = vld [vmem:[%s3843_s2 + $0x38] sm:$0xff] }
0x153e   : >> { %2702 = vmatpush.msrb.mxu3 %v2694_v26  ;;  %v2686_v41 = vld [vmem:[%s3843_s2 + $0x30] sm:$0xff]  ;;  %v2685_v43 = vld [vmem:[%s3843_s2 + $0x28] sm:$0xff]  ;;  %v2684_v45 = vld [vmem:[%s3843_s2 + $0x20] sm:$0xff] }
0x153f   : >> { %v2683_v47 = vld [vmem:[%s3843_s2 + $0x18] sm:$0xff]  ;;  %v2682_v55 = vld [vmem:[%s3843_s2 + $0x10] sm:$0xff]  ;;  %v2680_v57 = vld [vmem:[%s3843_s2] sm:$0xff] }
0x1540   : >> { %2703 = vmatpush.msrb.mxu3 %v2693_v28 }
0x1542   : >> { %2704 = vmatpush.msrb.mxu3 %v2692_v33 }
0x1544   : >> { %2705 = vmatpush.msrb.mxu3 %v2691_v35 }
0x1546   : >> { %2706 = vmatpush.msrb.mxu3 %v2690_v37 }
0x1548   : >> { %2707 = vmatpush.msrb.mxu3 %v2689_v36 }
0x154a   : >> { %2708 = vmatpush.msrb.mxu3 %v2688_v38 }
0x154c   : >> { %2709 = vmatpush.msrb.mxu3 %v2687_v20 }
0x154e   : >> { %2710 = vmatpush.msrb.mxu3 %v2686_v41 }
0x1550   : >> { %2711 = vmatpush.msrb.mxu3 %v2685_v43 }
0x1552   : >> { %2712 = vmatpush.msrb.mxu3 %v2684_v45 }
0x1554   : >> { %2713 = vmatpush.msrb.mxu3 %v2683_v47 }
0x1556   : >> { %2714 = vmatpush.msrb.mxu3 %v2682_v55 }
0x1594   : >> { %v2549_v62 = vpop.xlane.xlu2 %2548 }
0x1595   : >> { %3162 = vrcp.f32 %v2549_v62 }
0x159b   : >> { %v3163_v63 = vpop.eup %3162 }
0x159c   : >> { %v2555_v0 = vpop.permute.xlu2 %2554  ;;  %v2551_v4 = vmul.f32 %v3163_v63, %v3159_v56  ;;  %v2681_v56 = vld [vmem:[%s3843_s2 + $0x8] sm:$0xff]  ;;  %s2724_s2 = scalar_lea.vmem %s3941_s24, %s3225_s29 }
0x159d   : >> { %3012 = vmatpush.msk.msra.mxu1 %vm1859_vm10, %v2555_v0  ;;  %2715 = vmatpush.msrb.mxu3 %v2681_v56 }
0x159f   : >> { %2577 = vmatpush.msra.mxu1 %v2553_v1  ;;  %2716 = vmatpush.msrb.mxu3 %v2680_v57 }
0x15a0   : >> { %3013 = vmatmul.msk.f32.vlgmr.msra.gmra.mxu1 %vm1839_vm9, %v2551_v4 }
0x15b0   : >> { %v2479_v5 = vpop.f32.mrf.mxu0 }
0x15b1   : >> { %3008 = vmatmul.msk.f32.vlgmr.msra.gmra.mxu2 %vm857_vm1, %v2479_v5 }
0x161d   : >> { %v2579_v32 = vpop.f32.mrf.mxu1 }
0x161e   : >> { %3015 = vmatmul.msk.f32.vlgmr.msrb.gmra.mxu0 %vm857_vm1, %v2579_v32 }
0x1634   : >> { %v2505_v6 = vpop.f32.mrf.mxu2 }
0x1635   : >> { %v2508_v7 = vadd.f32 %v2505_v6, %v2408_v44 }
0x169b   : >> { %v2605_v9 = vpop.f32.mrf.mxu0 }
0x169c   : >> { %v2608_v10 = vadd.f32 %v2605_v9, %v2508_v7 }
0x169e   : >> { %v2609_v11 = vadd.f32 %v2608_v10, %v3636_v27  ;;  %v2648_v27 = vld [vmem:[%s2644_s6 + $0x18] sm:$0xff]  ;;  %s2696_s6 = scalar_lea.vmem %s3939_s22, %s3225_s29  ;;  %s898_s29 = sadd.s32 1, %s3225_s29  }
0x169f   : >> { %2669 = vmatpush.msrb.mxu2 %v2648_v27  ;;  %v3093_v30 = vld [vmem:[%s2696_s6] ss:$0 sm:$0xff]  ;;  %p895_p7 = scmp.ge.s32.totalorder %s898_s29, 8  }
0x16a0   : >> { %v2614_v14 = vsel %vm911_vm3, %v2609_v11, 0.0  ;;  %s4028_s7 = sld [smem:[#allocation18_spill]] (%p895_p7)  ;;  %v3168_v3 = vld [vmem:[#allocation2] ss:$0 sm:$0xff] (%p895_p7) }
0x16a1   : >> { %2615 = vadd.xlane.f32.xlu1 %v2614_v14  ;;  %2670 = vmatpush.msrb.mxu2 %v2647_v22  ;;  %v3095_v22 = vld [vmem:[%s2724_s2] ss:$0 sm:$0xff] }
0x16a3   : >> { %2671 = vmatpush.msrb.mxu2 %v2646_v23 }
0x16a5   : >> { %2672 = vmatpush.msrb.mxu2 %v2645_v24 }
0x16a6   : > { %s4029_s27 = smov (%p895_p7), %s4028_s7 }
0x16a7   : > { %v2759_v26 = vld [vmem:[%s4029_s27 + $0x10] sm:$0xff] (%p895_p7)  ;;  %v2758_v28 = vld [vmem:[%s4029_s27 + $0x8] sm:$0xff] (%p895_p7) }
0x1714   : >> { %v2616_v15 = vpop.xlane.xlu1 %2615 }
0x1715   : >> { %v2617_v16 = vmul.f32 %v2616_v15, %v3597_v58 }
0x1717   : >> { %v2618_v17 = vsub.f32 %v2609_v11, %v2617_v16 }
0x1719   : >> { %v2619_v18 = vmul.f32 %v2618_v17, %v2618_v17 }
0x171b   : >> { %v2620_v19 = vsel %vm911_vm3, %v2619_v18, 0.0 }
0x171c   : >> { %2621 = vadd.xlane.f32.xlu0 %v2620_v19  ;;  %v3094_v19 = vld [vmem:[%s2722_s28] ss:$0 sm:$0xff] }
0x178f   : >> { %v2622_v29 = vpop.xlane.xlu0 %2621 }
0x1790   : >> { %v2623_v31 = vmul.f32 %v2622_v29, %v3597_v58  ;;  %v2757_v29 = vld [vmem:[%s4029_s27] sm:$0xff] (%p895_p7) }
0x1792   : >> { %v2624_v34 = vadd.f32 1e-05, %v2623_v31 }
0x1794   : >> { %3164 = vrsqrt.f32 %v2624_v34  ;;  %vm2631_vm12 = vweird.f32 %v2624_v34 }
0x179a   : >> { %v3165_v39 = vpop.eup %3164 }
0x179b   : >> { %v2626_v40 = vmul.f32 %v3165_v39, %v2624_v34  ;;  %vm2632_vm11 = vweird.f32 %v3165_v39 }
0x179c   : >> { %vm2633_vm13 = vmor %vm2631_vm12, %vm2632_vm11 }
0x179d   : >> { %v2627_v42 = vmul.f32 %v3165_v39, %v2626_v40 }
0x179f   : >> { %v2628_v44 = vmul.f32 0.5, %v2627_v42 }
0x17a1   : >> { %v2629_v46 = vsub.f32 1.5, %v2628_v44 }
0x17a3   : >> { %v2630_v48 = vmul.f32 %v3165_v39, %v2629_v46 }
0x17a5   : >> { %v2634_v50 = vsel %vm2633_vm13, %v3165_v39, %v2630_v48 }
0x17a6   : >> { %v2635_v51 = vmul.f32 %v2634_v50, %v2618_v17 }
0x17a8   : >> { %v2639_v53 = vmul.f32 %v3090_v49, %v2635_v51 }
0x17aa   : >> { %v2643_v54 = vadd.f32 %v3091_v52, %v2639_v53 }
0x17ac   : >> { %3016 = vmatmul.msk.f32.vlgmr.msrb.gmra.mxu2 %vm911_vm3, %v2643_v54 }
0x182f   : >> { %v2674_v13 = vpop.f32.mrf.mxu2 }
0x1830   : >> { %v2675_v60 = vadd.f32 %v3092_v59, %v2674_v13 }
0x1832   : >> { %v2677_v61 = vmax.f32 %v2675_v60, 0.0 }
0x1834   : >> { %2717 = vmatmul.f32.vlgmr.msrb.gmra.mxu3 %v2677_v61 }
0x18b7   : >> { %v2718_v21 = vpop.f32.mrf.mxu3 }
0x18b8   : >> { %v2719_v62 = vadd.f32 %v3093_v30, %v2718_v21 }
0x18ba   : >> { %v2721_v63 = vadd.f32 %v2719_v62, %v2643_v54 }
0x18bc   : >> { %v2726_v0 = vsel %vm911_vm3, %v2721_v63, 0.0 }
0x18bd   : >> { %2727 = vadd.xlane.f32.xlu2 %v2726_v0 }
0x1930   : >> { %v2728_v1 = vpop.xlane.xlu2 %2727 }
0x1931   : >> { %v2729_v4 = vmul.f32 %v2728_v1, %v3597_v58 }
0x1933   : >> { %v2730_v5 = vsub.f32 %v2721_v63, %v2729_v4 }
0x1935   : >> { %v2731_v32 = vmul.f32 %v2730_v5, %v2730_v5 }
0x1937   : >> { %v2732_v6 = vsel %vm911_vm3, %v2731_v32, 0.0 }
0x1938   : >> { %2733 = vadd.xlane.f32.xlu1 %v2732_v6 }
0x19ab   : >> { %v2734_v7 = vpop.xlane.xlu1 %2733 }
0x19ac   : >> { %v2735_v9 = vmul.f32 %v2734_v7, %v3597_v58  ;;  %v2760_v58 = vld [vmem:[%s4028_s7 + $0x18] sm:$0xff] (%p895_p7) }
0x19ad   : > { %2781 = vmatpush.msra.mxu0 (%p895_p7), %v2760_v58 }
0x19ae   : >> { %v2736_v10 = vadd.f32 1e-05, %v2735_v9 }
0x19af   : > { %2782 = vmatpush.msra.mxu0 (%p895_p7), %v2759_v26 }
0x19b0   : >> { %3166 = vrsqrt.f32 %v2736_v10  ;;  %vm2743_vm15 = vweird.f32 %v2736_v10 }
0x19b1   : > { %2783 = vmatpush.msra.mxu0 (%p895_p7), %v2758_v28 }
0x19b3   : > { %2784 = vmatpush.msra.mxu0 (%p895_p7), %v2757_v29 }
0x19b6   : >> { %v3167_v11 = vpop.eup %3166 }
0x19b7   : >> { %v2738_v14 = vmul.f32 %v3167_v11, %v2736_v10  ;;  %vm2744_vm14 = vweird.f32 %v3167_v11 }
0x19b8   : >> { %vm2745_vm2 = vmor %vm2743_vm15, %vm2744_vm14 }
0x19b9   : >> { %v2739_v15 = vmul.f32 %v3167_v11, %v2738_v14 }
0x19bb   : >> { %v2740_v16 = vmul.f32 0.5, %v2739_v15 }
0x19bd   : >> { %v2741_v17 = vsub.f32 1.5, %v2740_v16 }
0x19bf   : >> { %v2742_v18 = vmul.f32 %v3167_v11, %v2741_v17 }
0x19c1   : >> { %v2746_v27 = vsel %vm2745_vm2, %v3167_v11, %v2742_v18 }
0x19c2   : >> { %v2747_v23 = vmul.f32 %v2746_v27, %v2730_v5 }
0x19c4   : >> { %v2751_v24 = vmul.f32 %v3094_v19, %v2747_v23  ;;  %897 = sbr.rel (!%p895_p7) target bundleno = 169 (0xa9), region = 193 }
0x19c6   : >> { %v2755_v25 = vadd.f32 %v3095_v22, %v2751_v24  }
0x19c8   : >> { %v4027_v13 = vmov %v2755_v25  ;;  %v2756_v2 = vadd.f32 (%p895_p7), %v2755_v25, %v3432_v12 }
0x19ca   : > { %3018 = vmatmul.msk.f32.vlgmr.msra.gmra.mxu0 %vm911_vm3, %v2756_v2 }
0x1a47   : > { %v2786_v8 = vpop.f32.mrf.mxu0 }
0x1a48   : > { %v2787_v31 = vadd.f32 %v3168_v3, %v2786_v8 }
0x1a4a   : > { %2789 = vst [vmem:[%s3413_s9] sm:$0xff] %v2787_v31 }
0x1a4b PF: > { %s4030_s29 = sld [smem:[#allocation5_spill]] }
0x1a51   : > { %s38_s7 = sadd.s32 1, %s4030_s29  }
0x1a52   : > { %p35_p8 = scmp.ge.s32.totalorder %s38_s7, 4  }
0x1a54   :  { %37 = sbr.rel (!%p35_p8) target bundleno = 17 (0x11), region = 204 }
0x1a59   :  { %2809 = vsyncpa [#allocation3], 1 }
0x1a5a   :  { %2811 = vsyncpa [#allocation3 + $0x1], 1 }

</bundles_post_ra>
